<compile_context>
chip_gen: v7x
topology: tpu7x:2x2x1
jax: 0.10.0
libtpu: 0.0.40
codegen_flags: <defaults>
</compile_context>

<pallas_src>
import jax
import jax.numpy as jnp
from jax.experimental import pallas as pl
from jax.experimental.pallas import tpu as pltpu


def _fused_dimreduce_kernel(x_ref, w1_ref, b1_ref, a1_ref, w2_ref, b2_ref,
                            a2_ref, o_ref, xpad_ref, mpad_ref):
    """One batch-group (T images packed along lanes), fully fused.

    x_ref   : (T, Cin, H, W)        VMEM  input block (NCHW)
    w1_ref  : (9*Cin*Cin,)          SMEM  conv1 weights, HWIO flattened
    b1_ref  : (Cin,)                SMEM  conv1 bias
    a1_ref  : (Cin,)                SMEM  PReLU1 slopes
    w2_ref  : (9*Cin*Cout,)         SMEM  conv2 weights, HWIO flattened
    b2_ref  : (Cout,)               SMEM  conv2 bias
    a2_ref  : (Cout,)               SMEM  PReLU2 slopes
    o_ref   : (T, Cout, H, W)       VMEM  output block (NCHW)
    xpad_ref: (Cin, H+2, T*(W+2))   VMEM  scratch, lane-packed padded input
    mpad_ref: (Cin, H+2, T*(W+2))   VMEM  scratch, lane-packed padded conv1 act
    """
    T, Cin, H, W = x_ref.shape
    Cout = o_ref.shape[1]
    Cmid = Cin                      # conv1: in_channels -> in_channels
    S = W + 2                       # per-image tile width incl. its own halo
    L = xpad_ref.shape[-1]          # T * S
    Lm2 = L - 2                     # conv-plane width

    # ---- zero the scratch borders ONCE; interiors are rewritten each step --
    @pl.when(pl.program_id(0) == 0)
    def _init():
        xpad_ref[...] = jnp.zeros_like(xpad_ref)
        mpad_ref[...] = jnp.zeros_like(mpad_ref)

    # ---- stage T images side-by-side along lanes, each with private halo ---
    for ci in range(Cin):
        for t in range(T):
            xpad_ref[ci, 1:H + 1, t * S + 1:t * S + 1 + W] = (
                x_ref[t, ci].astype(jnp.float32))

    # Lane mask: True on real-pixel columns of an (H, Lm2) conv plane, False
    # on the inter-tile garbage columns (static, built once per step).
    col = jax.lax.broadcasted_iota(jnp.int32, (H, Lm2), 1)
    valid = col < W                                   # tile 0
    for t in range(1, T):
        valid = valid | ((col >= t * S) & (col < t * S + W))

    # ---- conv1 (Cin -> Cmid) + bias + PReLU, kept in VMEM -------------------
    # Accumulators are bias-initialized (saves a full-plane add per channel).
    acc1 = [jnp.full((H, Lm2), b1_ref[co], jnp.float32) for co in range(Cmid)]
    for kh in range(3):
        for kw in range(3):
            for ci in range(Cin):
                patch = xpad_ref[ci, kh:kh + H, kw:kw + Lm2]
                base = ((kh * 3 + kw) * Cin + ci) * Cmid
                for co in range(Cmid):
                    acc1[co] = acc1[co] + w1_ref[base + co] * patch
    for co in range(Cmid):
        v = acc1[co]
        v = jnp.where(v > 0, v, a1_ref[co] * v)       # PReLU
        # Masked full-width store: inter-tile halo columns are re-zeroed so
        # conv2 sees correct per-image SAME padding; outer border stays at
        # its zero-once value.
        mpad_ref[co, 1:H + 1, 1:Lm2 + 1] = jnp.where(valid, v, 0.0)

    # ---- conv2 (Cmid -> Cout) + bias + PReLU -> output -----------------------
    acc2 = [jnp.full((H, Lm2), b2_ref[co], jnp.float32) for co in range(Cout)]
    for kh in range(3):
        for kw in range(3):
            for ci in range(Cmid):
                patch = mpad_ref[ci, kh:kh + H, kw:kw + Lm2]
                base = ((kh * 3 + kw) * Cmid + ci) * Cout
                for co in range(Cout):
                    acc2[co] = acc2[co] + w2_ref[base + co] * patch
    for co in range(Cout):
        v = acc2[co]
        v = jnp.where(v > 0, v, a2_ref[co] * v)        # PReLU
        for t in range(T):
            o_ref[t, co] = v[:, t * S:t * S + W].astype(o_ref.dtype)


def dim_reduce_conv(x_nchw, params):
    """Forward pass of DimReduceConv. x_nchw: (N, Cin, H, W) -> (N, Cout, H, W)."""
    N, Cin, H, W = x_nchw.shape
    Cout = params["w2"].shape[-1]

    # How many images fit side-by-side on the 128-lane axis (each needs W+2).
    S = W + 2
    T = max(1, min(128 // S, N))
    NG = -(-N // T)                       # ceil(N / T) grid steps
    N_pad = NG * T
    x_in = x_nchw
    if N_pad != N:
        x_in = jnp.pad(x_nchw, ((0, N_pad - N), (0, 0), (0, 0), (0, 0)))
    L = T * S

    # Flatten HWIO weights row-major -> index ((kh*3+kw)*Cin + ci)*Cout + co.
    w1f = params["w1"].reshape(-1).astype(jnp.float32)
    w2f = params["w2"].reshape(-1).astype(jnp.float32)
    b1 = params["b1"].astype(jnp.float32)
    a1 = params["a1"].astype(jnp.float32)
    b2 = params["b2"].astype(jnp.float32)
    a2 = params["a2"].astype(jnp.float32)

    smem_spec = pl.BlockSpec(memory_space=pltpu.MemorySpace.SMEM)

    out = pl.pallas_call(
        _fused_dimreduce_kernel,
        out_shape=jax.ShapeDtypeStruct((N_pad, Cout, H, W), x_nchw.dtype),
        grid_spec=pltpu.PrefetchScalarGridSpec(
            num_scalar_prefetch=0,
            grid=(NG,),
            in_specs=[
                pl.BlockSpec((T, Cin, H, W), lambda g: (g, 0, 0, 0)),
                smem_spec,  # w1 (flattened)
                smem_spec,  # b1
                smem_spec,  # a1
                smem_spec,  # w2 (flattened)
                smem_spec,  # b2
                smem_spec,  # a2
            ],
            out_specs=pl.BlockSpec((T, Cout, H, W), lambda g: (g, 0, 0, 0)),
            scratch_shapes=[
                pltpu.VMEM((Cin, H + 2, L), jnp.float32),  # packed padded input
                pltpu.VMEM((Cin, H + 2, L), jnp.float32),  # packed padded conv1 act
            ],
        ),
        compiler_params=pltpu.CompilerParams(
            dimension_semantics=("parallel",),
            vmem_limit_bytes=32 * 1024 * 1024,
        ),
    )(x_in, w1f, b1, a1, w2f, b2, a2)

    return out[:N] if N_pad != N else out


def init_params(key, in_channels, out_channels):
    k1, k2, k3, k4 = jax.random.split(key, 4)
    # conv1: in_channels -> in_channels; conv2: in_channels -> out_channels.
    w1 = 0.1 * jax.random.normal(k1, (3, 3, in_channels, in_channels), jnp.float32)
    b1 = 0.1 * jax.random.normal(k2, (in_channels,), jnp.float32)
    w2 = 0.1 * jax.random.normal(k3, (3, 3, in_channels, out_channels), jnp.float32)
    b2 = 0.1 * jax.random.normal(k4, (out_channels,), jnp.float32)
    # PyTorch PReLU default init: 0.25 per channel.
    a1 = jnp.full((in_channels,), 0.25, jnp.float32)
    a2 = jnp.full((out_channels,), 0.25, jnp.float32)
    return {"w1": w1, "b1": b1, "a1": a1, "w2": w2, "b2": b2, "a2": a2}


def _reference(x_nchw, params):
    """Pure-JAX reference (lax conv) for the correctness check."""
    def conv(x, w, b, a):
        y = jax.lax.conv_general_dilated(
            x, w, window_strides=(1, 1), padding="SAME",
            dimension_numbers=("NCHW", "HWIO", "NCHW"))
        y = y + b.reshape(1, -1, 1, 1)
        return jnp.where(y > 0, y, a.reshape(1, -1, 1, 1) * y)
    out = conv(x_nchw, params["w1"], params["b1"], params["a1"])
    out = conv(out, params["w2"], params["b2"], params["a2"])
    return out


if __name__ == "__main__":
    key = jax.random.PRNGKey(0)
    kx, kp = jax.random.split(key)

    N, Cin, Cout, H, W = 2, 4, 2, 16, 16
    x = jax.random.normal(kx, (N, Cin, H, W), jnp.float32)
    params = init_params(kp, Cin, Cout)

    out = dim_reduce_conv(x, params)
    out = jax.block_until_ready(out)

    ref = _reference(x, params)
    assert out.shape == (N, Cout, H, W)
    assert jnp.allclose(out, ref, atol=1e-4, rtol=1e-4)

    print("KERNEL_OK")
</pallas_src>

<mosaic_0001>
module attributes {stable_mosaic.version = 11 : i64} {
  func.func @_fused_dimreduce_kernel(%arg0: i32, %arg1: memref<2x4x16x16xf32, #tpu.memory_space<vmem>>, %arg2: memref<144xf32, #tpu.memory_space<smem>>, %arg3: memref<4xf32, #tpu.memory_space<smem>>, %arg4: memref<4xf32, #tpu.memory_space<smem>>, %arg5: memref<72xf32, #tpu.memory_space<smem>>, %arg6: memref<2xf32, #tpu.memory_space<smem>>, %arg7: memref<2xf32, #tpu.memory_space<smem>>, %arg8: memref<2x2x16x16xf32, #tpu.memory_space<vmem>>, %arg9: memref<4x18x36xf32, #tpu.memory_space<vmem>>, %arg10: memref<4x18x36xf32, #tpu.memory_space<vmem>>) attributes {dimension_semantics = [#tpu.dimension_semantics<parallel>], iteration_bounds = array<i64: 1>, scalar_prefetch = 0 : i64, scratch_operands = 2 : i64, tpu.core_type = #tpu.core_type<tc>, window_params = [{transform_indices = @transform_0, window_bounds = array<i64: 2, 4, 16, 16>}, {transform_indices = @transform_1, window_bounds = array<i64: 144>}, {transform_indices = @transform_2, window_bounds = array<i64: 4>}, {transform_indices = @transform_3, window_bounds = array<i64: 4>}, {transform_indices = @transform_4, window_bounds = array<i64: 72>}, {transform_indices = @transform_5, window_bounds = array<i64: 2>}, {transform_indices = @transform_6, window_bounds = array<i64: 2>}, {transform_indices = @transform_7, window_bounds = array<i64: 2, 2, 16, 16>}]} {
    %c0_i32 = arith.constant 0 : i32
    %0 = arith.cmpi eq, %arg0, %c0_i32 : i32
    %1 = arith.extui %0 : i1 to i32
    %c0_i32_0 = arith.constant 0 : i32
    %2 = arith.cmpi ne, %1, %c0_i32_0 : i32
    scf.if %2 {
      %cst_394 = arith.constant 0.000000e+00 : f32
      %1144 = vector.broadcast %cst_394 : f32 to vector<4x18x36xf32>
      %c0_395 = arith.constant 0 : index
      %c0_396 = arith.constant 0 : index
      %c0_397 = arith.constant 0 : index
      %1145 = vector.load %arg9[%c0_395, %c0_396, %c0_397] : memref<4x18x36xf32, #tpu.memory_space<vmem>>, vector<4x18x36xf32>
      tpu.vector_store %arg9[%c0_395, %c0_396, %c0_397], %1144 {strides = array<i32>} : memref<4x18x36xf32, #tpu.memory_space<vmem>>, vector<4x18x36xf32>,
      %cst_398 = arith.constant 0.000000e+00 : f32
      %1146 = vector.broadcast %cst_398 : f32 to vector<4x18x36xf32>
      %c0_399 = arith.constant 0 : index
      %c0_400 = arith.constant 0 : index
      %c0_401 = arith.constant 0 : index
      %1147 = vector.load %arg10[%c0_399, %c0_400, %c0_401] : memref<4x18x36xf32, #tpu.memory_space<vmem>>, vector<4x18x36xf32>
      tpu.vector_store %arg10[%c0_399, %c0_400, %c0_401], %1146 {strides = array<i32>} : memref<4x18x36xf32, #tpu.memory_space<vmem>>, vector<4x18x36xf32>,
    } else {
    }
    %c0 = arith.constant 0 : index
    %c0_1 = arith.constant 0 : index
    %c0_2 = arith.constant 0 : index
    %c0_3 = arith.constant 0 : index
    %3 = vector.load %arg1[%c0, %c0_1, %c0_2, %c0_3] : memref<2x4x16x16xf32, #tpu.memory_space<vmem>>, vector<1x1x16x16xf32>
    %4 = vector.shape_cast %3 : vector<1x1x16x16xf32> to vector<16x16xf32>
    %c0_4 = arith.constant 0 : index
    %c1 = arith.constant 1 : index
    %c1_5 = arith.constant 1 : index
    %5 = vector.load %arg9[%c0_4, %c1, %c1_5] : memref<4x18x36xf32, #tpu.memory_space<vmem>>, vector<1x16x16xf32>
    %6 = vector.shape_cast %5 : vector<1x16x16xf32> to vector<16x16xf32>
    %7 = vector.shape_cast %4 : vector<16x16xf32> to vector<1x16x16xf32>
    tpu.vector_store %arg9[%c0_4, %c1, %c1_5], %7 {strides = array<i32>} : memref<4x18x36xf32, #tpu.memory_space<vmem>>, vector<1x16x16xf32>,
    %c1_6 = arith.constant 1 : index
    %c0_7 = arith.constant 0 : index
    %c0_8 = arith.constant 0 : index
    %c0_9 = arith.constant 0 : index
    %8 = vector.load %arg1[%c1_6, %c0_7, %c0_8, %c0_9] : memref<2x4x16x16xf32, #tpu.memory_space<vmem>>, vector<1x1x16x16xf32>
    %9 = vector.shape_cast %8 : vector<1x1x16x16xf32> to vector<16x16xf32>
    %c0_10 = arith.constant 0 : index
    %c1_11 = arith.constant 1 : index
    %c19 = arith.constant 19 : index
    %10 = vector.load %arg9[%c0_10, %c1_11, %c19] : memref<4x18x36xf32, #tpu.memory_space<vmem>>, vector<1x16x16xf32>
    %11 = vector.shape_cast %10 : vector<1x16x16xf32> to vector<16x16xf32>
    %12 = vector.shape_cast %9 : vector<16x16xf32> to vector<1x16x16xf32>
    tpu.vector_store %arg9[%c0_10, %c1_11, %c19], %12 {strides = array<i32>} : memref<4x18x36xf32, #tpu.memory_space<vmem>>, vector<1x16x16xf32>,
    %c0_12 = arith.constant 0 : index
    %c1_13 = arith.constant 1 : index
    %c0_14 = arith.constant 0 : index
    %c0_15 = arith.constant 0 : index
    %13 = vector.load %arg1[%c0_12, %c1_13, %c0_14, %c0_15] : memref<2x4x16x16xf32, #tpu.memory_space<vmem>>, vector<1x1x16x16xf32>
    %14 = vector.shape_cast %13 : vector<1x1x16x16xf32> to vector<16x16xf32>
    %c1_16 = arith.constant 1 : index
    %c1_17 = arith.constant 1 : index
    %c1_18 = arith.constant 1 : index
    %15 = vector.load %arg9[%c1_16, %c1_17, %c1_18] : memref<4x18x36xf32, #tpu.memory_space<vmem>>, vector<1x16x16xf32>
    %16 = vector.shape_cast %15 : vector<1x16x16xf32> to vector<16x16xf32>
    %17 = vector.shape_cast %14 : vector<16x16xf32> to vector<1x16x16xf32>
    tpu.vector_store %arg9[%c1_16, %c1_17, %c1_18], %17 {strides = array<i32>} : memref<4x18x36xf32, #tpu.memory_space<vmem>>, vector<1x16x16xf32>,
    %c1_19 = arith.constant 1 : index
    %c1_20 = arith.constant 1 : index
    %c0_21 = arith.constant 0 : index
    %c0_22 = arith.constant 0 : index
    %18 = vector.load %arg1[%c1_19, %c1_20, %c0_21, %c0_22] : memref<2x4x16x16xf32, #tpu.memory_space<vmem>>, vector<1x1x16x16xf32>
    %19 = vector.shape_cast %18 : vector<1x1x16x16xf32> to vector<16x16xf32>
    %c1_23 = arith.constant 1 : index
    %c1_24 = arith.constant 1 : index
    %c19_25 = arith.constant 19 : index
    %20 = vector.load %arg9[%c1_23, %c1_24, %c19_25] : memref<4x18x36xf32, #tpu.memory_space<vmem>>, vector<1x16x16xf32>
    %21 = vector.shape_cast %20 : vector<1x16x16xf32> to vector<16x16xf32>
    %22 = vector.shape_cast %19 : vector<16x16xf32> to vector<1x16x16xf32>
    tpu.vector_store %arg9[%c1_23, %c1_24, %c19_25], %22 {strides = array<i32>} : memref<4x18x36xf32, #tpu.memory_space<vmem>>, vector<1x16x16xf32>,
    %c0_26 = arith.constant 0 : index
    %c2 = arith.constant 2 : index
    %c0_27 = arith.constant 0 : index
    %c0_28 = arith.constant 0 : index
    %23 = vector.load %arg1[%c0_26, %c2, %c0_27, %c0_28] : memref<2x4x16x16xf32, #tpu.memory_space<vmem>>, vector<1x1x16x16xf32>
    %24 = vector.shape_cast %23 : vector<1x1x16x16xf32> to vector<16x16xf32>
    %c2_29 = arith.constant 2 : index
    %c1_30 = arith.constant 1 : index
    %c1_31 = arith.constant 1 : index
    %25 = vector.load %arg9[%c2_29, %c1_30, %c1_31] : memref<4x18x36xf32, #tpu.memory_space<vmem>>, vector<1x16x16xf32>
    %26 = vector.shape_cast %25 : vector<1x16x16xf32> to vector<16x16xf32>
    %27 = vector.shape_cast %24 : vector<16x16xf32> to vector<1x16x16xf32>
    tpu.vector_store %arg9[%c2_29, %c1_30, %c1_31], %27 {strides = array<i32>} : memref<4x18x36xf32, #tpu.memory_space<vmem>>, vector<1x16x16xf32>,
    %c1_32 = arith.constant 1 : index
    %c2_33 = arith.constant 2 : index
    %c0_34 = arith.constant 0 : index
    %c0_35 = arith.constant 0 : index
    %28 = vector.load %arg1[%c1_32, %c2_33, %c0_34, %c0_35] : memref<2x4x16x16xf32, #tpu.memory_space<vmem>>, vector<1x1x16x16xf32>
    %29 = vector.shape_cast %28 : vector<1x1x16x16xf32> to vector<16x16xf32>
    %c2_36 = arith.constant 2 : index
    %c1_37 = arith.constant 1 : index
    %c19_38 = arith.constant 19 : index
    %30 = vector.load %arg9[%c2_36, %c1_37, %c19_38] : memref<4x18x36xf32, #tpu.memory_space<vmem>>, vector<1x16x16xf32>
    %31 = vector.shape_cast %30 : vector<1x16x16xf32> to vector<16x16xf32>
    %32 = vector.shape_cast %29 : vector<16x16xf32> to vector<1x16x16xf32>
    tpu.vector_store %arg9[%c2_36, %c1_37, %c19_38], %32 {strides = array<i32>} : memref<4x18x36xf32, #tpu.memory_space<vmem>>, vector<1x16x16xf32>,
    %c0_39 = arith.constant 0 : index
    %c3 = arith.constant 3 : index
    %c0_40 = arith.constant 0 : index
    %c0_41 = arith.constant 0 : index
    %33 = vector.load %arg1[%c0_39, %c3, %c0_40, %c0_41] : memref<2x4x16x16xf32, #tpu.memory_space<vmem>>, vector<1x1x16x16xf32>
    %34 = vector.shape_cast %33 : vector<1x1x16x16xf32> to vector<16x16xf32>
    %c3_42 = arith.constant 3 : index
    %c1_43 = arith.constant 1 : index
    %c1_44 = arith.constant 1 : index
    %35 = vector.load %arg9[%c3_42, %c1_43, %c1_44] : memref<4x18x36xf32, #tpu.memory_space<vmem>>, vector<1x16x16xf32>
    %36 = vector.shape_cast %35 : vector<1x16x16xf32> to vector<16x16xf32>
    %37 = vector.shape_cast %34 : vector<16x16xf32> to vector<1x16x16xf32>
    tpu.vector_store %arg9[%c3_42, %c1_43, %c1_44], %37 {strides = array<i32>} : memref<4x18x36xf32, #tpu.memory_space<vmem>>, vector<1x16x16xf32>,
    %c1_45 = arith.constant 1 : index
    %c3_46 = arith.constant 3 : index
    %c0_47 = arith.constant 0 : index
    %c0_48 = arith.constant 0 : index
    %38 = vector.load %arg1[%c1_45, %c3_46, %c0_47, %c0_48] : memref<2x4x16x16xf32, #tpu.memory_space<vmem>>, vector<1x1x16x16xf32>
    %39 = vector.shape_cast %38 : vector<1x1x16x16xf32> to vector<16x16xf32>
    %c3_49 = arith.constant 3 : index
    %c1_50 = arith.constant 1 : index
    %c19_51 = arith.constant 19 : index
    %40 = vector.load %arg9[%c3_49, %c1_50, %c19_51] : memref<4x18x36xf32, #tpu.memory_space<vmem>>, vector<1x16x16xf32>
    %41 = vector.shape_cast %40 : vector<1x16x16xf32> to vector<16x16xf32>
    %42 = vector.shape_cast %39 : vector<16x16xf32> to vector<1x16x16xf32>
    tpu.vector_store %arg9[%c3_49, %c1_50, %c19_51], %42 {strides = array<i32>} : memref<4x18x36xf32, #tpu.memory_space<vmem>>, vector<1x16x16xf32>,
    %43 = tpu.iota {dimensions = array<i32: 1>} : vector<16x34xi32>
    %c16_i32 = arith.constant 16 : i32
    %44 = vector.broadcast %c16_i32 : i32 to vector<16x34xi32>
    %45 = arith.cmpi slt, %43, %44 : vector<16x34xi32>
    %c18_i32 = arith.constant 18 : i32
    %46 = vector.broadcast %c18_i32 : i32 to vector<16x34xi32>
    %47 = arith.cmpi sge, %43, %46 : vector<16x34xi32>
    %c34_i32 = arith.constant 34 : i32
    %48 = vector.broadcast %c34_i32 : i32 to vector<16x34xi32>
    %49 = arith.cmpi slt, %43, %48 : vector<16x34xi32>
    %50 = arith.andi %47, %49 : vector<16x34xi1>
    %51 = arith.ori %45, %50 : vector<16x34xi1>
    %c0_52 = arith.constant 0 : index
    %52 = memref.load %arg3[%c0_52] : memref<4xf32, #tpu.memory_space<smem>>
    %53 = vector.broadcast %52 : f32 to vector<16x34xf32>
    %c1_53 = arith.constant 1 : index
    %54 = memref.load %arg3[%c1_53] : memref<4xf32, #tpu.memory_space<smem>>
    %55 = vector.broadcast %54 : f32 to vector<16x34xf32>
    %c2_54 = arith.constant 2 : index
    %56 = memref.load %arg3[%c2_54] : memref<4xf32, #tpu.memory_space<smem>>
    %57 = vector.broadcast %56 : f32 to vector<16x34xf32>
    %c3_55 = arith.constant 3 : index
    %58 = memref.load %arg3[%c3_55] : memref<4xf32, #tpu.memory_space<smem>>
    %59 = vector.broadcast %58 : f32 to vector<16x34xf32>
    %c0_56 = arith.constant 0 : index
    %c0_57 = arith.constant 0 : index
    %c0_58 = arith.constant 0 : index
    %60 = vector.load %arg9[%c0_56, %c0_57, %c0_58] : memref<4x18x36xf32, #tpu.memory_space<vmem>>, vector<1x16x34xf32>
    %61 = vector.shape_cast %60 : vector<1x16x34xf32> to vector<16x34xf32>
    %c0_59 = arith.constant 0 : index
    %62 = memref.load %arg2[%c0_59] : memref<144xf32, #tpu.memory_space<smem>>
    %63 = vector.broadcast %62 : f32 to vector<16x34xf32>
    %64 = arith.mulf %63, %61 : vector<16x34xf32>
    %65 = arith.addf %53, %64 : vector<16x34xf32>
    %c1_60 = arith.constant 1 : index
    %66 = memref.load %arg2[%c1_60] : memref<144xf32, #tpu.memory_space<smem>>
    %67 = vector.broadcast %66 : f32 to vector<16x34xf32>
    %68 = arith.mulf %67, %61 : vector<16x34xf32>
    %69 = arith.addf %55, %68 : vector<16x34xf32>
    %c2_61 = arith.constant 2 : index
    %70 = memref.load %arg2[%c2_61] : memref<144xf32, #tpu.memory_space<smem>>
    %71 = vector.broadcast %70 : f32 to vector<16x34xf32>
    %72 = arith.mulf %71, %61 : vector<16x34xf32>
    %73 = arith.addf %57, %72 : vector<16x34xf32>
    %c3_62 = arith.constant 3 : index
    %74 = memref.load %arg2[%c3_62] : memref<144xf32, #tpu.memory_space<smem>>
    %75 = vector.broadcast %74 : f32 to vector<16x34xf32>
    %76 = arith.mulf %75, %61 : vector<16x34xf32>
    %77 = arith.addf %59, %76 : vector<16x34xf32>
    %c1_63 = arith.constant 1 : index
    %c0_64 = arith.constant 0 : index
    %c0_65 = arith.constant 0 : index
    %78 = vector.load %arg9[%c1_63, %c0_64, %c0_65] : memref<4x18x36xf32, #tpu.memory_space<vmem>>, vector<1x16x34xf32>
    %79 = vector.shape_cast %78 : vector<1x16x34xf32> to vector<16x34xf32>
    %c4 = arith.constant 4 : index
    %80 = memref.load %arg2[%c4] : memref<144xf32, #tpu.memory_space<smem>>
    %81 = vector.broadcast %80 : f32 to vector<16x34xf32>
    %82 = arith.mulf %81, %79 : vector<16x34xf32>
    %83 = arith.addf %65, %82 : vector<16x34xf32>
    %c5 = arith.constant 5 : index
    %84 = memref.load %arg2[%c5] : memref<144xf32, #tpu.memory_space<smem>>
    %85 = vector.broadcast %84 : f32 to vector<16x34xf32>
    %86 = arith.mulf %85, %79 : vector<16x34xf32>
    %87 = arith.addf %69, %86 : vector<16x34xf32>
    %c6 = arith.constant 6 : index
    %88 = memref.load %arg2[%c6] : memref<144xf32, #tpu.memory_space<smem>>
    %89 = vector.broadcast %88 : f32 to vector<16x34xf32>
    %90 = arith.mulf %89, %79 : vector<16x34xf32>
    %91 = arith.addf %73, %90 : vector<16x34xf32>
    %c7 = arith.constant 7 : index
    %92 = memref.load %arg2[%c7] : memref<144xf32, #tpu.memory_space<smem>>
    %93 = vector.broadcast %92 : f32 to vector<16x34xf32>
    %94 = arith.mulf %93, %79 : vector<16x34xf32>
    %95 = arith.addf %77, %94 : vector<16x34xf32>
    %c2_66 = arith.constant 2 : index
    %c0_67 = arith.constant 0 : index
    %c0_68 = arith.constant 0 : index
    %96 = vector.load %arg9[%c2_66, %c0_67, %c0_68] : memref<4x18x36xf32, #tpu.memory_space<vmem>>, vector<1x16x34xf32>
    %97 = vector.shape_cast %96 : vector<1x16x34xf32> to vector<16x34xf32>
    %c8 = arith.constant 8 : index
    %98 = memref.load %arg2[%c8] : memref<144xf32, #tpu.memory_space<smem>>
    %99 = vector.broadcast %98 : f32 to vector<16x34xf32>
    %100 = arith.mulf %99, %97 : vector<16x34xf32>
    %101 = arith.addf %83, %100 : vector<16x34xf32>
    %c9 = arith.constant 9 : index
    %102 = memref.load %arg2[%c9] : memref<144xf32, #tpu.memory_space<smem>>
    %103 = vector.broadcast %102 : f32 to vector<16x34xf32>
    %104 = arith.mulf %103, %97 : vector<16x34xf32>
    %105 = arith.addf %87, %104 : vector<16x34xf32>
    %c10 = arith.constant 10 : index
    %106 = memref.load %arg2[%c10] : memref<144xf32, #tpu.memory_space<smem>>
    %107 = vector.broadcast %106 : f32 to vector<16x34xf32>
    %108 = arith.mulf %107, %97 : vector<16x34xf32>
    %109 = arith.addf %91, %108 : vector<16x34xf32>
    %c11 = arith.constant 11 : index
    %110 = memref.load %arg2[%c11] : memref<144xf32, #tpu.memory_space<smem>>
    %111 = vector.broadcast %110 : f32 to vector<16x34xf32>
    %112 = arith.mulf %111, %97 : vector<16x34xf32>
    %113 = arith.addf %95, %112 : vector<16x34xf32>
    %c3_69 = arith.constant 3 : index
    %c0_70 = arith.constant 0 : index
    %c0_71 = arith.constant 0 : index
    %114 = vector.load %arg9[%c3_69, %c0_70, %c0_71] : memref<4x18x36xf32, #tpu.memory_space<vmem>>, vector<1x16x34xf32>
    %115 = vector.shape_cast %114 : vector<1x16x34xf32> to vector<16x34xf32>
    %c12 = arith.constant 12 : index
    %116 = memref.load %arg2[%c12] : memref<144xf32, #tpu.memory_space<smem>>
    %117 = vector.broadcast %116 : f32 to vector<16x34xf32>
    %118 = arith.mulf %117, %115 : vector<16x34xf32>
    %119 = arith.addf %101, %118 : vector<16x34xf32>
    %c13 = arith.constant 13 : index
    %120 = memref.load %arg2[%c13] : memref<144xf32, #tpu.memory_space<smem>>
    %121 = vector.broadcast %120 : f32 to vector<16x34xf32>
    %122 = arith.mulf %121, %115 : vector<16x34xf32>
    %123 = arith.addf %105, %122 : vector<16x34xf32>
    %c14 = arith.constant 14 : index
    %124 = memref.load %arg2[%c14] : memref<144xf32, #tpu.memory_space<smem>>
    %125 = vector.broadcast %124 : f32 to vector<16x34xf32>
    %126 = arith.mulf %125, %115 : vector<16x34xf32>
    %127 = arith.addf %109, %126 : vector<16x34xf32>
    %c15 = arith.constant 15 : index
    %128 = memref.load %arg2[%c15] : memref<144xf32, #tpu.memory_space<smem>>
    %129 = vector.broadcast %128 : f32 to vector<16x34xf32>
    %130 = arith.mulf %129, %115 : vector<16x34xf32>
    %131 = arith.addf %113, %130 : vector<16x34xf32>
    %c0_72 = arith.constant 0 : index
    %c0_73 = arith.constant 0 : index
    %c1_74 = arith.constant 1 : index
    %132 = vector.load %arg9[%c0_72, %c0_73, %c1_74] : memref<4x18x36xf32, #tpu.memory_space<vmem>>, vector<1x16x34xf32>
    %133 = vector.shape_cast %132 : vector<1x16x34xf32> to vector<16x34xf32>
    %c16 = arith.constant 16 : index
    %134 = memref.load %arg2[%c16] : memref<144xf32, #tpu.memory_space<smem>>
    %135 = vector.broadcast %134 : f32 to vector<16x34xf32>
    %136 = arith.mulf %135, %133 : vector<16x34xf32>
    %137 = arith.addf %119, %136 : vector<16x34xf32>
    %c17 = arith.constant 17 : index
    %138 = memref.load %arg2[%c17] : memref<144xf32, #tpu.memory_space<smem>>
    %139 = vector.broadcast %138 : f32 to vector<16x34xf32>
    %140 = arith.mulf %139, %133 : vector<16x34xf32>
    %141 = arith.addf %123, %140 : vector<16x34xf32>
    %c18 = arith.constant 18 : index
    %142 = memref.load %arg2[%c18] : memref<144xf32, #tpu.memory_space<smem>>
    %143 = vector.broadcast %142 : f32 to vector<16x34xf32>
    %144 = arith.mulf %143, %133 : vector<16x34xf32>
    %145 = arith.addf %127, %144 : vector<16x34xf32>
    %c19_75 = arith.constant 19 : index
    %146 = memref.load %arg2[%c19_75] : memref<144xf32, #tpu.memory_space<smem>>
    %147 = vector.broadcast %146 : f32 to vector<16x34xf32>
    %148 = arith.mulf %147, %133 : vector<16x34xf32>
    %149 = arith.addf %131, %148 : vector<16x34xf32>
    %c1_76 = arith.constant 1 : index
    %c0_77 = arith.constant 0 : index
    %c1_78 = arith.constant 1 : index
    %150 = vector.load %arg9[%c1_76, %c0_77, %c1_78] : memref<4x18x36xf32, #tpu.memory_space<vmem>>, vector<1x16x34xf32>
    %151 = vector.shape_cast %150 : vector<1x16x34xf32> to vector<16x34xf32>
    %c20 = arith.constant 20 : index
    %152 = memref.load %arg2[%c20] : memref<144xf32, #tpu.memory_space<smem>>
    %153 = vector.broadcast %152 : f32 to vector<16x34xf32>
    %154 = arith.mulf %153, %151 : vector<16x34xf32>
    %155 = arith.addf %137, %154 : vector<16x34xf32>
    %c21 = arith.constant 21 : index
    %156 = memref.load %arg2[%c21] : memref<144xf32, #tpu.memory_space<smem>>
    %157 = vector.broadcast %156 : f32 to vector<16x34xf32>
    %158 = arith.mulf %157, %151 : vector<16x34xf32>
    %159 = arith.addf %141, %158 : vector<16x34xf32>
    %c22 = arith.constant 22 : index
    %160 = memref.load %arg2[%c22] : memref<144xf32, #tpu.memory_space<smem>>
    %161 = vector.broadcast %160 : f32 to vector<16x34xf32>
    %162 = arith.mulf %161, %151 : vector<16x34xf32>
    %163 = arith.addf %145, %162 : vector<16x34xf32>
    %c23 = arith.constant 23 : index
    %164 = memref.load %arg2[%c23] : memref<144xf32, #tpu.memory_space<smem>>
    %165 = vector.broadcast %164 : f32 to vector<16x34xf32>
    %166 = arith.mulf %165, %151 : vector<16x34xf32>
    %167 = arith.addf %149, %166 : vector<16x34xf32>
    %c2_79 = arith.constant 2 : index
    %c0_80 = arith.constant 0 : index
    %c1_81 = arith.constant 1 : index
    %168 = vector.load %arg9[%c2_79, %c0_80, %c1_81] : memref<4x18x36xf32, #tpu.memory_space<vmem>>, vector<1x16x34xf32>
    %169 = vector.shape_cast %168 : vector<1x16x34xf32> to vector<16x34xf32>
    %c24 = arith.constant 24 : index
    %170 = memref.load %arg2[%c24] : memref<144xf32, #tpu.memory_space<smem>>
    %171 = vector.broadcast %170 : f32 to vector<16x34xf32>
    %172 = arith.mulf %171, %169 : vector<16x34xf32>
    %173 = arith.addf %155, %172 : vector<16x34xf32>
    %c25 = arith.constant 25 : index
    %174 = memref.load %arg2[%c25] : memref<144xf32, #tpu.memory_space<smem>>
    %175 = vector.broadcast %174 : f32 to vector<16x34xf32>
    %176 = arith.mulf %175, %169 : vector<16x34xf32>
    %177 = arith.addf %159, %176 : vector<16x34xf32>
    %c26 = arith.constant 26 : index
    %178 = memref.load %arg2[%c26] : memref<144xf32, #tpu.memory_space<smem>>
    %179 = vector.broadcast %178 : f32 to vector<16x34xf32>
    %180 = arith.mulf %179, %169 : vector<16x34xf32>
    %181 = arith.addf %163, %180 : vector<16x34xf32>
    %c27 = arith.constant 27 : index
    %182 = memref.load %arg2[%c27] : memref<144xf32, #tpu.memory_space<smem>>
    %183 = vector.broadcast %182 : f32 to vector<16x34xf32>
    %184 = arith.mulf %183, %169 : vector<16x34xf32>
    %185 = arith.addf %167, %184 : vector<16x34xf32>
    %c3_82 = arith.constant 3 : index
    %c0_83 = arith.constant 0 : index
    %c1_84 = arith.constant 1 : index
    %186 = vector.load %arg9[%c3_82, %c0_83, %c1_84] : memref<4x18x36xf32, #tpu.memory_space<vmem>>, vector<1x16x34xf32>
    %187 = vector.shape_cast %186 : vector<1x16x34xf32> to vector<16x34xf32>
    %c28 = arith.constant 28 : index
    %188 = memref.load %arg2[%c28] : memref<144xf32, #tpu.memory_space<smem>>
    %189 = vector.broadcast %188 : f32 to vector<16x34xf32>
    %190 = arith.mulf %189, %187 : vector<16x34xf32>
    %191 = arith.addf %173, %190 : vector<16x34xf32>
    %c29 = arith.constant 29 : index
    %192 = memref.load %arg2[%c29] : memref<144xf32, #tpu.memory_space<smem>>
    %193 = vector.broadcast %192 : f32 to vector<16x34xf32>
    %194 = arith.mulf %193, %187 : vector<16x34xf32>
    %195 = arith.addf %177, %194 : vector<16x34xf32>
    %c30 = arith.constant 30 : index
    %196 = memref.load %arg2[%c30] : memref<144xf32, #tpu.memory_space<smem>>
    %197 = vector.broadcast %196 : f32 to vector<16x34xf32>
    %198 = arith.mulf %197, %187 : vector<16x34xf32>
    %199 = arith.addf %181, %198 : vector<16x34xf32>
    %c31 = arith.constant 31 : index
    %200 = memref.load %arg2[%c31] : memref<144xf32, #tpu.memory_space<smem>>
    %201 = vector.broadcast %200 : f32 to vector<16x34xf32>
    %202 = arith.mulf %201, %187 : vector<16x34xf32>
    %203 = arith.addf %185, %202 : vector<16x34xf32>
    %c0_85 = arith.constant 0 : index
    %c0_86 = arith.constant 0 : index
    %c2_87 = arith.constant 2 : index
    %204 = vector.load %arg9[%c0_85, %c0_86, %c2_87] : memref<4x18x36xf32, #tpu.memory_space<vmem>>, vector<1x16x34xf32>
    %205 = vector.shape_cast %204 : vector<1x16x34xf32> to vector<16x34xf32>
    %c32 = arith.constant 32 : index
    %206 = memref.load %arg2[%c32] : memref<144xf32, #tpu.memory_space<smem>>
    %207 = vector.broadcast %206 : f32 to vector<16x34xf32>
    %208 = arith.mulf %207, %205 : vector<16x34xf32>
    %209 = arith.addf %191, %208 : vector<16x34xf32>
    %c33 = arith.constant 33 : index
    %210 = memref.load %arg2[%c33] : memref<144xf32, #tpu.memory_space<smem>>
    %211 = vector.broadcast %210 : f32 to vector<16x34xf32>
    %212 = arith.mulf %211, %205 : vector<16x34xf32>
    %213 = arith.addf %195, %212 : vector<16x34xf32>
    %c34 = arith.constant 34 : index
    %214 = memref.load %arg2[%c34] : memref<144xf32, #tpu.memory_space<smem>>
    %215 = vector.broadcast %214 : f32 to vector<16x34xf32>
    %216 = arith.mulf %215, %205 : vector<16x34xf32>
    %217 = arith.addf %199, %216 : vector<16x34xf32>
    %c35 = arith.constant 35 : index
    %218 = memref.load %arg2[%c35] : memref<144xf32, #tpu.memory_space<smem>>
    %219 = vector.broadcast %218 : f32 to vector<16x34xf32>
    %220 = arith.mulf %219, %205 : vector<16x34xf32>
    %221 = arith.addf %203, %220 : vector<16x34xf32>
    %c1_88 = arith.constant 1 : index
    %c0_89 = arith.constant 0 : index
    %c2_90 = arith.constant 2 : index
    %222 = vector.load %arg9[%c1_88, %c0_89, %c2_90] : memref<4x18x36xf32, #tpu.memory_space<vmem>>, vector<1x16x34xf32>
    %223 = vector.shape_cast %222 : vector<1x16x34xf32> to vector<16x34xf32>
    %c36 = arith.constant 36 : index
    %224 = memref.load %arg2[%c36] : memref<144xf32, #tpu.memory_space<smem>>
    %225 = vector.broadcast %224 : f32 to vector<16x34xf32>
    %226 = arith.mulf %225, %223 : vector<16x34xf32>
    %227 = arith.addf %209, %226 : vector<16x34xf32>
    %c37 = arith.constant 37 : index
    %228 = memref.load %arg2[%c37] : memref<144xf32, #tpu.memory_space<smem>>
    %229 = vector.broadcast %228 : f32 to vector<16x34xf32>
    %230 = arith.mulf %229, %223 : vector<16x34xf32>
    %231 = arith.addf %213, %230 : vector<16x34xf32>
    %c38 = arith.constant 38 : index
    %232 = memref.load %arg2[%c38] : memref<144xf32, #tpu.memory_space<smem>>
    %233 = vector.broadcast %232 : f32 to vector<16x34xf32>
    %234 = arith.mulf %233, %223 : vector<16x34xf32>
    %235 = arith.addf %217, %234 : vector<16x34xf32>
    %c39 = arith.constant 39 : index
    %236 = memref.load %arg2[%c39] : memref<144xf32, #tpu.memory_space<smem>>
    %237 = vector.broadcast %236 : f32 to vector<16x34xf32>
    %238 = arith.mulf %237, %223 : vector<16x34xf32>
    %239 = arith.addf %221, %238 : vector<16x34xf32>
    %c2_91 = arith.constant 2 : index
    %c0_92 = arith.constant 0 : index
    %c2_93 = arith.constant 2 : index
    %240 = vector.load %arg9[%c2_91, %c0_92, %c2_93] : memref<4x18x36xf32, #tpu.memory_space<vmem>>, vector<1x16x34xf32>
    %241 = vector.shape_cast %240 : vector<1x16x34xf32> to vector<16x34xf32>
    %c40 = arith.constant 40 : index
    %242 = memref.load %arg2[%c40] : memref<144xf32, #tpu.memory_space<smem>>
    %243 = vector.broadcast %242 : f32 to vector<16x34xf32>
    %244 = arith.mulf %243, %241 : vector<16x34xf32>
    %245 = arith.addf %227, %244 : vector<16x34xf32>
    %c41 = arith.constant 41 : index
    %246 = memref.load %arg2[%c41] : memref<144xf32, #tpu.memory_space<smem>>
    %247 = vector.broadcast %246 : f32 to vector<16x34xf32>
    %248 = arith.mulf %247, %241 : vector<16x34xf32>
    %249 = arith.addf %231, %248 : vector<16x34xf32>
    %c42 = arith.constant 42 : index
    %250 = memref.load %arg2[%c42] : memref<144xf32, #tpu.memory_space<smem>>
    %251 = vector.broadcast %250 : f32 to vector<16x34xf32>
    %252 = arith.mulf %251, %241 : vector<16x34xf32>
    %253 = arith.addf %235, %252 : vector<16x34xf32>
    %c43 = arith.constant 43 : index
    %254 = memref.load %arg2[%c43] : memref<144xf32, #tpu.memory_space<smem>>
    %255 = vector.broadcast %254 : f32 to vector<16x34xf32>
    %256 = arith.mulf %255, %241 : vector<16x34xf32>
    %257 = arith.addf %239, %256 : vector<16x34xf32>
    %c3_94 = arith.constant 3 : index
    %c0_95 = arith.constant 0 : index
    %c2_96 = arith.constant 2 : index
    %258 = vector.load %arg9[%c3_94, %c0_95, %c2_96] : memref<4x18x36xf32, #tpu.memory_space<vmem>>, vector<1x16x34xf32>
    %259 = vector.shape_cast %258 : vector<1x16x34xf32> to vector<16x34xf32>
    %c44 = arith.constant 44 : index
    %260 = memref.load %arg2[%c44] : memref<144xf32, #tpu.memory_space<smem>>
    %261 = vector.broadcast %260 : f32 to vector<16x34xf32>
    %262 = arith.mulf %261, %259 : vector<16x34xf32>
    %263 = arith.addf %245, %262 : vector<16x34xf32>
    %c45 = arith.constant 45 : index
    %264 = memref.load %arg2[%c45] : memref<144xf32, #tpu.memory_space<smem>>
    %265 = vector.broadcast %264 : f32 to vector<16x34xf32>
    %266 = arith.mulf %265, %259 : vector<16x34xf32>
    %267 = arith.addf %249, %266 : vector<16x34xf32>
    %c46 = arith.constant 46 : index
    %268 = memref.load %arg2[%c46] : memref<144xf32, #tpu.memory_space<smem>>
    %269 = vector.broadcast %268 : f32 to vector<16x34xf32>
    %270 = arith.mulf %269, %259 : vector<16x34xf32>
    %271 = arith.addf %253, %270 : vector<16x34xf32>
    %c47 = arith.constant 47 : index
    %272 = memref.load %arg2[%c47] : memref<144xf32, #tpu.memory_space<smem>>
    %273 = vector.broadcast %272 : f32 to vector<16x34xf32>
    %274 = arith.mulf %273, %259 : vector<16x34xf32>
    %275 = arith.addf %257, %274 : vector<16x34xf32>
    %c0_97 = arith.constant 0 : index
    %c1_98 = arith.constant 1 : index
    %c0_99 = arith.constant 0 : index
    %276 = vector.load %arg9[%c0_97, %c1_98, %c0_99] : memref<4x18x36xf32, #tpu.memory_space<vmem>>, vector<1x16x34xf32>
    %277 = vector.shape_cast %276 : vector<1x16x34xf32> to vector<16x34xf32>
    %c48 = arith.constant 48 : index
    %278 = memref.load %arg2[%c48] : memref<144xf32, #tpu.memory_space<smem>>
    %279 = vector.broadcast %278 : f32 to vector<16x34xf32>
    %280 = arith.mulf %279, %277 : vector<16x34xf32>
    %281 = arith.addf %263, %280 : vector<16x34xf32>
    %c49 = arith.constant 49 : index
    %282 = memref.load %arg2[%c49] : memref<144xf32, #tpu.memory_space<smem>>
    %283 = vector.broadcast %282 : f32 to vector<16x34xf32>
    %284 = arith.mulf %283, %277 : vector<16x34xf32>
    %285 = arith.addf %267, %284 : vector<16x34xf32>
    %c50 = arith.constant 50 : index
    %286 = memref.load %arg2[%c50] : memref<144xf32, #tpu.memory_space<smem>>
    %287 = vector.broadcast %286 : f32 to vector<16x34xf32>
    %288 = arith.mulf %287, %277 : vector<16x34xf32>
    %289 = arith.addf %271, %288 : vector<16x34xf32>
    %c51 = arith.constant 51 : index
    %290 = memref.load %arg2[%c51] : memref<144xf32, #tpu.memory_space<smem>>
    %291 = vector.broadcast %290 : f32 to vector<16x34xf32>
    %292 = arith.mulf %291, %277 : vector<16x34xf32>
    %293 = arith.addf %275, %292 : vector<16x34xf32>
    %c1_100 = arith.constant 1 : index
    %c1_101 = arith.constant 1 : index
    %c0_102 = arith.constant 0 : index
    %294 = vector.load %arg9[%c1_100, %c1_101, %c0_102] : memref<4x18x36xf32, #tpu.memory_space<vmem>>, vector<1x16x34xf32>
    %295 = vector.shape_cast %294 : vector<1x16x34xf32> to vector<16x34xf32>
    %c52 = arith.constant 52 : index
    %296 = memref.load %arg2[%c52] : memref<144xf32, #tpu.memory_space<smem>>
    %297 = vector.broadcast %296 : f32 to vector<16x34xf32>
    %298 = arith.mulf %297, %295 : vector<16x34xf32>
    %299 = arith.addf %281, %298 : vector<16x34xf32>
    %c53 = arith.constant 53 : index
    %300 = memref.load %arg2[%c53] : memref<144xf32, #tpu.memory_space<smem>>
    %301 = vector.broadcast %300 : f32 to vector<16x34xf32>
    %302 = arith.mulf %301, %295 : vector<16x34xf32>
    %303 = arith.addf %285, %302 : vector<16x34xf32>
    %c54 = arith.constant 54 : index
    %304 = memref.load %arg2[%c54] : memref<144xf32, #tpu.memory_space<smem>>
    %305 = vector.broadcast %304 : f32 to vector<16x34xf32>
    %306 = arith.mulf %305, %295 : vector<16x34xf32>
    %307 = arith.addf %289, %306 : vector<16x34xf32>
    %c55 = arith.constant 55 : index
    %308 = memref.load %arg2[%c55] : memref<144xf32, #tpu.memory_space<smem>>
    %309 = vector.broadcast %308 : f32 to vector<16x34xf32>
    %310 = arith.mulf %309, %295 : vector<16x34xf32>
    %311 = arith.addf %293, %310 : vector<16x34xf32>
    %c2_103 = arith.constant 2 : index
    %c1_104 = arith.constant 1 : index
    %c0_105 = arith.constant 0 : index
    %312 = vector.load %arg9[%c2_103, %c1_104, %c0_105] : memref<4x18x36xf32, #tpu.memory_space<vmem>>, vector<1x16x34xf32>
    %313 = vector.shape_cast %312 : vector<1x16x34xf32> to vector<16x34xf32>
    %c56 = arith.constant 56 : index
    %314 = memref.load %arg2[%c56] : memref<144xf32, #tpu.memory_space<smem>>
    %315 = vector.broadcast %314 : f32 to vector<16x34xf32>
    %316 = arith.mulf %315, %313 : vector<16x34xf32>
    %317 = arith.addf %299, %316 : vector<16x34xf32>
    %c57 = arith.constant 57 : index
    %318 = memref.load %arg2[%c57] : memref<144xf32, #tpu.memory_space<smem>>
    %319 = vector.broadcast %318 : f32 to vector<16x34xf32>
    %320 = arith.mulf %319, %313 : vector<16x34xf32>
    %321 = arith.addf %303, %320 : vector<16x34xf32>
    %c58 = arith.constant 58 : index
    %322 = memref.load %arg2[%c58] : memref<144xf32, #tpu.memory_space<smem>>
    %323 = vector.broadcast %322 : f32 to vector<16x34xf32>
    %324 = arith.mulf %323, %313 : vector<16x34xf32>
    %325 = arith.addf %307, %324 : vector<16x34xf32>
    %c59 = arith.constant 59 : index
    %326 = memref.load %arg2[%c59] : memref<144xf32, #tpu.memory_space<smem>>
    %327 = vector.broadcast %326 : f32 to vector<16x34xf32>
    %328 = arith.mulf %327, %313 : vector<16x34xf32>
    %329 = arith.addf %311, %328 : vector<16x34xf32>
    %c3_106 = arith.constant 3 : index
    %c1_107 = arith.constant 1 : index
    %c0_108 = arith.constant 0 : index
    %330 = vector.load %arg9[%c3_106, %c1_107, %c0_108] : memref<4x18x36xf32, #tpu.memory_space<vmem>>, vector<1x16x34xf32>
    %331 = vector.shape_cast %330 : vector<1x16x34xf32> to vector<16x34xf32>
    %c60 = arith.constant 60 : index
    %332 = memref.load %arg2[%c60] : memref<144xf32, #tpu.memory_space<smem>>
    %333 = vector.broadcast %332 : f32 to vector<16x34xf32>
    %334 = arith.mulf %333, %331 : vector<16x34xf32>
    %335 = arith.addf %317, %334 : vector<16x34xf32>
    %c61 = arith.constant 61 : index
    %336 = memref.load %arg2[%c61] : memref<144xf32, #tpu.memory_space<smem>>
    %337 = vector.broadcast %336 : f32 to vector<16x34xf32>
    %338 = arith.mulf %337, %331 : vector<16x34xf32>
    %339 = arith.addf %321, %338 : vector<16x34xf32>
    %c62 = arith.constant 62 : index
    %340 = memref.load %arg2[%c62] : memref<144xf32, #tpu.memory_space<smem>>
    %341 = vector.broadcast %340 : f32 to vector<16x34xf32>
    %342 = arith.mulf %341, %331 : vector<16x34xf32>
    %343 = arith.addf %325, %342 : vector<16x34xf32>
    %c63 = arith.constant 63 : index
    %344 = memref.load %arg2[%c63] : memref<144xf32, #tpu.memory_space<smem>>
    %345 = vector.broadcast %344 : f32 to vector<16x34xf32>
    %346 = arith.mulf %345, %331 : vector<16x34xf32>
    %347 = arith.addf %329, %346 : vector<16x34xf32>
    %c0_109 = arith.constant 0 : index
    %c1_110 = arith.constant 1 : index
    %c1_111 = arith.constant 1 : index
    %348 = vector.load %arg9[%c0_109, %c1_110, %c1_111] : memref<4x18x36xf32, #tpu.memory_space<vmem>>, vector<1x16x34xf32>
    %349 = vector.shape_cast %348 : vector<1x16x34xf32> to vector<16x34xf32>
    %c64 = arith.constant 64 : index
    %350 = memref.load %arg2[%c64] : memref<144xf32, #tpu.memory_space<smem>>
    %351 = vector.broadcast %350 : f32 to vector<16x34xf32>
    %352 = arith.mulf %351, %349 : vector<16x34xf32>
    %353 = arith.addf %335, %352 : vector<16x34xf32>
    %c65 = arith.constant 65 : index
    %354 = memref.load %arg2[%c65] : memref<144xf32, #tpu.memory_space<smem>>
    %355 = vector.broadcast %354 : f32 to vector<16x34xf32>
    %356 = arith.mulf %355, %349 : vector<16x34xf32>
    %357 = arith.addf %339, %356 : vector<16x34xf32>
    %c66 = arith.constant 66 : index
    %358 = memref.load %arg2[%c66] : memref<144xf32, #tpu.memory_space<smem>>
    %359 = vector.broadcast %358 : f32 to vector<16x34xf32>
    %360 = arith.mulf %359, %349 : vector<16x34xf32>
    %361 = arith.addf %343, %360 : vector<16x34xf32>
    %c67 = arith.constant 67 : index
    %362 = memref.load %arg2[%c67] : memref<144xf32, #tpu.memory_space<smem>>
    %363 = vector.broadcast %362 : f32 to vector<16x34xf32>
    %364 = arith.mulf %363, %349 : vector<16x34xf32>
    %365 = arith.addf %347, %364 : vector<16x34xf32>
    %c1_112 = arith.constant 1 : index
    %c1_113 = arith.constant 1 : index
    %c1_114 = arith.constant 1 : index
    %366 = vector.load %arg9[%c1_112, %c1_113, %c1_114] : memref<4x18x36xf32, #tpu.memory_space<vmem>>, vector<1x16x34xf32>
    %367 = vector.shape_cast %366 : vector<1x16x34xf32> to vector<16x34xf32>
    %c68 = arith.constant 68 : index
    %368 = memref.load %arg2[%c68] : memref<144xf32, #tpu.memory_space<smem>>
    %369 = vector.broadcast %368 : f32 to vector<16x34xf32>
    %370 = arith.mulf %369, %367 : vector<16x34xf32>
    %371 = arith.addf %353, %370 : vector<16x34xf32>
    %c69 = arith.constant 69 : index
    %372 = memref.load %arg2[%c69] : memref<144xf32, #tpu.memory_space<smem>>
    %373 = vector.broadcast %372 : f32 to vector<16x34xf32>
    %374 = arith.mulf %373, %367 : vector<16x34xf32>
    %375 = arith.addf %357, %374 : vector<16x34xf32>
    %c70 = arith.constant 70 : index
    %376 = memref.load %arg2[%c70] : memref<144xf32, #tpu.memory_space<smem>>
    %377 = vector.broadcast %376 : f32 to vector<16x34xf32>
    %378 = arith.mulf %377, %367 : vector<16x34xf32>
    %379 = arith.addf %361, %378 : vector<16x34xf32>
    %c71 = arith.constant 71 : index
    %380 = memref.load %arg2[%c71] : memref<144xf32, #tpu.memory_space<smem>>
    %381 = vector.broadcast %380 : f32 to vector<16x34xf32>
    %382 = arith.mulf %381, %367 : vector<16x34xf32>
    %383 = arith.addf %365, %382 : vector<16x34xf32>
    %c2_115 = arith.constant 2 : index
    %c1_116 = arith.constant 1 : index
    %c1_117 = arith.constant 1 : index
    %384 = vector.load %arg9[%c2_115, %c1_116, %c1_117] : memref<4x18x36xf32, #tpu.memory_space<vmem>>, vector<1x16x34xf32>
    %385 = vector.shape_cast %384 : vector<1x16x34xf32> to vector<16x34xf32>
    %c72 = arith.constant 72 : index
    %386 = memref.load %arg2[%c72] : memref<144xf32, #tpu.memory_space<smem>>
    %387 = vector.broadcast %386 : f32 to vector<16x34xf32>
    %388 = arith.mulf %387, %385 : vector<16x34xf32>
    %389 = arith.addf %371, %388 : vector<16x34xf32>
    %c73 = arith.constant 73 : index
    %390 = memref.load %arg2[%c73] : memref<144xf32, #tpu.memory_space<smem>>
    %391 = vector.broadcast %390 : f32 to vector<16x34xf32>
    %392 = arith.mulf %391, %385 : vector<16x34xf32>
    %393 = arith.addf %375, %392 : vector<16x34xf32>
    %c74 = arith.constant 74 : index
    %394 = memref.load %arg2[%c74] : memref<144xf32, #tpu.memory_space<smem>>
    %395 = vector.broadcast %394 : f32 to vector<16x34xf32>
    %396 = arith.mulf %395, %385 : vector<16x34xf32>
    %397 = arith.addf %379, %396 : vector<16x34xf32>
    %c75 = arith.constant 75 : index
    %398 = memref.load %arg2[%c75] : memref<144xf32, #tpu.memory_space<smem>>
    %399 = vector.broadcast %398 : f32 to vector<16x34xf32>
    %400 = arith.mulf %399, %385 : vector<16x34xf32>
    %401 = arith.addf %383, %400 : vector<16x34xf32>
    %c3_118 = arith.constant 3 : index
    %c1_119 = arith.constant 1 : index
    %c1_120 = arith.constant 1 : index
    %402 = vector.load %arg9[%c3_118, %c1_119, %c1_120] : memref<4x18x36xf32, #tpu.memory_space<vmem>>, vector<1x16x34xf32>
    %403 = vector.shape_cast %402 : vector<1x16x34xf32> to vector<16x34xf32>
    %c76 = arith.constant 76 : index
    %404 = memref.load %arg2[%c76] : memref<144xf32, #tpu.memory_space<smem>>
    %405 = vector.broadcast %404 : f32 to vector<16x34xf32>
    %406 = arith.mulf %405, %403 : vector<16x34xf32>
    %407 = arith.addf %389, %406 : vector<16x34xf32>
    %c77 = arith.constant 77 : index
    %408 = memref.load %arg2[%c77] : memref<144xf32, #tpu.memory_space<smem>>
    %409 = vector.broadcast %408 : f32 to vector<16x34xf32>
    %410 = arith.mulf %409, %403 : vector<16x34xf32>
    %411 = arith.addf %393, %410 : vector<16x34xf32>
    %c78 = arith.constant 78 : index
    %412 = memref.load %arg2[%c78] : memref<144xf32, #tpu.memory_space<smem>>
    %413 = vector.broadcast %412 : f32 to vector<16x34xf32>
    %414 = arith.mulf %413, %403 : vector<16x34xf32>
    %415 = arith.addf %397, %414 : vector<16x34xf32>
    %c79 = arith.constant 79 : index
    %416 = memref.load %arg2[%c79] : memref<144xf32, #tpu.memory_space<smem>>
    %417 = vector.broadcast %416 : f32 to vector<16x34xf32>
    %418 = arith.mulf %417, %403 : vector<16x34xf32>
    %419 = arith.addf %401, %418 : vector<16x34xf32>
    %c0_121 = arith.constant 0 : index
    %c1_122 = arith.constant 1 : index
    %c2_123 = arith.constant 2 : index
    %420 = vector.load %arg9[%c0_121, %c1_122, %c2_123] : memref<4x18x36xf32, #tpu.memory_space<vmem>>, vector<1x16x34xf32>
    %421 = vector.shape_cast %420 : vector<1x16x34xf32> to vector<16x34xf32>
    %c80 = arith.constant 80 : index
    %422 = memref.load %arg2[%c80] : memref<144xf32, #tpu.memory_space<smem>>
    %423 = vector.broadcast %422 : f32 to vector<16x34xf32>
    %424 = arith.mulf %423, %421 : vector<16x34xf32>
    %425 = arith.addf %407, %424 : vector<16x34xf32>
    %c81 = arith.constant 81 : index
    %426 = memref.load %arg2[%c81] : memref<144xf32, #tpu.memory_space<smem>>
    %427 = vector.broadcast %426 : f32 to vector<16x34xf32>
    %428 = arith.mulf %427, %421 : vector<16x34xf32>
    %429 = arith.addf %411, %428 : vector<16x34xf32>
    %c82 = arith.constant 82 : index
    %430 = memref.load %arg2[%c82] : memref<144xf32, #tpu.memory_space<smem>>
    %431 = vector.broadcast %430 : f32 to vector<16x34xf32>
    %432 = arith.mulf %431, %421 : vector<16x34xf32>
    %433 = arith.addf %415, %432 : vector<16x34xf32>
    %c83 = arith.constant 83 : index
    %434 = memref.load %arg2[%c83] : memref<144xf32, #tpu.memory_space<smem>>
    %435 = vector.broadcast %434 : f32 to vector<16x34xf32>
    %436 = arith.mulf %435, %421 : vector<16x34xf32>
    %437 = arith.addf %419, %436 : vector<16x34xf32>
    %c1_124 = arith.constant 1 : index
    %c1_125 = arith.constant 1 : index
    %c2_126 = arith.constant 2 : index
    %438 = vector.load %arg9[%c1_124, %c1_125, %c2_126] : memref<4x18x36xf32, #tpu.memory_space<vmem>>, vector<1x16x34xf32>
    %439 = vector.shape_cast %438 : vector<1x16x34xf32> to vector<16x34xf32>
    %c84 = arith.constant 84 : index
    %440 = memref.load %arg2[%c84] : memref<144xf32, #tpu.memory_space<smem>>
    %441 = vector.broadcast %440 : f32 to vector<16x34xf32>
    %442 = arith.mulf %441, %439 : vector<16x34xf32>
    %443 = arith.addf %425, %442 : vector<16x34xf32>
    %c85 = arith.constant 85 : index
    %444 = memref.load %arg2[%c85] : memref<144xf32, #tpu.memory_space<smem>>
    %445 = vector.broadcast %444 : f32 to vector<16x34xf32>
    %446 = arith.mulf %445, %439 : vector<16x34xf32>
    %447 = arith.addf %429, %446 : vector<16x34xf32>
    %c86 = arith.constant 86 : index
    %448 = memref.load %arg2[%c86] : memref<144xf32, #tpu.memory_space<smem>>
    %449 = vector.broadcast %448 : f32 to vector<16x34xf32>
    %450 = arith.mulf %449, %439 : vector<16x34xf32>
    %451 = arith.addf %433, %450 : vector<16x34xf32>
    %c87 = arith.constant 87 : index
    %452 = memref.load %arg2[%c87] : memref<144xf32, #tpu.memory_space<smem>>
    %453 = vector.broadcast %452 : f32 to vector<16x34xf32>
    %454 = arith.mulf %453, %439 : vector<16x34xf32>
    %455 = arith.addf %437, %454 : vector<16x34xf32>
    %c2_127 = arith.constant 2 : index
    %c1_128 = arith.constant 1 : index
    %c2_129 = arith.constant 2 : index
    %456 = vector.load %arg9[%c2_127, %c1_128, %c2_129] : memref<4x18x36xf32, #tpu.memory_space<vmem>>, vector<1x16x34xf32>
    %457 = vector.shape_cast %456 : vector<1x16x34xf32> to vector<16x34xf32>
    %c88 = arith.constant 88 : index
    %458 = memref.load %arg2[%c88] : memref<144xf32, #tpu.memory_space<smem>>
    %459 = vector.broadcast %458 : f32 to vector<16x34xf32>
    %460 = arith.mulf %459, %457 : vector<16x34xf32>
    %461 = arith.addf %443, %460 : vector<16x34xf32>
    %c89 = arith.constant 89 : index
    %462 = memref.load %arg2[%c89] : memref<144xf32, #tpu.memory_space<smem>>
    %463 = vector.broadcast %462 : f32 to vector<16x34xf32>
    %464 = arith.mulf %463, %457 : vector<16x34xf32>
    %465 = arith.addf %447, %464 : vector<16x34xf32>
    %c90 = arith.constant 90 : index
    %466 = memref.load %arg2[%c90] : memref<144xf32, #tpu.memory_space<smem>>
    %467 = vector.broadcast %466 : f32 to vector<16x34xf32>
    %468 = arith.mulf %467, %457 : vector<16x34xf32>
    %469 = arith.addf %451, %468 : vector<16x34xf32>
    %c91 = arith.constant 91 : index
    %470 = memref.load %arg2[%c91] : memref<144xf32, #tpu.memory_space<smem>>
    %471 = vector.broadcast %470 : f32 to vector<16x34xf32>
    %472 = arith.mulf %471, %457 : vector<16x34xf32>
    %473 = arith.addf %455, %472 : vector<16x34xf32>
    %c3_130 = arith.constant 3 : index
    %c1_131 = arith.constant 1 : index
    %c2_132 = arith.constant 2 : index
    %474 = vector.load %arg9[%c3_130, %c1_131, %c2_132] : memref<4x18x36xf32, #tpu.memory_space<vmem>>, vector<1x16x34xf32>
    %475 = vector.shape_cast %474 : vector<1x16x34xf32> to vector<16x34xf32>
    %c92 = arith.constant 92 : index
    %476 = memref.load %arg2[%c92] : memref<144xf32, #tpu.memory_space<smem>>
    %477 = vector.broadcast %476 : f32 to vector<16x34xf32>
    %478 = arith.mulf %477, %475 : vector<16x34xf32>
    %479 = arith.addf %461, %478 : vector<16x34xf32>
    %c93 = arith.constant 93 : index
    %480 = memref.load %arg2[%c93] : memref<144xf32, #tpu.memory_space<smem>>
    %481 = vector.broadcast %480 : f32 to vector<16x34xf32>
    %482 = arith.mulf %481, %475 : vector<16x34xf32>
    %483 = arith.addf %465, %482 : vector<16x34xf32>
    %c94 = arith.constant 94 : index
    %484 = memref.load %arg2[%c94] : memref<144xf32, #tpu.memory_space<smem>>
    %485 = vector.broadcast %484 : f32 to vector<16x34xf32>
    %486 = arith.mulf %485, %475 : vector<16x34xf32>
    %487 = arith.addf %469, %486 : vector<16x34xf32>
    %c95 = arith.constant 95 : index
    %488 = memref.load %arg2[%c95] : memref<144xf32, #tpu.memory_space<smem>>
    %489 = vector.broadcast %488 : f32 to vector<16x34xf32>
    %490 = arith.mulf %489, %475 : vector<16x34xf32>
    %491 = arith.addf %473, %490 : vector<16x34xf32>
    %c0_133 = arith.constant 0 : index
    %c2_134 = arith.constant 2 : index
    %c0_135 = arith.constant 0 : index
    %492 = vector.load %arg9[%c0_133, %c2_134, %c0_135] : memref<4x18x36xf32, #tpu.memory_space<vmem>>, vector<1x16x34xf32>
    %493 = vector.shape_cast %492 : vector<1x16x34xf32> to vector<16x34xf32>
    %c96 = arith.constant 96 : index
    %494 = memref.load %arg2[%c96] : memref<144xf32, #tpu.memory_space<smem>>
    %495 = vector.broadcast %494 : f32 to vector<16x34xf32>
    %496 = arith.mulf %495, %493 : vector<16x34xf32>
    %497 = arith.addf %479, %496 : vector<16x34xf32>
    %c97 = arith.constant 97 : index
    %498 = memref.load %arg2[%c97] : memref<144xf32, #tpu.memory_space<smem>>
    %499 = vector.broadcast %498 : f32 to vector<16x34xf32>
    %500 = arith.mulf %499, %493 : vector<16x34xf32>
    %501 = arith.addf %483, %500 : vector<16x34xf32>
    %c98 = arith.constant 98 : index
    %502 = memref.load %arg2[%c98] : memref<144xf32, #tpu.memory_space<smem>>
    %503 = vector.broadcast %502 : f32 to vector<16x34xf32>
    %504 = arith.mulf %503, %493 : vector<16x34xf32>
    %505 = arith.addf %487, %504 : vector<16x34xf32>
    %c99 = arith.constant 99 : index
    %506 = memref.load %arg2[%c99] : memref<144xf32, #tpu.memory_space<smem>>
    %507 = vector.broadcast %506 : f32 to vector<16x34xf32>
    %508 = arith.mulf %507, %493 : vector<16x34xf32>
    %509 = arith.addf %491, %508 : vector<16x34xf32>
    %c1_136 = arith.constant 1 : index
    %c2_137 = arith.constant 2 : index
    %c0_138 = arith.constant 0 : index
    %510 = vector.load %arg9[%c1_136, %c2_137, %c0_138] : memref<4x18x36xf32, #tpu.memory_space<vmem>>, vector<1x16x34xf32>
    %511 = vector.shape_cast %510 : vector<1x16x34xf32> to vector<16x34xf32>
    %c100 = arith.constant 100 : index
    %512 = memref.load %arg2[%c100] : memref<144xf32, #tpu.memory_space<smem>>
    %513 = vector.broadcast %512 : f32 to vector<16x34xf32>
    %514 = arith.mulf %513, %511 : vector<16x34xf32>
    %515 = arith.addf %497, %514 : vector<16x34xf32>
    %c101 = arith.constant 101 : index
    %516 = memref.load %arg2[%c101] : memref<144xf32, #tpu.memory_space<smem>>
    %517 = vector.broadcast %516 : f32 to vector<16x34xf32>
    %518 = arith.mulf %517, %511 : vector<16x34xf32>
    %519 = arith.addf %501, %518 : vector<16x34xf32>
    %c102 = arith.constant 102 : index
    %520 = memref.load %arg2[%c102] : memref<144xf32, #tpu.memory_space<smem>>
    %521 = vector.broadcast %520 : f32 to vector<16x34xf32>
    %522 = arith.mulf %521, %511 : vector<16x34xf32>
    %523 = arith.addf %505, %522 : vector<16x34xf32>
    %c103 = arith.constant 103 : index
    %524 = memref.load %arg2[%c103] : memref<144xf32, #tpu.memory_space<smem>>
    %525 = vector.broadcast %524 : f32 to vector<16x34xf32>
    %526 = arith.mulf %525, %511 : vector<16x34xf32>
    %527 = arith.addf %509, %526 : vector<16x34xf32>
    %c2_139 = arith.constant 2 : index
    %c2_140 = arith.constant 2 : index
    %c0_141 = arith.constant 0 : index
    %528 = vector.load %arg9[%c2_139, %c2_140, %c0_141] : memref<4x18x36xf32, #tpu.memory_space<vmem>>, vector<1x16x34xf32>
    %529 = vector.shape_cast %528 : vector<1x16x34xf32> to vector<16x34xf32>
    %c104 = arith.constant 104 : index
    %530 = memref.load %arg2[%c104] : memref<144xf32, #tpu.memory_space<smem>>
    %531 = vector.broadcast %530 : f32 to vector<16x34xf32>
    %532 = arith.mulf %531, %529 : vector<16x34xf32>
    %533 = arith.addf %515, %532 : vector<16x34xf32>
    %c105 = arith.constant 105 : index
    %534 = memref.load %arg2[%c105] : memref<144xf32, #tpu.memory_space<smem>>
    %535 = vector.broadcast %534 : f32 to vector<16x34xf32>
    %536 = arith.mulf %535, %529 : vector<16x34xf32>
    %537 = arith.addf %519, %536 : vector<16x34xf32>
    %c106 = arith.constant 106 : index
    %538 = memref.load %arg2[%c106] : memref<144xf32, #tpu.memory_space<smem>>
    %539 = vector.broadcast %538 : f32 to vector<16x34xf32>
    %540 = arith.mulf %539, %529 : vector<16x34xf32>
    %541 = arith.addf %523, %540 : vector<16x34xf32>
    %c107 = arith.constant 107 : index
    %542 = memref.load %arg2[%c107] : memref<144xf32, #tpu.memory_space<smem>>
    %543 = vector.broadcast %542 : f32 to vector<16x34xf32>
    %544 = arith.mulf %543, %529 : vector<16x34xf32>
    %545 = arith.addf %527, %544 : vector<16x34xf32>
    %c3_142 = arith.constant 3 : index
    %c2_143 = arith.constant 2 : index
    %c0_144 = arith.constant 0 : index
    %546 = vector.load %arg9[%c3_142, %c2_143, %c0_144] : memref<4x18x36xf32, #tpu.memory_space<vmem>>, vector<1x16x34xf32>
    %547 = vector.shape_cast %546 : vector<1x16x34xf32> to vector<16x34xf32>
    %c108 = arith.constant 108 : index
    %548 = memref.load %arg2[%c108] : memref<144xf32, #tpu.memory_space<smem>>
    %549 = vector.broadcast %548 : f32 to vector<16x34xf32>
    %550 = arith.mulf %549, %547 : vector<16x34xf32>
    %551 = arith.addf %533, %550 : vector<16x34xf32>
    %c109 = arith.constant 109 : index
    %552 = memref.load %arg2[%c109] : memref<144xf32, #tpu.memory_space<smem>>
    %553 = vector.broadcast %552 : f32 to vector<16x34xf32>
    %554 = arith.mulf %553, %547 : vector<16x34xf32>
    %555 = arith.addf %537, %554 : vector<16x34xf32>
    %c110 = arith.constant 110 : index
    %556 = memref.load %arg2[%c110] : memref<144xf32, #tpu.memory_space<smem>>
    %557 = vector.broadcast %556 : f32 to vector<16x34xf32>
    %558 = arith.mulf %557, %547 : vector<16x34xf32>
    %559 = arith.addf %541, %558 : vector<16x34xf32>
    %c111 = arith.constant 111 : index
    %560 = memref.load %arg2[%c111] : memref<144xf32, #tpu.memory_space<smem>>
    %561 = vector.broadcast %560 : f32 to vector<16x34xf32>
    %562 = arith.mulf %561, %547 : vector<16x34xf32>
    %563 = arith.addf %545, %562 : vector<16x34xf32>
    %c0_145 = arith.constant 0 : index
    %c2_146 = arith.constant 2 : index
    %c1_147 = arith.constant 1 : index
    %564 = vector.load %arg9[%c0_145, %c2_146, %c1_147] : memref<4x18x36xf32, #tpu.memory_space<vmem>>, vector<1x16x34xf32>
    %565 = vector.shape_cast %564 : vector<1x16x34xf32> to vector<16x34xf32>
    %c112 = arith.constant 112 : index
    %566 = memref.load %arg2[%c112] : memref<144xf32, #tpu.memory_space<smem>>
    %567 = vector.broadcast %566 : f32 to vector<16x34xf32>
    %568 = arith.mulf %567, %565 : vector<16x34xf32>
    %569 = arith.addf %551, %568 : vector<16x34xf32>
    %c113 = arith.constant 113 : index
    %570 = memref.load %arg2[%c113] : memref<144xf32, #tpu.memory_space<smem>>
    %571 = vector.broadcast %570 : f32 to vector<16x34xf32>
    %572 = arith.mulf %571, %565 : vector<16x34xf32>
    %573 = arith.addf %555, %572 : vector<16x34xf32>
    %c114 = arith.constant 114 : index
    %574 = memref.load %arg2[%c114] : memref<144xf32, #tpu.memory_space<smem>>
    %575 = vector.broadcast %574 : f32 to vector<16x34xf32>
    %576 = arith.mulf %575, %565 : vector<16x34xf32>
    %577 = arith.addf %559, %576 : vector<16x34xf32>
    %c115 = arith.constant 115 : index
    %578 = memref.load %arg2[%c115] : memref<144xf32, #tpu.memory_space<smem>>
    %579 = vector.broadcast %578 : f32 to vector<16x34xf32>
    %580 = arith.mulf %579, %565 : vector<16x34xf32>
    %581 = arith.addf %563, %580 : vector<16x34xf32>
    %c1_148 = arith.constant 1 : index
    %c2_149 = arith.constant 2 : index
    %c1_150 = arith.constant 1 : index
    %582 = vector.load %arg9[%c1_148, %c2_149, %c1_150] : memref<4x18x36xf32, #tpu.memory_space<vmem>>, vector<1x16x34xf32>
    %583 = vector.shape_cast %582 : vector<1x16x34xf32> to vector<16x34xf32>
    %c116 = arith.constant 116 : index
    %584 = memref.load %arg2[%c116] : memref<144xf32, #tpu.memory_space<smem>>
    %585 = vector.broadcast %584 : f32 to vector<16x34xf32>
    %586 = arith.mulf %585, %583 : vector<16x34xf32>
    %587 = arith.addf %569, %586 : vector<16x34xf32>
    %c117 = arith.constant 117 : index
    %588 = memref.load %arg2[%c117] : memref<144xf32, #tpu.memory_space<smem>>
    %589 = vector.broadcast %588 : f32 to vector<16x34xf32>
    %590 = arith.mulf %589, %583 : vector<16x34xf32>
    %591 = arith.addf %573, %590 : vector<16x34xf32>
    %c118 = arith.constant 118 : index
    %592 = memref.load %arg2[%c118] : memref<144xf32, #tpu.memory_space<smem>>
    %593 = vector.broadcast %592 : f32 to vector<16x34xf32>
    %594 = arith.mulf %593, %583 : vector<16x34xf32>
    %595 = arith.addf %577, %594 : vector<16x34xf32>
    %c119 = arith.constant 119 : index
    %596 = memref.load %arg2[%c119] : memref<144xf32, #tpu.memory_space<smem>>
    %597 = vector.broadcast %596 : f32 to vector<16x34xf32>
    %598 = arith.mulf %597, %583 : vector<16x34xf32>
    %599 = arith.addf %581, %598 : vector<16x34xf32>
    %c2_151 = arith.constant 2 : index
    %c2_152 = arith.constant 2 : index
    %c1_153 = arith.constant 1 : index
    %600 = vector.load %arg9[%c2_151, %c2_152, %c1_153] : memref<4x18x36xf32, #tpu.memory_space<vmem>>, vector<1x16x34xf32>
    %601 = vector.shape_cast %600 : vector<1x16x34xf32> to vector<16x34xf32>
    %c120 = arith.constant 120 : index
    %602 = memref.load %arg2[%c120] : memref<144xf32, #tpu.memory_space<smem>>
    %603 = vector.broadcast %602 : f32 to vector<16x34xf32>
    %604 = arith.mulf %603, %601 : vector<16x34xf32>
    %605 = arith.addf %587, %604 : vector<16x34xf32>
    %c121 = arith.constant 121 : index
    %606 = memref.load %arg2[%c121] : memref<144xf32, #tpu.memory_space<smem>>
    %607 = vector.broadcast %606 : f32 to vector<16x34xf32>
    %608 = arith.mulf %607, %601 : vector<16x34xf32>
    %609 = arith.addf %591, %608 : vector<16x34xf32>
    %c122 = arith.constant 122 : index
    %610 = memref.load %arg2[%c122] : memref<144xf32, #tpu.memory_space<smem>>
    %611 = vector.broadcast %610 : f32 to vector<16x34xf32>
    %612 = arith.mulf %611, %601 : vector<16x34xf32>
    %613 = arith.addf %595, %612 : vector<16x34xf32>
    %c123 = arith.constant 123 : index
    %614 = memref.load %arg2[%c123] : memref<144xf32, #tpu.memory_space<smem>>
    %615 = vector.broadcast %614 : f32 to vector<16x34xf32>
    %616 = arith.mulf %615, %601 : vector<16x34xf32>
    %617 = arith.addf %599, %616 : vector<16x34xf32>
    %c3_154 = arith.constant 3 : index
    %c2_155 = arith.constant 2 : index
    %c1_156 = arith.constant 1 : index
    %618 = vector.load %arg9[%c3_154, %c2_155, %c1_156] : memref<4x18x36xf32, #tpu.memory_space<vmem>>, vector<1x16x34xf32>
    %619 = vector.shape_cast %618 : vector<1x16x34xf32> to vector<16x34xf32>
    %c124 = arith.constant 124 : index
    %620 = memref.load %arg2[%c124] : memref<144xf32, #tpu.memory_space<smem>>
    %621 = vector.broadcast %620 : f32 to vector<16x34xf32>
    %622 = arith.mulf %621, %619 : vector<16x34xf32>
    %623 = arith.addf %605, %622 : vector<16x34xf32>
    %c125 = arith.constant 125 : index
    %624 = memref.load %arg2[%c125] : memref<144xf32, #tpu.memory_space<smem>>
    %625 = vector.broadcast %624 : f32 to vector<16x34xf32>
    %626 = arith.mulf %625, %619 : vector<16x34xf32>
    %627 = arith.addf %609, %626 : vector<16x34xf32>
    %c126 = arith.constant 126 : index
    %628 = memref.load %arg2[%c126] : memref<144xf32, #tpu.memory_space<smem>>
    %629 = vector.broadcast %628 : f32 to vector<16x34xf32>
    %630 = arith.mulf %629, %619 : vector<16x34xf32>
    %631 = arith.addf %613, %630 : vector<16x34xf32>
    %c127 = arith.constant 127 : index
    %632 = memref.load %arg2[%c127] : memref<144xf32, #tpu.memory_space<smem>>
    %633 = vector.broadcast %632 : f32 to vector<16x34xf32>
    %634 = arith.mulf %633, %619 : vector<16x34xf32>
    %635 = arith.addf %617, %634 : vector<16x34xf32>
    %c0_157 = arith.constant 0 : index
    %c2_158 = arith.constant 2 : index
    %c2_159 = arith.constant 2 : index
    %636 = vector.load %arg9[%c0_157, %c2_158, %c2_159] : memref<4x18x36xf32, #tpu.memory_space<vmem>>, vector<1x16x34xf32>
    %637 = vector.shape_cast %636 : vector<1x16x34xf32> to vector<16x34xf32>
    %c128 = arith.constant 128 : index
    %638 = memref.load %arg2[%c128] : memref<144xf32, #tpu.memory_space<smem>>
    %639 = vector.broadcast %638 : f32 to vector<16x34xf32>
    %640 = arith.mulf %639, %637 : vector<16x34xf32>
    %641 = arith.addf %623, %640 : vector<16x34xf32>
    %c129 = arith.constant 129 : index
    %642 = memref.load %arg2[%c129] : memref<144xf32, #tpu.memory_space<smem>>
    %643 = vector.broadcast %642 : f32 to vector<16x34xf32>
    %644 = arith.mulf %643, %637 : vector<16x34xf32>
    %645 = arith.addf %627, %644 : vector<16x34xf32>
    %c130 = arith.constant 130 : index
    %646 = memref.load %arg2[%c130] : memref<144xf32, #tpu.memory_space<smem>>
    %647 = vector.broadcast %646 : f32 to vector<16x34xf32>
    %648 = arith.mulf %647, %637 : vector<16x34xf32>
    %649 = arith.addf %631, %648 : vector<16x34xf32>
    %c131 = arith.constant 131 : index
    %650 = memref.load %arg2[%c131] : memref<144xf32, #tpu.memory_space<smem>>
    %651 = vector.broadcast %650 : f32 to vector<16x34xf32>
    %652 = arith.mulf %651, %637 : vector<16x34xf32>
    %653 = arith.addf %635, %652 : vector<16x34xf32>
    %c1_160 = arith.constant 1 : index
    %c2_161 = arith.constant 2 : index
    %c2_162 = arith.constant 2 : index
    %654 = vector.load %arg9[%c1_160, %c2_161, %c2_162] : memref<4x18x36xf32, #tpu.memory_space<vmem>>, vector<1x16x34xf32>
    %655 = vector.shape_cast %654 : vector<1x16x34xf32> to vector<16x34xf32>
    %c132 = arith.constant 132 : index
    %656 = memref.load %arg2[%c132] : memref<144xf32, #tpu.memory_space<smem>>
    %657 = vector.broadcast %656 : f32 to vector<16x34xf32>
    %658 = arith.mulf %657, %655 : vector<16x34xf32>
    %659 = arith.addf %641, %658 : vector<16x34xf32>
    %c133 = arith.constant 133 : index
    %660 = memref.load %arg2[%c133] : memref<144xf32, #tpu.memory_space<smem>>
    %661 = vector.broadcast %660 : f32 to vector<16x34xf32>
    %662 = arith.mulf %661, %655 : vector<16x34xf32>
    %663 = arith.addf %645, %662 : vector<16x34xf32>
    %c134 = arith.constant 134 : index
    %664 = memref.load %arg2[%c134] : memref<144xf32, #tpu.memory_space<smem>>
    %665 = vector.broadcast %664 : f32 to vector<16x34xf32>
    %666 = arith.mulf %665, %655 : vector<16x34xf32>
    %667 = arith.addf %649, %666 : vector<16x34xf32>
    %c135 = arith.constant 135 : index
    %668 = memref.load %arg2[%c135] : memref<144xf32, #tpu.memory_space<smem>>
    %669 = vector.broadcast %668 : f32 to vector<16x34xf32>
    %670 = arith.mulf %669, %655 : vector<16x34xf32>
    %671 = arith.addf %653, %670 : vector<16x34xf32>
    %c2_163 = arith.constant 2 : index
    %c2_164 = arith.constant 2 : index
    %c2_165 = arith.constant 2 : index
    %672 = vector.load %arg9[%c2_163, %c2_164, %c2_165] : memref<4x18x36xf32, #tpu.memory_space<vmem>>, vector<1x16x34xf32>
    %673 = vector.shape_cast %672 : vector<1x16x34xf32> to vector<16x34xf32>
    %c136 = arith.constant 136 : index
    %674 = memref.load %arg2[%c136] : memref<144xf32, #tpu.memory_space<smem>>
    %675 = vector.broadcast %674 : f32 to vector<16x34xf32>
    %676 = arith.mulf %675, %673 : vector<16x34xf32>
    %677 = arith.addf %659, %676 : vector<16x34xf32>
    %c137 = arith.constant 137 : index
    %678 = memref.load %arg2[%c137] : memref<144xf32, #tpu.memory_space<smem>>
    %679 = vector.broadcast %678 : f32 to vector<16x34xf32>
    %680 = arith.mulf %679, %673 : vector<16x34xf32>
    %681 = arith.addf %663, %680 : vector<16x34xf32>
    %c138 = arith.constant 138 : index
    %682 = memref.load %arg2[%c138] : memref<144xf32, #tpu.memory_space<smem>>
    %683 = vector.broadcast %682 : f32 to vector<16x34xf32>
    %684 = arith.mulf %683, %673 : vector<16x34xf32>
    %685 = arith.addf %667, %684 : vector<16x34xf32>
    %c139 = arith.constant 139 : index
    %686 = memref.load %arg2[%c139] : memref<144xf32, #tpu.memory_space<smem>>
    %687 = vector.broadcast %686 : f32 to vector<16x34xf32>
    %688 = arith.mulf %687, %673 : vector<16x34xf32>
    %689 = arith.addf %671, %688 : vector<16x34xf32>
    %c3_166 = arith.constant 3 : index
    %c2_167 = arith.constant 2 : index
    %c2_168 = arith.constant 2 : index
    %690 = vector.load %arg9[%c3_166, %c2_167, %c2_168] : memref<4x18x36xf32, #tpu.memory_space<vmem>>, vector<1x16x34xf32>
    %691 = vector.shape_cast %690 : vector<1x16x34xf32> to vector<16x34xf32>
    %c140 = arith.constant 140 : index
    %692 = memref.load %arg2[%c140] : memref<144xf32, #tpu.memory_space<smem>>
    %693 = vector.broadcast %692 : f32 to vector<16x34xf32>
    %694 = arith.mulf %693, %691 : vector<16x34xf32>
    %695 = arith.addf %677, %694 : vector<16x34xf32>
    %c141 = arith.constant 141 : index
    %696 = memref.load %arg2[%c141] : memref<144xf32, #tpu.memory_space<smem>>
    %697 = vector.broadcast %696 : f32 to vector<16x34xf32>
    %698 = arith.mulf %697, %691 : vector<16x34xf32>
    %699 = arith.addf %681, %698 : vector<16x34xf32>
    %c142 = arith.constant 142 : index
    %700 = memref.load %arg2[%c142] : memref<144xf32, #tpu.memory_space<smem>>
    %701 = vector.broadcast %700 : f32 to vector<16x34xf32>
    %702 = arith.mulf %701, %691 : vector<16x34xf32>
    %703 = arith.addf %685, %702 : vector<16x34xf32>
    %c143 = arith.constant 143 : index
    %704 = memref.load %arg2[%c143] : memref<144xf32, #tpu.memory_space<smem>>
    %705 = vector.broadcast %704 : f32 to vector<16x34xf32>
    %706 = arith.mulf %705, %691 : vector<16x34xf32>
    %707 = arith.addf %689, %706 : vector<16x34xf32>
    %cst = arith.constant 0.000000e+00 : f32
    %708 = vector.broadcast %cst : f32 to vector<16x34xf32>
    %709 = arith.cmpf ogt, %695, %708 : vector<16x34xf32>
    %c0_169 = arith.constant 0 : index
    %710 = memref.load %arg4[%c0_169] : memref<4xf32, #tpu.memory_space<smem>>
    %711 = vector.broadcast %710 : f32 to vector<16x34xf32>
    %712 = arith.mulf %711, %695 : vector<16x34xf32>
    %713 = arith.select %709, %695, %712 : vector<16x34xi1>, vector<16x34xf32>
    %cst_170 = arith.constant 0.000000e+00 : f32
    %714 = vector.broadcast %cst_170 : f32 to vector<16x34xf32>
    %715 = arith.select %51, %713, %714 : vector<16x34xi1>, vector<16x34xf32>
    %c0_171 = arith.constant 0 : index
    %c1_172 = arith.constant 1 : index
    %c1_173 = arith.constant 1 : index
    %716 = vector.load %arg10[%c0_171, %c1_172, %c1_173] : memref<4x18x36xf32, #tpu.memory_space<vmem>>, vector<1x16x34xf32>
    %717 = vector.shape_cast %716 : vector<1x16x34xf32> to vector<16x34xf32>
    %718 = vector.shape_cast %715 : vector<16x34xf32> to vector<1x16x34xf32>
    tpu.vector_store %arg10[%c0_171, %c1_172, %c1_173], %718 {strides = array<i32>} : memref<4x18x36xf32, #tpu.memory_space<vmem>>, vector<1x16x34xf32>,
    %cst_174 = arith.constant 0.000000e+00 : f32
    %719 = vector.broadcast %cst_174 : f32 to vector<16x34xf32>
    %720 = arith.cmpf ogt, %699, %719 : vector<16x34xf32>
    %c1_175 = arith.constant 1 : index
    %721 = memref.load %arg4[%c1_175] : memref<4xf32, #tpu.memory_space<smem>>
    %722 = vector.broadcast %721 : f32 to vector<16x34xf32>
    %723 = arith.mulf %722, %699 : vector<16x34xf32>
    %724 = arith.select %720, %699, %723 : vector<16x34xi1>, vector<16x34xf32>
    %cst_176 = arith.constant 0.000000e+00 : f32
    %725 = vector.broadcast %cst_176 : f32 to vector<16x34xf32>
    %726 = arith.select %51, %724, %725 : vector<16x34xi1>, vector<16x34xf32>
    %c1_177 = arith.constant 1 : index
    %c1_178 = arith.constant 1 : index
    %c1_179 = arith.constant 1 : index
    %727 = vector.load %arg10[%c1_177, %c1_178, %c1_179] : memref<4x18x36xf32, #tpu.memory_space<vmem>>, vector<1x16x34xf32>
    %728 = vector.shape_cast %727 : vector<1x16x34xf32> to vector<16x34xf32>
    %729 = vector.shape_cast %726 : vector<16x34xf32> to vector<1x16x34xf32>
    tpu.vector_store %arg10[%c1_177, %c1_178, %c1_179], %729 {strides = array<i32>} : memref<4x18x36xf32, #tpu.memory_space<vmem>>, vector<1x16x34xf32>,
    %cst_180 = arith.constant 0.000000e+00 : f32
    %730 = vector.broadcast %cst_180 : f32 to vector<16x34xf32>
    %731 = arith.cmpf ogt, %703, %730 : vector<16x34xf32>
    %c2_181 = arith.constant 2 : index
    %732 = memref.load %arg4[%c2_181] : memref<4xf32, #tpu.memory_space<smem>>
    %733 = vector.broadcast %732 : f32 to vector<16x34xf32>
    %734 = arith.mulf %733, %703 : vector<16x34xf32>
    %735 = arith.select %731, %703, %734 : vector<16x34xi1>, vector<16x34xf32>
    %cst_182 = arith.constant 0.000000e+00 : f32
    %736 = vector.broadcast %cst_182 : f32 to vector<16x34xf32>
    %737 = arith.select %51, %735, %736 : vector<16x34xi1>, vector<16x34xf32>
    %c2_183 = arith.constant 2 : index
    %c1_184 = arith.constant 1 : index
    %c1_185 = arith.constant 1 : index
    %738 = vector.load %arg10[%c2_183, %c1_184, %c1_185] : memref<4x18x36xf32, #tpu.memory_space<vmem>>, vector<1x16x34xf32>
    %739 = vector.shape_cast %738 : vector<1x16x34xf32> to vector<16x34xf32>
    %740 = vector.shape_cast %737 : vector<16x34xf32> to vector<1x16x34xf32>
    tpu.vector_store %arg10[%c2_183, %c1_184, %c1_185], %740 {strides = array<i32>} : memref<4x18x36xf32, #tpu.memory_space<vmem>>, vector<1x16x34xf32>,
    %cst_186 = arith.constant 0.000000e+00 : f32
    %741 = vector.broadcast %cst_186 : f32 to vector<16x34xf32>
    %742 = arith.cmpf ogt, %707, %741 : vector<16x34xf32>
    %c3_187 = arith.constant 3 : index
    %743 = memref.load %arg4[%c3_187] : memref<4xf32, #tpu.memory_space<smem>>
    %744 = vector.broadcast %743 : f32 to vector<16x34xf32>
    %745 = arith.mulf %744, %707 : vector<16x34xf32>
    %746 = arith.select %742, %707, %745 : vector<16x34xi1>, vector<16x34xf32>
    %cst_188 = arith.constant 0.000000e+00 : f32
    %747 = vector.broadcast %cst_188 : f32 to vector<16x34xf32>
    %748 = arith.select %51, %746, %747 : vector<16x34xi1>, vector<16x34xf32>
    %c3_189 = arith.constant 3 : index
    %c1_190 = arith.constant 1 : index
    %c1_191 = arith.constant 1 : index
    %749 = vector.load %arg10[%c3_189, %c1_190, %c1_191] : memref<4x18x36xf32, #tpu.memory_space<vmem>>, vector<1x16x34xf32>
    %750 = vector.shape_cast %749 : vector<1x16x34xf32> to vector<16x34xf32>
    %751 = vector.shape_cast %748 : vector<16x34xf32> to vector<1x16x34xf32>
    tpu.vector_store %arg10[%c3_189, %c1_190, %c1_191], %751 {strides = array<i32>} : memref<4x18x36xf32, #tpu.memory_space<vmem>>, vector<1x16x34xf32>,
    %c0_192 = arith.constant 0 : index
    %752 = memref.load %arg6[%c0_192] : memref<2xf32, #tpu.memory_space<smem>>
    %753 = vector.broadcast %752 : f32 to vector<16x34xf32>
    %c1_193 = arith.constant 1 : index
    %754 = memref.load %arg6[%c1_193] : memref<2xf32, #tpu.memory_space<smem>>
    %755 = vector.broadcast %754 : f32 to vector<16x34xf32>
    %c0_194 = arith.constant 0 : index
    %c0_195 = arith.constant 0 : index
    %c0_196 = arith.constant 0 : index
    %756 = vector.load %arg10[%c0_194, %c0_195, %c0_196] : memref<4x18x36xf32, #tpu.memory_space<vmem>>, vector<1x16x34xf32>
    %757 = vector.shape_cast %756 : vector<1x16x34xf32> to vector<16x34xf32>
    %c0_197 = arith.constant 0 : index
    %758 = memref.load %arg5[%c0_197] : memref<72xf32, #tpu.memory_space<smem>>
    %759 = vector.broadcast %758 : f32 to vector<16x34xf32>
    %760 = arith.mulf %759, %757 : vector<16x34xf32>
    %761 = arith.addf %753, %760 : vector<16x34xf32>
    %c1_198 = arith.constant 1 : index
    %762 = memref.load %arg5[%c1_198] : memref<72xf32, #tpu.memory_space<smem>>
    %763 = vector.broadcast %762 : f32 to vector<16x34xf32>
    %764 = arith.mulf %763, %757 : vector<16x34xf32>
    %765 = arith.addf %755, %764 : vector<16x34xf32>
    %c1_199 = arith.constant 1 : index
    %c0_200 = arith.constant 0 : index
    %c0_201 = arith.constant 0 : index
    %766 = vector.load %arg10[%c1_199, %c0_200, %c0_201] : memref<4x18x36xf32, #tpu.memory_space<vmem>>, vector<1x16x34xf32>
    %767 = vector.shape_cast %766 : vector<1x16x34xf32> to vector<16x34xf32>
    %c2_202 = arith.constant 2 : index
    %768 = memref.load %arg5[%c2_202] : memref<72xf32, #tpu.memory_space<smem>>
    %769 = vector.broadcast %768 : f32 to vector<16x34xf32>
    %770 = arith.mulf %769, %767 : vector<16x34xf32>
    %771 = arith.addf %761, %770 : vector<16x34xf32>
    %c3_203 = arith.constant 3 : index
    %772 = memref.load %arg5[%c3_203] : memref<72xf32, #tpu.memory_space<smem>>
    %773 = vector.broadcast %772 : f32 to vector<16x34xf32>
    %774 = arith.mulf %773, %767 : vector<16x34xf32>
    %775 = arith.addf %765, %774 : vector<16x34xf32>
    %c2_204 = arith.constant 2 : index
    %c0_205 = arith.constant 0 : index
    %c0_206 = arith.constant 0 : index
    %776 = vector.load %arg10[%c2_204, %c0_205, %c0_206] : memref<4x18x36xf32, #tpu.memory_space<vmem>>, vector<1x16x34xf32>
    %777 = vector.shape_cast %776 : vector<1x16x34xf32> to vector<16x34xf32>
    %c4_207 = arith.constant 4 : index
    %778 = memref.load %arg5[%c4_207] : memref<72xf32, #tpu.memory_space<smem>>
    %779 = vector.broadcast %778 : f32 to vector<16x34xf32>
    %780 = arith.mulf %779, %777 : vector<16x34xf32>
    %781 = arith.addf %771, %780 : vector<16x34xf32>
    %c5_208 = arith.constant 5 : index
    %782 = memref.load %arg5[%c5_208] : memref<72xf32, #tpu.memory_space<smem>>
    %783 = vector.broadcast %782 : f32 to vector<16x34xf32>
    %784 = arith.mulf %783, %777 : vector<16x34xf32>
    %785 = arith.addf %775, %784 : vector<16x34xf32>
    %c3_209 = arith.constant 3 : index
    %c0_210 = arith.constant 0 : index
    %c0_211 = arith.constant 0 : index
    %786 = vector.load %arg10[%c3_209, %c0_210, %c0_211] : memref<4x18x36xf32, #tpu.memory_space<vmem>>, vector<1x16x34xf32>
    %787 = vector.shape_cast %786 : vector<1x16x34xf32> to vector<16x34xf32>
    %c6_212 = arith.constant 6 : index
    %788 = memref.load %arg5[%c6_212] : memref<72xf32, #tpu.memory_space<smem>>
    %789 = vector.broadcast %788 : f32 to vector<16x34xf32>
    %790 = arith.mulf %789, %787 : vector<16x34xf32>
    %791 = arith.addf %781, %790 : vector<16x34xf32>
    %c7_213 = arith.constant 7 : index
    %792 = memref.load %arg5[%c7_213] : memref<72xf32, #tpu.memory_space<smem>>
    %793 = vector.broadcast %792 : f32 to vector<16x34xf32>
    %794 = arith.mulf %793, %787 : vector<16x34xf32>
    %795 = arith.addf %785, %794 : vector<16x34xf32>
    %c0_214 = arith.constant 0 : index
    %c0_215 = arith.constant 0 : index
    %c1_216 = arith.constant 1 : index
    %796 = vector.load %arg10[%c0_214, %c0_215, %c1_216] : memref<4x18x36xf32, #tpu.memory_space<vmem>>, vector<1x16x34xf32>
    %797 = vector.shape_cast %796 : vector<1x16x34xf32> to vector<16x34xf32>
    %c8_217 = arith.constant 8 : index
    %798 = memref.load %arg5[%c8_217] : memref<72xf32, #tpu.memory_space<smem>>
    %799 = vector.broadcast %798 : f32 to vector<16x34xf32>
    %800 = arith.mulf %799, %797 : vector<16x34xf32>
    %801 = arith.addf %791, %800 : vector<16x34xf32>
    %c9_218 = arith.constant 9 : index
    %802 = memref.load %arg5[%c9_218] : memref<72xf32, #tpu.memory_space<smem>>
    %803 = vector.broadcast %802 : f32 to vector<16x34xf32>
    %804 = arith.mulf %803, %797 : vector<16x34xf32>
    %805 = arith.addf %795, %804 : vector<16x34xf32>
    %c1_219 = arith.constant 1 : index
    %c0_220 = arith.constant 0 : index
    %c1_221 = arith.constant 1 : index
    %806 = vector.load %arg10[%c1_219, %c0_220, %c1_221] : memref<4x18x36xf32, #tpu.memory_space<vmem>>, vector<1x16x34xf32>
    %807 = vector.shape_cast %806 : vector<1x16x34xf32> to vector<16x34xf32>
    %c10_222 = arith.constant 10 : index
    %808 = memref.load %arg5[%c10_222] : memref<72xf32, #tpu.memory_space<smem>>
    %809 = vector.broadcast %808 : f32 to vector<16x34xf32>
    %810 = arith.mulf %809, %807 : vector<16x34xf32>
    %811 = arith.addf %801, %810 : vector<16x34xf32>
    %c11_223 = arith.constant 11 : index
    %812 = memref.load %arg5[%c11_223] : memref<72xf32, #tpu.memory_space<smem>>
    %813 = vector.broadcast %812 : f32 to vector<16x34xf32>
    %814 = arith.mulf %813, %807 : vector<16x34xf32>
    %815 = arith.addf %805, %814 : vector<16x34xf32>
    %c2_224 = arith.constant 2 : index
    %c0_225 = arith.constant 0 : index
    %c1_226 = arith.constant 1 : index
    %816 = vector.load %arg10[%c2_224, %c0_225, %c1_226] : memref<4x18x36xf32, #tpu.memory_space<vmem>>, vector<1x16x34xf32>
    %817 = vector.shape_cast %816 : vector<1x16x34xf32> to vector<16x34xf32>
    %c12_227 = arith.constant 12 : index
    %818 = memref.load %arg5[%c12_227] : memref<72xf32, #tpu.memory_space<smem>>
    %819 = vector.broadcast %818 : f32 to vector<16x34xf32>
    %820 = arith.mulf %819, %817 : vector<16x34xf32>
    %821 = arith.addf %811, %820 : vector<16x34xf32>
    %c13_228 = arith.constant 13 : index
    %822 = memref.load %arg5[%c13_228] : memref<72xf32, #tpu.memory_space<smem>>
    %823 = vector.broadcast %822 : f32 to vector<16x34xf32>
    %824 = arith.mulf %823, %817 : vector<16x34xf32>
    %825 = arith.addf %815, %824 : vector<16x34xf32>
    %c3_229 = arith.constant 3 : index
    %c0_230 = arith.constant 0 : index
    %c1_231 = arith.constant 1 : index
    %826 = vector.load %arg10[%c3_229, %c0_230, %c1_231] : memref<4x18x36xf32, #tpu.memory_space<vmem>>, vector<1x16x34xf32>
    %827 = vector.shape_cast %826 : vector<1x16x34xf32> to vector<16x34xf32>
    %c14_232 = arith.constant 14 : index
    %828 = memref.load %arg5[%c14_232] : memref<72xf32, #tpu.memory_space<smem>>
    %829 = vector.broadcast %828 : f32 to vector<16x34xf32>
    %830 = arith.mulf %829, %827 : vector<16x34xf32>
    %831 = arith.addf %821, %830 : vector<16x34xf32>
    %c15_233 = arith.constant 15 : index
    %832 = memref.load %arg5[%c15_233] : memref<72xf32, #tpu.memory_space<smem>>
    %833 = vector.broadcast %832 : f32 to vector<16x34xf32>
    %834 = arith.mulf %833, %827 : vector<16x34xf32>
    %835 = arith.addf %825, %834 : vector<16x34xf32>
    %c0_234 = arith.constant 0 : index
    %c0_235 = arith.constant 0 : index
    %c2_236 = arith.constant 2 : index
    %836 = vector.load %arg10[%c0_234, %c0_235, %c2_236] : memref<4x18x36xf32, #tpu.memory_space<vmem>>, vector<1x16x34xf32>
    %837 = vector.shape_cast %836 : vector<1x16x34xf32> to vector<16x34xf32>
    %c16_237 = arith.constant 16 : index
    %838 = memref.load %arg5[%c16_237] : memref<72xf32, #tpu.memory_space<smem>>
    %839 = vector.broadcast %838 : f32 to vector<16x34xf32>
    %840 = arith.mulf %839, %837 : vector<16x34xf32>
    %841 = arith.addf %831, %840 : vector<16x34xf32>
    %c17_238 = arith.constant 17 : index
    %842 = memref.load %arg5[%c17_238] : memref<72xf32, #tpu.memory_space<smem>>
    %843 = vector.broadcast %842 : f32 to vector<16x34xf32>
    %844 = arith.mulf %843, %837 : vector<16x34xf32>
    %845 = arith.addf %835, %844 : vector<16x34xf32>
    %c1_239 = arith.constant 1 : index
    %c0_240 = arith.constant 0 : index
    %c2_241 = arith.constant 2 : index
    %846 = vector.load %arg10[%c1_239, %c0_240, %c2_241] : memref<4x18x36xf32, #tpu.memory_space<vmem>>, vector<1x16x34xf32>
    %847 = vector.shape_cast %846 : vector<1x16x34xf32> to vector<16x34xf32>
    %c18_242 = arith.constant 18 : index
    %848 = memref.load %arg5[%c18_242] : memref<72xf32, #tpu.memory_space<smem>>
    %849 = vector.broadcast %848 : f32 to vector<16x34xf32>
    %850 = arith.mulf %849, %847 : vector<16x34xf32>
    %851 = arith.addf %841, %850 : vector<16x34xf32>
    %c19_243 = arith.constant 19 : index
    %852 = memref.load %arg5[%c19_243] : memref<72xf32, #tpu.memory_space<smem>>
    %853 = vector.broadcast %852 : f32 to vector<16x34xf32>
    %854 = arith.mulf %853, %847 : vector<16x34xf32>
    %855 = arith.addf %845, %854 : vector<16x34xf32>
    %c2_244 = arith.constant 2 : index
    %c0_245 = arith.constant 0 : index
    %c2_246 = arith.constant 2 : index
    %856 = vector.load %arg10[%c2_244, %c0_245, %c2_246] : memref<4x18x36xf32, #tpu.memory_space<vmem>>, vector<1x16x34xf32>
    %857 = vector.shape_cast %856 : vector<1x16x34xf32> to vector<16x34xf32>
    %c20_247 = arith.constant 20 : index
    %858 = memref.load %arg5[%c20_247] : memref<72xf32, #tpu.memory_space<smem>>
    %859 = vector.broadcast %858 : f32 to vector<16x34xf32>
    %860 = arith.mulf %859, %857 : vector<16x34xf32>
    %861 = arith.addf %851, %860 : vector<16x34xf32>
    %c21_248 = arith.constant 21 : index
    %862 = memref.load %arg5[%c21_248] : memref<72xf32, #tpu.memory_space<smem>>
    %863 = vector.broadcast %862 : f32 to vector<16x34xf32>
    %864 = arith.mulf %863, %857 : vector<16x34xf32>
    %865 = arith.addf %855, %864 : vector<16x34xf32>
    %c3_249 = arith.constant 3 : index
    %c0_250 = arith.constant 0 : index
    %c2_251 = arith.constant 2 : index
    %866 = vector.load %arg10[%c3_249, %c0_250, %c2_251] : memref<4x18x36xf32, #tpu.memory_space<vmem>>, vector<1x16x34xf32>
    %867 = vector.shape_cast %866 : vector<1x16x34xf32> to vector<16x34xf32>
    %c22_252 = arith.constant 22 : index
    %868 = memref.load %arg5[%c22_252] : memref<72xf32, #tpu.memory_space<smem>>
    %869 = vector.broadcast %868 : f32 to vector<16x34xf32>
    %870 = arith.mulf %869, %867 : vector<16x34xf32>
    %871 = arith.addf %861, %870 : vector<16x34xf32>
    %c23_253 = arith.constant 23 : index
    %872 = memref.load %arg5[%c23_253] : memref<72xf32, #tpu.memory_space<smem>>
    %873 = vector.broadcast %872 : f32 to vector<16x34xf32>
    %874 = arith.mulf %873, %867 : vector<16x34xf32>
    %875 = arith.addf %865, %874 : vector<16x34xf32>
    %c0_254 = arith.constant 0 : index
    %c1_255 = arith.constant 1 : index
    %c0_256 = arith.constant 0 : index
    %876 = vector.load %arg10[%c0_254, %c1_255, %c0_256] : memref<4x18x36xf32, #tpu.memory_space<vmem>>, vector<1x16x34xf32>
    %877 = vector.shape_cast %876 : vector<1x16x34xf32> to vector<16x34xf32>
    %c24_257 = arith.constant 24 : index
    %878 = memref.load %arg5[%c24_257] : memref<72xf32, #tpu.memory_space<smem>>
    %879 = vector.broadcast %878 : f32 to vector<16x34xf32>
    %880 = arith.mulf %879, %877 : vector<16x34xf32>
    %881 = arith.addf %871, %880 : vector<16x34xf32>
    %c25_258 = arith.constant 25 : index
    %882 = memref.load %arg5[%c25_258] : memref<72xf32, #tpu.memory_space<smem>>
    %883 = vector.broadcast %882 : f32 to vector<16x34xf32>
    %884 = arith.mulf %883, %877 : vector<16x34xf32>
    %885 = arith.addf %875, %884 : vector<16x34xf32>
    %c1_259 = arith.constant 1 : index
    %c1_260 = arith.constant 1 : index
    %c0_261 = arith.constant 0 : index
    %886 = vector.load %arg10[%c1_259, %c1_260, %c0_261] : memref<4x18x36xf32, #tpu.memory_space<vmem>>, vector<1x16x34xf32>
    %887 = vector.shape_cast %886 : vector<1x16x34xf32> to vector<16x34xf32>
    %c26_262 = arith.constant 26 : index
    %888 = memref.load %arg5[%c26_262] : memref<72xf32, #tpu.memory_space<smem>>
    %889 = vector.broadcast %888 : f32 to vector<16x34xf32>
    %890 = arith.mulf %889, %887 : vector<16x34xf32>
    %891 = arith.addf %881, %890 : vector<16x34xf32>
    %c27_263 = arith.constant 27 : index
    %892 = memref.load %arg5[%c27_263] : memref<72xf32, #tpu.memory_space<smem>>
    %893 = vector.broadcast %892 : f32 to vector<16x34xf32>
    %894 = arith.mulf %893, %887 : vector<16x34xf32>
    %895 = arith.addf %885, %894 : vector<16x34xf32>
    %c2_264 = arith.constant 2 : index
    %c1_265 = arith.constant 1 : index
    %c0_266 = arith.constant 0 : index
    %896 = vector.load %arg10[%c2_264, %c1_265, %c0_266] : memref<4x18x36xf32, #tpu.memory_space<vmem>>, vector<1x16x34xf32>
    %897 = vector.shape_cast %896 : vector<1x16x34xf32> to vector<16x34xf32>
    %c28_267 = arith.constant 28 : index
    %898 = memref.load %arg5[%c28_267] : memref<72xf32, #tpu.memory_space<smem>>
    %899 = vector.broadcast %898 : f32 to vector<16x34xf32>
    %900 = arith.mulf %899, %897 : vector<16x34xf32>
    %901 = arith.addf %891, %900 : vector<16x34xf32>
    %c29_268 = arith.constant 29 : index
    %902 = memref.load %arg5[%c29_268] : memref<72xf32, #tpu.memory_space<smem>>
    %903 = vector.broadcast %902 : f32 to vector<16x34xf32>
    %904 = arith.mulf %903, %897 : vector<16x34xf32>
    %905 = arith.addf %895, %904 : vector<16x34xf32>
    %c3_269 = arith.constant 3 : index
    %c1_270 = arith.constant 1 : index
    %c0_271 = arith.constant 0 : index
    %906 = vector.load %arg10[%c3_269, %c1_270, %c0_271] : memref<4x18x36xf32, #tpu.memory_space<vmem>>, vector<1x16x34xf32>
    %907 = vector.shape_cast %906 : vector<1x16x34xf32> to vector<16x34xf32>
    %c30_272 = arith.constant 30 : index
    %908 = memref.load %arg5[%c30_272] : memref<72xf32, #tpu.memory_space<smem>>
    %909 = vector.broadcast %908 : f32 to vector<16x34xf32>
    %910 = arith.mulf %909, %907 : vector<16x34xf32>
    %911 = arith.addf %901, %910 : vector<16x34xf32>
    %c31_273 = arith.constant 31 : index
    %912 = memref.load %arg5[%c31_273] : memref<72xf32, #tpu.memory_space<smem>>
    %913 = vector.broadcast %912 : f32 to vector<16x34xf32>
    %914 = arith.mulf %913, %907 : vector<16x34xf32>
    %915 = arith.addf %905, %914 : vector<16x34xf32>
    %c0_274 = arith.constant 0 : index
    %c1_275 = arith.constant 1 : index
    %c1_276 = arith.constant 1 : index
    %916 = vector.load %arg10[%c0_274, %c1_275, %c1_276] : memref<4x18x36xf32, #tpu.memory_space<vmem>>, vector<1x16x34xf32>
    %917 = vector.shape_cast %916 : vector<1x16x34xf32> to vector<16x34xf32>
    %c32_277 = arith.constant 32 : index
    %918 = memref.load %arg5[%c32_277] : memref<72xf32, #tpu.memory_space<smem>>
    %919 = vector.broadcast %918 : f32 to vector<16x34xf32>
    %920 = arith.mulf %919, %917 : vector<16x34xf32>
    %921 = arith.addf %911, %920 : vector<16x34xf32>
    %c33_278 = arith.constant 33 : index
    %922 = memref.load %arg5[%c33_278] : memref<72xf32, #tpu.memory_space<smem>>
    %923 = vector.broadcast %922 : f32 to vector<16x34xf32>
    %924 = arith.mulf %923, %917 : vector<16x34xf32>
    %925 = arith.addf %915, %924 : vector<16x34xf32>
    %c1_279 = arith.constant 1 : index
    %c1_280 = arith.constant 1 : index
    %c1_281 = arith.constant 1 : index
    %926 = vector.load %arg10[%c1_279, %c1_280, %c1_281] : memref<4x18x36xf32, #tpu.memory_space<vmem>>, vector<1x16x34xf32>
    %927 = vector.shape_cast %926 : vector<1x16x34xf32> to vector<16x34xf32>
    %c34_282 = arith.constant 34 : index
    %928 = memref.load %arg5[%c34_282] : memref<72xf32, #tpu.memory_space<smem>>
    %929 = vector.broadcast %928 : f32 to vector<16x34xf32>
    %930 = arith.mulf %929, %927 : vector<16x34xf32>
    %931 = arith.addf %921, %930 : vector<16x34xf32>
    %c35_283 = arith.constant 35 : index
    %932 = memref.load %arg5[%c35_283] : memref<72xf32, #tpu.memory_space<smem>>
    %933 = vector.broadcast %932 : f32 to vector<16x34xf32>
    %934 = arith.mulf %933, %927 : vector<16x34xf32>
    %935 = arith.addf %925, %934 : vector<16x34xf32>
    %c2_284 = arith.constant 2 : index
    %c1_285 = arith.constant 1 : index
    %c1_286 = arith.constant 1 : index
    %936 = vector.load %arg10[%c2_284, %c1_285, %c1_286] : memref<4x18x36xf32, #tpu.memory_space<vmem>>, vector<1x16x34xf32>
    %937 = vector.shape_cast %936 : vector<1x16x34xf32> to vector<16x34xf32>
    %c36_287 = arith.constant 36 : index
    %938 = memref.load %arg5[%c36_287] : memref<72xf32, #tpu.memory_space<smem>>
    %939 = vector.broadcast %938 : f32 to vector<16x34xf32>
    %940 = arith.mulf %939, %937 : vector<16x34xf32>
    %941 = arith.addf %931, %940 : vector<16x34xf32>
    %c37_288 = arith.constant 37 : index
    %942 = memref.load %arg5[%c37_288] : memref<72xf32, #tpu.memory_space<smem>>
    %943 = vector.broadcast %942 : f32 to vector<16x34xf32>
    %944 = arith.mulf %943, %937 : vector<16x34xf32>
    %945 = arith.addf %935, %944 : vector<16x34xf32>
    %c3_289 = arith.constant 3 : index
    %c1_290 = arith.constant 1 : index
    %c1_291 = arith.constant 1 : index
    %946 = vector.load %arg10[%c3_289, %c1_290, %c1_291] : memref<4x18x36xf32, #tpu.memory_space<vmem>>, vector<1x16x34xf32>
    %947 = vector.shape_cast %946 : vector<1x16x34xf32> to vector<16x34xf32>
    %c38_292 = arith.constant 38 : index
    %948 = memref.load %arg5[%c38_292] : memref<72xf32, #tpu.memory_space<smem>>
    %949 = vector.broadcast %948 : f32 to vector<16x34xf32>
    %950 = arith.mulf %949, %947 : vector<16x34xf32>
    %951 = arith.addf %941, %950 : vector<16x34xf32>
    %c39_293 = arith.constant 39 : index
    %952 = memref.load %arg5[%c39_293] : memref<72xf32, #tpu.memory_space<smem>>
    %953 = vector.broadcast %952 : f32 to vector<16x34xf32>
    %954 = arith.mulf %953, %947 : vector<16x34xf32>
    %955 = arith.addf %945, %954 : vector<16x34xf32>
    %c0_294 = arith.constant 0 : index
    %c1_295 = arith.constant 1 : index
    %c2_296 = arith.constant 2 : index
    %956 = vector.load %arg10[%c0_294, %c1_295, %c2_296] : memref<4x18x36xf32, #tpu.memory_space<vmem>>, vector<1x16x34xf32>
    %957 = vector.shape_cast %956 : vector<1x16x34xf32> to vector<16x34xf32>
    %c40_297 = arith.constant 40 : index
    %958 = memref.load %arg5[%c40_297] : memref<72xf32, #tpu.memory_space<smem>>
    %959 = vector.broadcast %958 : f32 to vector<16x34xf32>
    %960 = arith.mulf %959, %957 : vector<16x34xf32>
    %961 = arith.addf %951, %960 : vector<16x34xf32>
    %c41_298 = arith.constant 41 : index
    %962 = memref.load %arg5[%c41_298] : memref<72xf32, #tpu.memory_space<smem>>
    %963 = vector.broadcast %962 : f32 to vector<16x34xf32>
    %964 = arith.mulf %963, %957 : vector<16x34xf32>
    %965 = arith.addf %955, %964 : vector<16x34xf32>
    %c1_299 = arith.constant 1 : index
    %c1_300 = arith.constant 1 : index
    %c2_301 = arith.constant 2 : index
    %966 = vector.load %arg10[%c1_299, %c1_300, %c2_301] : memref<4x18x36xf32, #tpu.memory_space<vmem>>, vector<1x16x34xf32>
    %967 = vector.shape_cast %966 : vector<1x16x34xf32> to vector<16x34xf32>
    %c42_302 = arith.constant 42 : index
    %968 = memref.load %arg5[%c42_302] : memref<72xf32, #tpu.memory_space<smem>>
    %969 = vector.broadcast %968 : f32 to vector<16x34xf32>
    %970 = arith.mulf %969, %967 : vector<16x34xf32>
    %971 = arith.addf %961, %970 : vector<16x34xf32>
    %c43_303 = arith.constant 43 : index
    %972 = memref.load %arg5[%c43_303] : memref<72xf32, #tpu.memory_space<smem>>
    %973 = vector.broadcast %972 : f32 to vector<16x34xf32>
    %974 = arith.mulf %973, %967 : vector<16x34xf32>
    %975 = arith.addf %965, %974 : vector<16x34xf32>
    %c2_304 = arith.constant 2 : index
    %c1_305 = arith.constant 1 : index
    %c2_306 = arith.constant 2 : index
    %976 = vector.load %arg10[%c2_304, %c1_305, %c2_306] : memref<4x18x36xf32, #tpu.memory_space<vmem>>, vector<1x16x34xf32>
    %977 = vector.shape_cast %976 : vector<1x16x34xf32> to vector<16x34xf32>
    %c44_307 = arith.constant 44 : index
    %978 = memref.load %arg5[%c44_307] : memref<72xf32, #tpu.memory_space<smem>>
    %979 = vector.broadcast %978 : f32 to vector<16x34xf32>
    %980 = arith.mulf %979, %977 : vector<16x34xf32>
    %981 = arith.addf %971, %980 : vector<16x34xf32>
    %c45_308 = arith.constant 45 : index
    %982 = memref.load %arg5[%c45_308] : memref<72xf32, #tpu.memory_space<smem>>
    %983 = vector.broadcast %982 : f32 to vector<16x34xf32>
    %984 = arith.mulf %983, %977 : vector<16x34xf32>
    %985 = arith.addf %975, %984 : vector<16x34xf32>
    %c3_309 = arith.constant 3 : index
    %c1_310 = arith.constant 1 : index
    %c2_311 = arith.constant 2 : index
    %986 = vector.load %arg10[%c3_309, %c1_310, %c2_311] : memref<4x18x36xf32, #tpu.memory_space<vmem>>, vector<1x16x34xf32>
    %987 = vector.shape_cast %986 : vector<1x16x34xf32> to vector<16x34xf32>
    %c46_312 = arith.constant 46 : index
    %988 = memref.load %arg5[%c46_312] : memref<72xf32, #tpu.memory_space<smem>>
    %989 = vector.broadcast %988 : f32 to vector<16x34xf32>
    %990 = arith.mulf %989, %987 : vector<16x34xf32>
    %991 = arith.addf %981, %990 : vector<16x34xf32>
    %c47_313 = arith.constant 47 : index
    %992 = memref.load %arg5[%c47_313] : memref<72xf32, #tpu.memory_space<smem>>
    %993 = vector.broadcast %992 : f32 to vector<16x34xf32>
    %994 = arith.mulf %993, %987 : vector<16x34xf32>
    %995 = arith.addf %985, %994 : vector<16x34xf32>
    %c0_314 = arith.constant 0 : index
    %c2_315 = arith.constant 2 : index
    %c0_316 = arith.constant 0 : index
    %996 = vector.load %arg10[%c0_314, %c2_315, %c0_316] : memref<4x18x36xf32, #tpu.memory_space<vmem>>, vector<1x16x34xf32>
    %997 = vector.shape_cast %996 : vector<1x16x34xf32> to vector<16x34xf32>
    %c48_317 = arith.constant 48 : index
    %998 = memref.load %arg5[%c48_317] : memref<72xf32, #tpu.memory_space<smem>>
    %999 = vector.broadcast %998 : f32 to vector<16x34xf32>
    %1000 = arith.mulf %999, %997 : vector<16x34xf32>
    %1001 = arith.addf %991, %1000 : vector<16x34xf32>
    %c49_318 = arith.constant 49 : index
    %1002 = memref.load %arg5[%c49_318] : memref<72xf32, #tpu.memory_space<smem>>
    %1003 = vector.broadcast %1002 : f32 to vector<16x34xf32>
    %1004 = arith.mulf %1003, %997 : vector<16x34xf32>
    %1005 = arith.addf %995, %1004 : vector<16x34xf32>
    %c1_319 = arith.constant 1 : index
    %c2_320 = arith.constant 2 : index
    %c0_321 = arith.constant 0 : index
    %1006 = vector.load %arg10[%c1_319, %c2_320, %c0_321] : memref<4x18x36xf32, #tpu.memory_space<vmem>>, vector<1x16x34xf32>
    %1007 = vector.shape_cast %1006 : vector<1x16x34xf32> to vector<16x34xf32>
    %c50_322 = arith.constant 50 : index
    %1008 = memref.load %arg5[%c50_322] : memref<72xf32, #tpu.memory_space<smem>>
    %1009 = vector.broadcast %1008 : f32 to vector<16x34xf32>
    %1010 = arith.mulf %1009, %1007 : vector<16x34xf32>
    %1011 = arith.addf %1001, %1010 : vector<16x34xf32>
    %c51_323 = arith.constant 51 : index
    %1012 = memref.load %arg5[%c51_323] : memref<72xf32, #tpu.memory_space<smem>>
    %1013 = vector.broadcast %1012 : f32 to vector<16x34xf32>
    %1014 = arith.mulf %1013, %1007 : vector<16x34xf32>
    %1015 = arith.addf %1005, %1014 : vector<16x34xf32>
    %c2_324 = arith.constant 2 : index
    %c2_325 = arith.constant 2 : index
    %c0_326 = arith.constant 0 : index
    %1016 = vector.load %arg10[%c2_324, %c2_325, %c0_326] : memref<4x18x36xf32, #tpu.memory_space<vmem>>, vector<1x16x34xf32>
    %1017 = vector.shape_cast %1016 : vector<1x16x34xf32> to vector<16x34xf32>
    %c52_327 = arith.constant 52 : index
    %1018 = memref.load %arg5[%c52_327] : memref<72xf32, #tpu.memory_space<smem>>
    %1019 = vector.broadcast %1018 : f32 to vector<16x34xf32>
    %1020 = arith.mulf %1019, %1017 : vector<16x34xf32>
    %1021 = arith.addf %1011, %1020 : vector<16x34xf32>
    %c53_328 = arith.constant 53 : index
    %1022 = memref.load %arg5[%c53_328] : memref<72xf32, #tpu.memory_space<smem>>
    %1023 = vector.broadcast %1022 : f32 to vector<16x34xf32>
    %1024 = arith.mulf %1023, %1017 : vector<16x34xf32>
    %1025 = arith.addf %1015, %1024 : vector<16x34xf32>
    %c3_329 = arith.constant 3 : index
    %c2_330 = arith.constant 2 : index
    %c0_331 = arith.constant 0 : index
    %1026 = vector.load %arg10[%c3_329, %c2_330, %c0_331] : memref<4x18x36xf32, #tpu.memory_space<vmem>>, vector<1x16x34xf32>
    %1027 = vector.shape_cast %1026 : vector<1x16x34xf32> to vector<16x34xf32>
    %c54_332 = arith.constant 54 : index
    %1028 = memref.load %arg5[%c54_332] : memref<72xf32, #tpu.memory_space<smem>>
    %1029 = vector.broadcast %1028 : f32 to vector<16x34xf32>
    %1030 = arith.mulf %1029, %1027 : vector<16x34xf32>
    %1031 = arith.addf %1021, %1030 : vector<16x34xf32>
    %c55_333 = arith.constant 55 : index
    %1032 = memref.load %arg5[%c55_333] : memref<72xf32, #tpu.memory_space<smem>>
    %1033 = vector.broadcast %1032 : f32 to vector<16x34xf32>
    %1034 = arith.mulf %1033, %1027 : vector<16x34xf32>
    %1035 = arith.addf %1025, %1034 : vector<16x34xf32>
    %c0_334 = arith.constant 0 : index
    %c2_335 = arith.constant 2 : index
    %c1_336 = arith.constant 1 : index
    %1036 = vector.load %arg10[%c0_334, %c2_335, %c1_336] : memref<4x18x36xf32, #tpu.memory_space<vmem>>, vector<1x16x34xf32>
    %1037 = vector.shape_cast %1036 : vector<1x16x34xf32> to vector<16x34xf32>
    %c56_337 = arith.constant 56 : index
    %1038 = memref.load %arg5[%c56_337] : memref<72xf32, #tpu.memory_space<smem>>
    %1039 = vector.broadcast %1038 : f32 to vector<16x34xf32>
    %1040 = arith.mulf %1039, %1037 : vector<16x34xf32>
    %1041 = arith.addf %1031, %1040 : vector<16x34xf32>
    %c57_338 = arith.constant 57 : index
    %1042 = memref.load %arg5[%c57_338] : memref<72xf32, #tpu.memory_space<smem>>
    %1043 = vector.broadcast %1042 : f32 to vector<16x34xf32>
    %1044 = arith.mulf %1043, %1037 : vector<16x34xf32>
    %1045 = arith.addf %1035, %1044 : vector<16x34xf32>
    %c1_339 = arith.constant 1 : index
    %c2_340 = arith.constant 2 : index
    %c1_341 = arith.constant 1 : index
    %1046 = vector.load %arg10[%c1_339, %c2_340, %c1_341] : memref<4x18x36xf32, #tpu.memory_space<vmem>>, vector<1x16x34xf32>
    %1047 = vector.shape_cast %1046 : vector<1x16x34xf32> to vector<16x34xf32>
    %c58_342 = arith.constant 58 : index
    %1048 = memref.load %arg5[%c58_342] : memref<72xf32, #tpu.memory_space<smem>>
    %1049 = vector.broadcast %1048 : f32 to vector<16x34xf32>
    %1050 = arith.mulf %1049, %1047 : vector<16x34xf32>
    %1051 = arith.addf %1041, %1050 : vector<16x34xf32>
    %c59_343 = arith.constant 59 : index
    %1052 = memref.load %arg5[%c59_343] : memref<72xf32, #tpu.memory_space<smem>>
    %1053 = vector.broadcast %1052 : f32 to vector<16x34xf32>
    %1054 = arith.mulf %1053, %1047 : vector<16x34xf32>
    %1055 = arith.addf %1045, %1054 : vector<16x34xf32>
    %c2_344 = arith.constant 2 : index
    %c2_345 = arith.constant 2 : index
    %c1_346 = arith.constant 1 : index
    %1056 = vector.load %arg10[%c2_344, %c2_345, %c1_346] : memref<4x18x36xf32, #tpu.memory_space<vmem>>, vector<1x16x34xf32>
    %1057 = vector.shape_cast %1056 : vector<1x16x34xf32> to vector<16x34xf32>
    %c60_347 = arith.constant 60 : index
    %1058 = memref.load %arg5[%c60_347] : memref<72xf32, #tpu.memory_space<smem>>
    %1059 = vector.broadcast %1058 : f32 to vector<16x34xf32>
    %1060 = arith.mulf %1059, %1057 : vector<16x34xf32>
    %1061 = arith.addf %1051, %1060 : vector<16x34xf32>
    %c61_348 = arith.constant 61 : index
    %1062 = memref.load %arg5[%c61_348] : memref<72xf32, #tpu.memory_space<smem>>
    %1063 = vector.broadcast %1062 : f32 to vector<16x34xf32>
    %1064 = arith.mulf %1063, %1057 : vector<16x34xf32>
    %1065 = arith.addf %1055, %1064 : vector<16x34xf32>
    %c3_349 = arith.constant 3 : index
    %c2_350 = arith.constant 2 : index
    %c1_351 = arith.constant 1 : index
    %1066 = vector.load %arg10[%c3_349, %c2_350, %c1_351] : memref<4x18x36xf32, #tpu.memory_space<vmem>>, vector<1x16x34xf32>
    %1067 = vector.shape_cast %1066 : vector<1x16x34xf32> to vector<16x34xf32>
    %c62_352 = arith.constant 62 : index
    %1068 = memref.load %arg5[%c62_352] : memref<72xf32, #tpu.memory_space<smem>>
    %1069 = vector.broadcast %1068 : f32 to vector<16x34xf32>
    %1070 = arith.mulf %1069, %1067 : vector<16x34xf32>
    %1071 = arith.addf %1061, %1070 : vector<16x34xf32>
    %c63_353 = arith.constant 63 : index
    %1072 = memref.load %arg5[%c63_353] : memref<72xf32, #tpu.memory_space<smem>>
    %1073 = vector.broadcast %1072 : f32 to vector<16x34xf32>
    %1074 = arith.mulf %1073, %1067 : vector<16x34xf32>
    %1075 = arith.addf %1065, %1074 : vector<16x34xf32>
    %c0_354 = arith.constant 0 : index
    %c2_355 = arith.constant 2 : index
    %c2_356 = arith.constant 2 : index
    %1076 = vector.load %arg10[%c0_354, %c2_355, %c2_356] : memref<4x18x36xf32, #tpu.memory_space<vmem>>, vector<1x16x34xf32>
    %1077 = vector.shape_cast %1076 : vector<1x16x34xf32> to vector<16x34xf32>
    %c64_357 = arith.constant 64 : index
    %1078 = memref.load %arg5[%c64_357] : memref<72xf32, #tpu.memory_space<smem>>
    %1079 = vector.broadcast %1078 : f32 to vector<16x34xf32>
    %1080 = arith.mulf %1079, %1077 : vector<16x34xf32>
    %1081 = arith.addf %1071, %1080 : vector<16x34xf32>
    %c65_358 = arith.constant 65 : index
    %1082 = memref.load %arg5[%c65_358] : memref<72xf32, #tpu.memory_space<smem>>
    %1083 = vector.broadcast %1082 : f32 to vector<16x34xf32>
    %1084 = arith.mulf %1083, %1077 : vector<16x34xf32>
    %1085 = arith.addf %1075, %1084 : vector<16x34xf32>
    %c1_359 = arith.constant 1 : index
    %c2_360 = arith.constant 2 : index
    %c2_361 = arith.constant 2 : index
    %1086 = vector.load %arg10[%c1_359, %c2_360, %c2_361] : memref<4x18x36xf32, #tpu.memory_space<vmem>>, vector<1x16x34xf32>
    %1087 = vector.shape_cast %1086 : vector<1x16x34xf32> to vector<16x34xf32>
    %c66_362 = arith.constant 66 : index
    %1088 = memref.load %arg5[%c66_362] : memref<72xf32, #tpu.memory_space<smem>>
    %1089 = vector.broadcast %1088 : f32 to vector<16x34xf32>
    %1090 = arith.mulf %1089, %1087 : vector<16x34xf32>
    %1091 = arith.addf %1081, %1090 : vector<16x34xf32>
    %c67_363 = arith.constant 67 : index
    %1092 = memref.load %arg5[%c67_363] : memref<72xf32, #tpu.memory_space<smem>>
    %1093 = vector.broadcast %1092 : f32 to vector<16x34xf32>
    %1094 = arith.mulf %1093, %1087 : vector<16x34xf32>
    %1095 = arith.addf %1085, %1094 : vector<16x34xf32>
    %c2_364 = arith.constant 2 : index
    %c2_365 = arith.constant 2 : index
    %c2_366 = arith.constant 2 : index
    %1096 = vector.load %arg10[%c2_364, %c2_365, %c2_366] : memref<4x18x36xf32, #tpu.memory_space<vmem>>, vector<1x16x34xf32>
    %1097 = vector.shape_cast %1096 : vector<1x16x34xf32> to vector<16x34xf32>
    %c68_367 = arith.constant 68 : index
    %1098 = memref.load %arg5[%c68_367] : memref<72xf32, #tpu.memory_space<smem>>
    %1099 = vector.broadcast %1098 : f32 to vector<16x34xf32>
    %1100 = arith.mulf %1099, %1097 : vector<16x34xf32>
    %1101 = arith.addf %1091, %1100 : vector<16x34xf32>
    %c69_368 = arith.constant 69 : index
    %1102 = memref.load %arg5[%c69_368] : memref<72xf32, #tpu.memory_space<smem>>
    %1103 = vector.broadcast %1102 : f32 to vector<16x34xf32>
    %1104 = arith.mulf %1103, %1097 : vector<16x34xf32>
    %1105 = arith.addf %1095, %1104 : vector<16x34xf32>
    %c3_369 = arith.constant 3 : index
    %c2_370 = arith.constant 2 : index
    %c2_371 = arith.constant 2 : index
    %1106 = vector.load %arg10[%c3_369, %c2_370, %c2_371] : memref<4x18x36xf32, #tpu.memory_space<vmem>>, vector<1x16x34xf32>
    %1107 = vector.shape_cast %1106 : vector<1x16x34xf32> to vector<16x34xf32>
    %c70_372 = arith.constant 70 : index
    %1108 = memref.load %arg5[%c70_372] : memref<72xf32, #tpu.memory_space<smem>>
    %1109 = vector.broadcast %1108 : f32 to vector<16x34xf32>
    %1110 = arith.mulf %1109, %1107 : vector<16x34xf32>
    %1111 = arith.addf %1101, %1110 : vector<16x34xf32>
    %c71_373 = arith.constant 71 : index
    %1112 = memref.load %arg5[%c71_373] : memref<72xf32, #tpu.memory_space<smem>>
    %1113 = vector.broadcast %1112 : f32 to vector<16x34xf32>
    %1114 = arith.mulf %1113, %1107 : vector<16x34xf32>
    %1115 = arith.addf %1105, %1114 : vector<16x34xf32>
    %cst_374 = arith.constant 0.000000e+00 : f32
    %1116 = vector.broadcast %cst_374 : f32 to vector<16x34xf32>
    %1117 = arith.cmpf ogt, %1111, %1116 : vector<16x34xf32>
    %c0_375 = arith.constant 0 : index
    %1118 = memref.load %arg7[%c0_375] : memref<2xf32, #tpu.memory_space<smem>>
    %1119 = vector.broadcast %1118 : f32 to vector<16x34xf32>
    %1120 = arith.mulf %1119, %1111 : vector<16x34xf32>
    %1121 = arith.select %1117, %1111, %1120 : vector<16x34xi1>, vector<16x34xf32>
    %1122 = vector.extract_strided_slice %1121 {offsets = [0, 0], sizes = [16, 16], strides = [1, 1]} : vector<16x34xf32> to vector<16x16xf32>
    %c0_376 = arith.constant 0 : index
    %c0_377 = arith.constant 0 : index
    %c0_378 = arith.constant 0 : index
    %c0_379 = arith.constant 0 : index
    %1123 = vector.load %arg8[%c0_376, %c0_377, %c0_378, %c0_379] : memref<2x2x16x16xf32, #tpu.memory_space<vmem>>, vector<1x1x16x16xf32>
    %1124 = vector.shape_cast %1123 : vector<1x1x16x16xf32> to vector<16x16xf32>
    %1125 = vector.shape_cast %1122 : vector<16x16xf32> to vector<1x1x16x16xf32>
    tpu.vector_store %arg8[%c0_376, %c0_377, %c0_378, %c0_379], %1125 {strides = array<i32>} : memref<2x2x16x16xf32, #tpu.memory_space<vmem>>, vector<1x1x16x16xf32>,
    %1126 = vector.extract_strided_slice %1121 {offsets = [0, 18], sizes = [16, 16], strides = [1, 1]} : vector<16x34xf32> to vector<16x16xf32>
    %c1_380 = arith.constant 1 : index
    %c0_381 = arith.constant 0 : index
    %c0_382 = arith.constant 0 : index
    %c0_383 = arith.constant 0 : index
    %1127 = vector.load %arg8[%c1_380, %c0_381, %c0_382, %c0_383] : memref<2x2x16x16xf32, #tpu.memory_space<vmem>>, vector<1x1x16x16xf32>
    %1128 = vector.shape_cast %1127 : vector<1x1x16x16xf32> to vector<16x16xf32>
    %1129 = vector.shape_cast %1126 : vector<16x16xf32> to vector<1x1x16x16xf32>
    tpu.vector_store %arg8[%c1_380, %c0_381, %c0_382, %c0_383], %1129 {strides = array<i32>} : memref<2x2x16x16xf32, #tpu.memory_space<vmem>>, vector<1x1x16x16xf32>,
    %cst_384 = arith.constant 0.000000e+00 : f32
    %1130 = vector.broadcast %cst_384 : f32 to vector<16x34xf32>
    %1131 = arith.cmpf ogt, %1115, %1130 : vector<16x34xf32>
    %c1_385 = arith.constant 1 : index
    %1132 = memref.load %arg7[%c1_385] : memref<2xf32, #tpu.memory_space<smem>>
    %1133 = vector.broadcast %1132 : f32 to vector<16x34xf32>
    %1134 = arith.mulf %1133, %1115 : vector<16x34xf32>
    %1135 = arith.select %1131, %1115, %1134 : vector<16x34xi1>, vector<16x34xf32>
    %1136 = vector.extract_strided_slice %1135 {offsets = [0, 0], sizes = [16, 16], strides = [1, 1]} : vector<16x34xf32> to vector<16x16xf32>
    %c0_386 = arith.constant 0 : index
    %c1_387 = arith.constant 1 : index
    %c0_388 = arith.constant 0 : index
    %c0_389 = arith.constant 0 : index
    %1137 = vector.load %arg8[%c0_386, %c1_387, %c0_388, %c0_389] : memref<2x2x16x16xf32, #tpu.memory_space<vmem>>, vector<1x1x16x16xf32>
    %1138 = vector.shape_cast %1137 : vector<1x1x16x16xf32> to vector<16x16xf32>
    %1139 = vector.shape_cast %1136 : vector<16x16xf32> to vector<1x1x16x16xf32>
    tpu.vector_store %arg8[%c0_386, %c1_387, %c0_388, %c0_389], %1139 {strides = array<i32>} : memref<2x2x16x16xf32, #tpu.memory_space<vmem>>, vector<1x1x16x16xf32>,
    %1140 = vector.extract_strided_slice %1135 {offsets = [0, 18], sizes = [16, 16], strides = [1, 1]} : vector<16x34xf32> to vector<16x16xf32>
    %c1_390 = arith.constant 1 : index
    %c1_391 = arith.constant 1 : index
    %c0_392 = arith.constant 0 : index
    %c0_393 = arith.constant 0 : index
    %1141 = vector.load %arg8[%c1_390, %c1_391, %c0_392, %c0_393] : memref<2x2x16x16xf32, #tpu.memory_space<vmem>>, vector<1x1x16x16xf32>
    %1142 = vector.shape_cast %1141 : vector<1x1x16x16xf32> to vector<16x16xf32>
    %1143 = vector.shape_cast %1140 : vector<16x16xf32> to vector<1x1x16x16xf32>
    tpu.vector_store %arg8[%c1_390, %c1_391, %c0_392, %c0_393], %1143 {strides = array<i32>} : memref<2x2x16x16xf32, #tpu.memory_space<vmem>>, vector<1x1x16x16xf32>,
    return
  }
  func.func @transform_0(%arg0: i32) -> (i32, i32, i32, i32) {
    %c0_i32 = arith.constant 0 : i32
    %c0_i32_0 = arith.constant 0 : i32
    %c0_i32_1 = arith.constant 0 : i32
    %c0_i32_2 = arith.constant 0 : i32
    return %arg0, %c0_i32, %c0_i32_0, %c0_i32_1 : i32, i32, i32, i32
  }
  func.func @transform_1(%arg0: i32) -> i32 {
    %c0_i32 = arith.constant 0 : i32
    %c0_i32_0 = arith.constant 0 : i32
    return %c0_i32 : i32
  }
  func.func @transform_2(%arg0: i32) -> i32 {
    %c0_i32 = arith.constant 0 : i32
    %c0_i32_0 = arith.constant 0 : i32
    return %c0_i32 : i32
  }
  func.func @transform_3(%arg0: i32) -> i32 {
    %c0_i32 = arith.constant 0 : i32
    %c0_i32_0 = arith.constant 0 : i32
    return %c0_i32 : i32
  }
  func.func @transform_4(%arg0: i32) -> i32 {
    %c0_i32 = arith.constant 0 : i32
    %c0_i32_0 = arith.constant 0 : i32
    return %c0_i32 : i32
  }
  func.func @transform_5(%arg0: i32) -> i32 {
    %c0_i32 = arith.constant 0 : i32
    %c0_i32_0 = arith.constant 0 : i32
    return %c0_i32 : i32
  }
  func.func @transform_6(%arg0: i32) -> i32 {
    %c0_i32 = arith.constant 0 : i32
    %c0_i32_0 = arith.constant 0 : i32
    return %c0_i32 : i32
  }
  func.func @transform_7(%arg0: i32) -> (i32, i32, i32, i32) {
    %c0_i32 = arith.constant 0 : i32
    %c0_i32_0 = arith.constant 0 : i32
    %c0_i32_1 = arith.constant 0 : i32
    %c0_i32_2 = arith.constant 0 : i32
    return %arg0, %c0_i32, %c0_i32_0, %c0_i32_1 : i32, i32, i32, i32
  }
}

</mosaic_0001>

<bundles_post_ra>
// kernel: tpu_custom_call.1
= control target key start
LH: loop header
LB: loop body
LE: loop exit
PB: predicated region body
PF: predicated region fallthrough
CT: control target
= control target key end

     0   :  { %12 = vsyncpa [#allocation5], 0  ;;  %s5578_s0 = inlined_call_operand.hbm [shape: f32[2,4,16,16], index: 0, kind: input, shape index: {}]   ;;  %s5579_s1 = inlined_call_operand.vmem [shape: f32[144], index: 1, kind: input, shape index: {}]   ;;  %s5580_s2 = inlined_call_operand.vmem [shape: f32[4], index: 2, kind: input, shape index: {}]   ;;  %s5581_s3 = inlined_call_operand.vmem [shape: f32[4], index: 3, kind: input, shape index: {}]   ;;  %s5582_s4 = inlined_call_operand.vmem [shape: f32[72], index: 4, kind: input, shape index: {}]   ;;  %s5583_s5 = inlined_call_operand.vmem [shape: f32[2], index: 5, kind: input, shape index: {}]   ;;  %s5584_s6 = inlined_call_operand.vmem [shape: f32[2], index: 6, kind: input, shape index: {}]   ;;  %s5585_s7 = inlined_call_operand.hbm [shape: f32[2,2,16,16], index: 7, kind: output, shape index: {}]  }
   0x1   :  { %13 = vsyncpa [#allocation7], 0 }
   0x2   :  { %14 = vsyncpa [#allocation10], 0 }
   0x3   :  { %15 = vsyncpa [#allocation13], 0 }
   0x4   :  { %16 = vsyncpa [#allocation16], 0  ;;  %s46_s26 = sshll.u32 %s5580_s2, 4  ;;  %s47_s26 = int_to_ptr.vmem [resolvable:$true] %s46_s26 }
   0x5   :  { %17 = vsyncpa [#allocation6], 0  ;;  %s66_s29 = sshll.u32 %s5582_s4, 4  ;;  %s3152_s30 = scalar_lea.vmem %s47_s26, 16  ;;  %s67_s29 = int_to_ptr.vmem [resolvable:$true] %s66_s29 }
   0x6   :  { %p3153_p0 = scmp.ne.s32.totalorder %s47_s26, %s3152_s30  ;;  %p3157_p1 = scmp.lt.s32.totalorder %s47_s26, %s47_s26 }
   0x7   :  { %p3158_p2 = scmp.lt.s32.totalorder %s3152_s30, %s3152_s30 }
   0x9   :  { %p3159_p3 = por %p3158_p2, %p3157_p1 }
   0xb   :  { %p3160_p4 = pnand %p3159_p3, %p3153_p0 }
   0xd   :  { %3163 = shalt.err (!%p3160_p4)
}
   0xe   :  { %s3280_s8 = smov [#allocation9]   ;;  %s3164_s9 = scalar_lea.vmem %s67_s29, 16 }
   0xf   :  { %49 = dma.vmem_to_smem %s47_s26, 16, %s3280_s8, [#allocation10]  }
  0x10   :  { %p3165_p5 = scmp.ne.s32.totalorder %s67_s29, %s3164_s9  ;;  %p3169_p6 = scmp.lt.s32.totalorder %s67_s29, %s67_s29 }
  0x11   :  { %p3170_p7 = scmp.lt.s32.totalorder %s3164_s9, %s3164_s9 }
  0x13   :  { %p3171_p8 = por %p3170_p7, %p3169_p6 }
  0x15   :  { %p3172_p9 = pnand %p3171_p8, %p3165_p5 }
  0x17   :  { %3175 = shalt.err (!%p3172_p9)
}
  0x18   :  { %s3281_s2 = smov [#allocation12]   ;;  %s3282_s4 = smov [#allocation4]  }
  0x19   :  { %69 = dma.vmem_to_smem %s67_s29, 16, %s3281_s2, [#allocation13]  }
  0x1a   :  { %s23_s10 = sshll.u32 %s3282_s4, 4  ;;  %s36_s13 = sshll.u32 %s5579_s1, 4  ;;  %s24_s10 = int_to_ptr.vmem [resolvable:$true] %s23_s10  ;;  %s37_s13 = int_to_ptr.vmem [resolvable:$true] %s36_s13 }
  0x1b   :  { %s3176_s16 = scalar_lea.hbm %s5578_s0, 2048 }
  0x1c   :  { %p3177_p10 = scmp.ne.s32.totalorder %s5578_s0, %s3176_s16  ;;  %p3180_p11 = scmp.lt.u32.totalorder %s3176_s16, %s5578_s0 }
  0x1e   :  { %p3182_p12 = pnand %p3180_p11, %p3177_p10 }
  0x20   :  { %3185 = shalt.err (!%p3182_p12)
}
  0x21   :  { %s3186_s21 = scalar_lea.vmem %s24_s10, 2048  ;;  %p3191_p0 = scmp.lt.s32.totalorder %s24_s10, %s24_s10 }
  0x22   :  { %p3187_p13 = scmp.ne.s32.totalorder %s24_s10, %s3186_s21  ;;  %p3192_p1 = scmp.lt.s32.totalorder %s3186_s21, %s3186_s21 }
  0x24   :  { %p3193_p2 = por %p3192_p1, %p3191_p0 }
  0x26   :  { %p3194_p3 = pnand %p3193_p2, %p3187_p13 }
  0x28   :  { %3197 = shalt.err (!%p3194_p3)
}
  0x29   :  { %s3283_s1 = smov 128   ;;  %s3284_s22 = smov 8  }
  0x2a   :  { %29 = dma.hbm_to_vmem [thread:$0]  %s5578_s0, 2048, %s24_s10, [#allocation5], %s3283_s1, %s3283_s1, %s3284_s22  }
  0x2b   :  { %s3198_s25 = scalar_lea.vmem %s37_s13, 32  ;;  %p3203_p5 = scmp.lt.s32.totalorder %s37_s13, %s37_s13 }
  0x2c   :  { %p3199_p4 = scmp.ne.s32.totalorder %s37_s13, %s3198_s25  ;;  %p3204_p6 = scmp.lt.s32.totalorder %s3198_s25, %s3198_s25 }
  0x2e   :  { %p3205_p7 = por %p3204_p6, %p3203_p5 }
  0x30   :  { %p3206_p8 = pnand %p3205_p7, %p3199_p4 }
  0x32   :  { %3209 = shalt.err (!%p3206_p8)
}
  0x33   :  { %s3285_s26 = smov [#allocation8]   ;;  %s56_s29 = sshll.u32 %s5581_s3, 4  ;;  %s57_s29 = int_to_ptr.vmem [resolvable:$true] %s56_s29 }
  0x34   :  { %39 = dma.vmem_to_smem %s37_s13, 32, %s3285_s26, [#allocation7]  }
  0x35   :  { %s76_s9 = sshll.u32 %s5583_s5, 4  ;;  %s3210_s0 = scalar_lea.vmem %s57_s29, 16  ;;  %s77_s9 = int_to_ptr.vmem [resolvable:$true] %s76_s9 }
  0x36   :  { %p3211_p9 = scmp.ne.s32.totalorder %s57_s29, %s3210_s0  ;;  %p3215_p10 = scmp.lt.s32.totalorder %s57_s29, %s57_s29 }
  0x37   :  { %p3216_p11 = scmp.lt.s32.totalorder %s3210_s0, %s3210_s0 }
  0x39   :  { %p3217_p12 = por %p3216_p11, %p3215_p10 }
  0x3b   :  { %p3218_p13 = pnand %p3217_p12, %p3211_p9 }
  0x3d   :  { %3221 = shalt.err (!%p3218_p13)
}
  0x3e   :  { %s3286_s2 = smov [#allocation11]   ;;  %s3222_s4 = scalar_lea.vmem %s77_s9, 16 }
  0x3f   :  { %59 = dma.vmem_to_smem %s57_s29, 16, %s3286_s2, [#allocation10]  }
  0x40   :  { %p3223_p0 = scmp.ne.s32.totalorder %s77_s9, %s3222_s4  ;;  %p3227_p1 = scmp.lt.s32.totalorder %s77_s9, %s77_s9 }
  0x41   :  { %p3228_p2 = scmp.lt.s32.totalorder %s3222_s4, %s3222_s4 }
  0x43   :  { %p3229_p3 = por %p3228_p2, %p3227_p1 }
  0x45   :  { %p3230_p4 = pnand %p3229_p3, %p3223_p0 }
  0x47   :  { %3233 = shalt.err (!%p3230_p4)
}
  0x48   :  { %s3287_s3 = smov [#allocation14]   ;;  %s86_s11 = sshll.u32 %s5584_s6, 4  ;;  %s87_s11 = int_to_ptr.vmem [resolvable:$true] %s86_s11 }
  0x49   :  { %79 = dma.vmem_to_smem %s77_s9, 16, %s3287_s3, [#allocation13]  }
  0x4a   :  { %s3234_s12 = scalar_lea.vmem %s87_s11, 16  ;;  %p3239_p6 = scmp.lt.s32.totalorder %s87_s11, %s87_s11 }
  0x4b   :  { %p3235_p5 = scmp.ne.s32.totalorder %s87_s11, %s3234_s12  ;;  %p3240_p7 = scmp.lt.s32.totalorder %s3234_s12, %s3234_s12 }
  0x4d   :  { %p3241_p8 = por %p3240_p7, %p3239_p6 }
  0x4f   :  { %p3242_p9 = pnand %p3241_p8, %p3235_p5 }
  0x51   :  { %3245 = shalt.err (!%p3242_p9)
}
  0x52   :  { %s3288_s13 = smov [#allocation15]  }
  0x53   :  { %89 = dma.vmem_to_smem %s87_s11, 16, %s3288_s13, [#allocation16]  }
  0x54   :  { %3268 = dma.done.wait [#allocation5], 2048  }
  0x55   :  { %3269 = vsyncadd [#allocation5], 4294965248 }
  0x56   :  { %3270 = dma.done.wait [#allocation7], 32  }
  0x57   :  { %3271 = vsyncadd [#allocation7], 4294967264 }
  0x58   :  { %3272 = dma.done.wait [#allocation10], 32  }
  0x59   :  { %3273 = vsyncadd [#allocation10], 4294967264 }
  0x5a   :  { %3274 = dma.done.wait [#allocation13], 32  }
  0x5b   :  { %3275 = vsyncadd [#allocation13], 4294967264 }
  0x5c   :  { %3276 = dma.done.wait [#allocation16], 16  }
  0x5d   :  { %3277 = vsyncadd [#allocation16], 4294967280 }
  0x5e   :  { %111 = sfence }
  0x5f   :  { %v156_v0 = vld [vmem:[#allocation4 + $0x40] sm:$0xff]  ;;  %s3289_s6 = smov 19   ;;  %s3290_s14 = smov 1   ;;  %vm116_vm0 = vcmask 293888   ;;  %v157_v2 = vld [vmem:[#allocation4 + $0x48] sm:$0xff]  ;;  %v3291_v4 = vmov 0.0  }
  0x60   :  { %v142_v1 = vld [vmem:[#allocation4] sm:$0xff]  ;;  %160 = vrot.lane.b32.xlu1 %v156_v0, %s3289_s6  ;;  %v143_v3 = vld [vmem:[#allocation4 + $0x8] sm:$0xff]  ;;  %117 = vst.msk [vmem:[#allocation2] sm:$0xff] %vm116_vm0, %v3291_v4  ;;  %118 = vst.msk [vmem:[#allocation2 + $0x8] sm:$0xff] %vm116_vm0, %v3291_v4  ;;  %vm119_vm1 = vcmask 287744   ;;  %vm152_vm2 = vcmask 138248  }
  0x61   :  { %146 = vrot.lane.b32.xlu0 %v142_v1, %s3290_s14  ;;  %121 = vst.msk [vmem:[#allocation2 + $0x18] sm:$0xff] %vm116_vm0, %v3291_v4  ;;  %122 = vst.msk [vmem:[#allocation2 + $0x20] sm:$0xff] %vm116_vm0, %v3291_v4  ;;  %v171_v5 = vld [vmem:[#allocation4 + $0x18] sm:$0xff]  ;;  %v170_v6 = vld [vmem:[#allocation4 + $0x10] sm:$0xff]  ;;  %vm166_vm3 = vcmask 285848   ;;  %s3401_s15 = sld [smem:[#allocation8 + $0x10]] }
  0x62   :  { %124 = vst.msk [vmem:[#allocation2 + $0x30] sm:$0xff] %vm116_vm0, %v3291_v4  ;;  %125 = vst.msk [vmem:[#allocation2 + $0x38] sm:$0xff] %vm116_vm0, %v3291_v4  ;;  %v185_v7 = vld [vmem:[#allocation4 + $0x58] sm:$0xff]  ;;  %v184_v8 = vld [vmem:[#allocation4 + $0x50] sm:$0xff]  ;;  %s3405_s16 = sld [smem:[#allocation8 + $0x11]]  ;;  %s3410_s17 = sld [smem:[#allocation8 + $0x12]] }
  0x63   :  { %127 = vst.msk [vmem:[#allocation2 + $0x48] sm:$0xff] %vm116_vm0, %v3291_v4  ;;  %128 = vst.msk [vmem:[#allocation2 + $0x50] sm:$0xff] %vm116_vm0, %v3291_v4  ;;  %v198_v9 = vld [vmem:[#allocation4 + $0x28] sm:$0xff]  ;;  %v197_v10 = vld [vmem:[#allocation4 + $0x20] sm:$0xff]  ;;  %s3412_s18 = sld [smem:[#allocation8]]  ;;  %s3414_s19 = sld [smem:[#allocation8 + $0x1]] }
  0x64   :  { %130 = vst.msk [vmem:[#allocation3] sm:$0xff] %vm116_vm0, %v3291_v4  ;;  %131 = vst.msk [vmem:[#allocation3 + $0x8] sm:$0xff] %vm116_vm0, %v3291_v4  ;;  %162 = vrot.lane.b32.xlu1 %v157_v2, %s3289_s6  ;;  %v212_v11 = vld [vmem:[#allocation4 + $0x68] sm:$0xff]  ;;  %v211_v12 = vld [vmem:[#allocation4 + $0x60] sm:$0xff]  ;;  %s3416_s20 = sld [smem:[#allocation8 + $0x2]]  ;;  %s3422_s21 = sld [smem:[#allocation8 + $0x13]] }
  0x65   :  { %133 = vst.msk [vmem:[#allocation3 + $0x18] sm:$0xff] %vm116_vm0, %v3291_v4  ;;  %134 = vst.msk [vmem:[#allocation3 + $0x20] sm:$0xff] %vm116_vm0, %v3291_v4  ;;  %148 = vrot.lane.b32.xlu0 %v143_v3, %s3290_s14  ;;  %v225_v13 = vld [vmem:[#allocation4 + $0x38] sm:$0xff]  ;;  %v224_v14 = vld [vmem:[#allocation4 + $0x30] sm:$0xff]  ;;  %s3425_s23 = sld [smem:[#allocation8 + $0x14]]  ;;  %s3427_s24 = sld [smem:[#allocation9]] }
  0x66   :  { %136 = vst.msk [vmem:[#allocation3 + $0x30] sm:$0xff] %vm116_vm0, %v3291_v4  ;;  %137 = vst.msk [vmem:[#allocation3 + $0x38] sm:$0xff] %vm116_vm0, %v3291_v4  ;;  %v239_v15 = vld [vmem:[#allocation4 + $0x78] sm:$0xff]  ;;  %v238_v16 = vld [vmem:[#allocation4 + $0x70] sm:$0xff]  ;;  %s3430_s25 = sld [smem:[#allocation8 + $0x4]]  ;;  %s3432_s26 = sld [smem:[#allocation8 + $0x3]] }
  0x67   :  { %139 = vst.msk [vmem:[#allocation3 + $0x48] sm:$0xff] %vm116_vm0, %v3291_v4  ;;  %140 = vst.msk [vmem:[#allocation3 + $0x50] sm:$0xff] %vm116_vm0, %v3291_v4  ;;  %v370_v21 = vstv %s3401_s15  ;;  %s3292_s27 = smov 127   ;;  %s3435_s28 = sld [smem:[#allocation9 + $0x1]] }
  0x68   :  { %120 = vst.msk [vmem:[#allocation2 + $0x10] sm:$0x3] %vm119_vm1, %v3291_v4  ;;  %123 = vst.msk [vmem:[#allocation2 + $0x28] sm:$0x3] %vm119_vm1, %v3291_v4  ;;  %176 = vrot.lane.b32.xlu1 %v171_v5, %s3290_s14  ;;  %v384_v26 = vstv %s3405_s16  ;;  %s3437_s29 = sld [smem:[#allocation9 + $0x2]]  ;;  %s3443_s30 = sld [smem:[#allocation8 + $0x15]]  ;;  %v398_v32 = vstv %s3410_s17 }
  0x69   :  { %126 = vst.msk [vmem:[#allocation2 + $0x40] sm:$0x3] %vm119_vm1, %v3291_v4  ;;  %129 = vst.msk [vmem:[#allocation2 + $0x58] sm:$0x3] %vm119_vm1, %v3291_v4  ;;  %174 = vrot.lane.b32.xlu0 %v170_v6, %s3290_s14  ;;  %s3445_s8 = sld [smem:[#allocation8 + $0x5]]  ;;  %s3449_s9 = sld [smem:[#allocation8 + $0x6]]  ;;  %v268_v33 = vstv %s3412_s18  ;;  %v274_v36 = vstv %s3414_s19 }
  0x6a   :  { %132 = vst.msk [vmem:[#allocation3 + $0x10] sm:$0x3] %vm119_vm1, %v3291_v4  ;;  %135 = vst.msk [vmem:[#allocation3 + $0x28] sm:$0x3] %vm119_vm1, %v3291_v4  ;;  %v280_v37 = vstv %s3416_s20  ;;  %v412_v38 = vstv %s3422_s21  ;;  %s3474_s0 = sld [smem:[#allocation8 + $0x7]]  ;;  %s3479_s2 = sld [smem:[#allocation8 + $0x16]] }
  0x6b   :  { %138 = vst.msk [vmem:[#allocation3 + $0x40] sm:$0x3] %vm119_vm1, %v3291_v4  ;;  %141 = vst.msk [vmem:[#allocation3 + $0x58] sm:$0x3] %vm119_vm1, %v3291_v4  ;;  %v426_v41 = vstv %s3425_s23  ;;  %v258_v42 = vstv %s3427_s24  ;;  %s3484_s4 = sld [smem:[#allocation9 + $0x3]]  ;;  %s3492_s3 = sld [smem:[#allocation8 + $0x8]] }
  0x6c   :  { %190 = vrot.lane.b32.xlu1 %v185_v7, %s3289_s6  ;;  %v286_v46 = vstv %s3432_s26  ;;  %v294_v54 = vstv %s3430_s25  ;;  %s3494_s5 = sld [smem:[#allocation8 + $0x9]]  ;;  %s3501_s10 = sld [smem:[#allocation8 + $0xa]]  ;;  %vm1939_vm1 = vcmask 285704  }
  0x6d   :  { %188 = vrot.lane.b32.xlu0 %v184_v8, %s3289_s6  ;;  %v260_v50 = vstv %s3435_s28  ;;  %s3506_s11 = sld [smem:[#allocation8 + $0x17]]  ;;  %s3508_s12 = sld [smem:[#allocation8 + $0xc]] }
  0x6e   :  { %v262_v52 = vstv %s3437_s29  ;;  %v440_v53 = vstv %s3443_s30  ;;  %s3524_s13 = sld [smem:[#allocation8 + $0x18]]  ;;  %s3532_s15 = sld [smem:[#allocation8 + $0xb]] }
  0x6f   :  { %v300_v55 = vstv %s3445_s8  ;;  %v306_v61 = vstv %s3449_s9  ;;  %s3541_s16 = sld [smem:[#allocation8 + $0xe]]  ;;  %s3543_s17 = sld [smem:[#allocation8 + $0x19]] }
  0x70   :  { %203 = vrot.lane.b32.xlu1 %v198_v9, %s3290_s14  ;;  %s3551_s18 = sld [smem:[#allocation8 + $0xf]]  ;;  %s3580_s19 = sld [smem:[#allocation8 + $0x1a]] }
  0x71   :  { %201 = vrot.lane.b32.xlu0 %v197_v10, %s3290_s14  ;;  %s3600_s20 = sld [smem:[#allocation8 + $0x1b]]  ;;  %s2944_s21 = sld [smem:[#allocation8 + $0x1c]] }
  0x72   :  { %s2945_s23 = sld [smem:[#allocation8 + $0x1d]]  ;;  %s2946_s24 = sld [smem:[#allocation8 + $0x1e]] }
  0x73   :  { %s2947_s25 = sld [smem:[#allocation8 + $0x1f]]  ;;  %s2948_s26 = sld [smem:[#allocation8 + $0x20]] }
  0x74   :  { %217 = vrot.lane.b32.xlu1 %v212_v11, %s3289_s6  ;;  %s2949_s28 = sld [smem:[#allocation8 + $0x21]]  ;;  %s2950_s29 = sld [smem:[#allocation8 + $0x22]] }
  0x75   :  { %215 = vrot.lane.b32.xlu0 %v211_v12, %s3289_s6  ;;  %s2951_s30 = sld [smem:[#allocation8 + $0x23]]  ;;  %s3293_s8 = smov 126  }
  0x76   :  { %s2952_s9 = sld [smem:[#allocation8 + $0x24]] }
  0x78   :  { %230 = vrot.lane.b32.xlu1 %v225_v13, %s3290_s14 }
  0x79   :  { %228 = vrot.lane.b32.xlu0 %v224_v14, %s3290_s14 }
  0x7c   :  { %244 = vrot.lane.b32.xlu1 %v239_v15, %s3289_s6 }
  0x7d   :  { %242 = vrot.lane.b32.xlu0 %v238_v16, %s3289_s6  ;;  %s3529_s6 = sld [smem:[#allocation8 + $0xd]] }
  0xd2   :  { %v161_v17 = vpop.permute.xlu1 %160 }
  0xd3   :  { %v147_v18 = vpop.permute.xlu0 %146 }
  0xd4   :  { %153 = vst.msk [vmem:[#allocation2 + $0x1] sm:$0xff] %vm152_vm2, %v147_v18 }
  0xd5   :  { %167 = vst.msk [vmem:[#allocation2 + $0x1] sm:$0xff] %vm166_vm3, %v161_v17 }
  0xd6   :  { %v163_v19 = vpop.permute.xlu1 %162 }
  0xd7   :  { %v149_v20 = vpop.permute.xlu0 %148 }
  0xd8   :  { %154 = vst.msk [vmem:[#allocation2 + $0x9] sm:$0xff] %vm152_vm2, %v149_v20 }
  0xd9   :  { %168 = vst.msk [vmem:[#allocation2 + $0x9] sm:$0xff] %vm166_vm3, %v163_v19 }
  0xda   :  { %v177_v22 = vpop.permute.xlu1 %176 }
  0xdb   :  { %v175_v23 = vpop.permute.xlu0 %174  ;;  %182 = vst.msk [vmem:[#allocation2 + $0x21] sm:$0xff] %vm152_vm2, %v177_v22 }
  0xdc   :  { %v3418_v24 = vld [vmem:[#allocation2] sm:$0xff]  ;;  %181 = vst.msk [vmem:[#allocation2 + $0x19] sm:$0xff] %vm152_vm2, %v175_v23 }
  0xdd   :  { %v371_v25 = vmul.f32 %v370_v21, %v3418_v24  ;;  %v385_v31 = vmul.f32 %v384_v26, %v3418_v24  ;;  %v399_v40 = vmul.f32 %v398_v32, %v3418_v24  ;;  %v269_v43 = vmul.f32 %v268_v33, %v3418_v24 }
  0xde   :  { %v191_v27 = vpop.permute.xlu1 %190  ;;  %v275_v44 = vmul.f32 %v274_v36, %v3418_v24  ;;  %v281_v45 = vmul.f32 %v280_v37, %v3418_v24  ;;  %v413_v60 = vmul.f32 %v412_v38, %v3418_v24  ;;  %v287_v62 = vmul.f32 %v286_v46, %v3418_v24 }
  0xdf   :  { %v189_v28 = vpop.permute.xlu0 %188  ;;  %375 = vrot.lane.b32.xlu0 %v371_v25, %s3292_s27  ;;  %195 = vst.msk [vmem:[#allocation2 + $0x21] sm:$0xff] %vm166_vm3, %v191_v27  ;;  %v271_v0 = vadd.f32 %v269_v43, %v258_v42  ;;  %v264_v27 = vstv %s3484_s4  ;;  %s2955_s4 = sld [smem:[#allocation8 + $0x27]] }
  0xe0   :  { %v3439_v29 = vld [vmem:[#allocation2 + $0x8] sm:$0xff]  ;;  %194 = vst.msk [vmem:[#allocation2 + $0x19] sm:$0xff] %vm166_vm3, %v189_v28  ;;  %v277_v1 = vadd.f32 %v275_v44, %v260_v50  ;;  %v283_v2 = vadd.f32 %v281_v45, %v262_v52 }
  0xe1   :  { %v372_v30 = vmul.f32 %v370_v21, %v3439_v29  ;;  %v386_v39 = vmul.f32 %v384_v26, %v3439_v29  ;;  %v270_v49 = vmul.f32 %v268_v33, %v3439_v29  ;;  %v276_v51 = vmul.f32 %v274_v36, %v3439_v29 }
  0xe2   :  { %v204_v34 = vpop.permute.xlu1 %203  ;;  %v282_v56 = vmul.f32 %v280_v37, %v3439_v29  ;;  %v400_v59 = vmul.f32 %v398_v32, %v3439_v29  ;;  %v414_v63 = vmul.f32 %v412_v38, %v3439_v29  ;;  %v312_v26 = vstv %s3474_s0  ;;  %s2953_s0 = sld [smem:[#allocation8 + $0x25]] }
  0xe3   :  { %v202_v35 = vpop.permute.xlu0 %201  ;;  %377 = vrot.lane.b32.xlu1 %v372_v30, %s3292_s27  ;;  %389 = vrot.lane.b32.xlu0 %v385_v31, %s3292_s27  ;;  %209 = vst.msk [vmem:[#allocation2 + $0x39] sm:$0xff] %vm152_vm2, %v204_v34  ;;  %v272_v6 = vadd.f32 %v270_v49, %v258_v42  ;;  %v278_v7 = vadd.f32 %v276_v51, %v260_v50  ;;  %v454_v31 = vstv %s3479_s2  ;;  %v320_v32 = vstv %s3492_s3  ;;  %s2954_s2 = sld [smem:[#allocation8 + $0x26]]  ;;  %s2956_s3 = sld [smem:[#allocation8 + $0x28]] }
  0xe4   :  { %208 = vst.msk [vmem:[#allocation2 + $0x31] sm:$0xff] %vm152_vm2, %v202_v35  ;;  %v284_v11 = vadd.f32 %v282_v56, %v262_v52  ;;  %v326_v33 = vstv %s3494_s5  ;;  %v332_v34 = vstv %s3501_s10  ;;  %v468_v36 = vstv %s3506_s11  ;;  %s2957_s5 = sld [smem:[#allocation8 + $0x29]]  ;;  %s2958_s10 = sld [smem:[#allocation8 + $0x2a]] }
  0xe5   :  { %v346_v37 = vstv %s3508_s12  ;;  %v289_v38 = vadd.f32 %v287_v62, %v264_v27  ;;  %s2959_s11 = sld [smem:[#allocation8 + $0x2b]]  ;;  %s2960_s12 = sld [smem:[#allocation8 + $0x2c]] }
  0xe6   :  { %v218_v47 = vpop.permute.xlu1 %217 }
  0xe7   :  { %v216_v48 = vpop.permute.xlu0 %215  ;;  %391 = vrot.lane.b32.xlu1 %v386_v39, %s3292_s27  ;;  %403 = vrot.lane.b32.xlu0 %v399_v40, %s3292_s27  ;;  %222 = vst.msk [vmem:[#allocation2 + $0x39] sm:$0xff] %vm166_vm3, %v218_v47  ;;  %v3486_v57 = vld [vmem:[#allocation2 + $0x18] sm:$0xff]  ;;  %v3488_v58 = vld [vmem:[#allocation2 + $0x20] sm:$0xff]  ;;  %v288_v39 = vmul.f32 %v286_v46, %v3439_v29 }
  0xe8   :  { %221 = vst.msk [vmem:[#allocation2 + $0x31] sm:$0xff] %vm166_vm3, %v216_v48  ;;  %v427_v5 = vmul.f32 %v426_v41, %v3486_v57  ;;  %v295_v8 = vmul.f32 %v294_v54, %v3486_v57  ;;  %v296_v9 = vmul.f32 %v294_v54, %v3488_v58  ;;  %v301_v10 = vmul.f32 %v300_v55, %v3486_v57 }
  0xe9   :  { %v441_v12 = vmul.f32 %v440_v53, %v3486_v57  ;;  %v302_v13 = vmul.f32 %v300_v55, %v3488_v58  ;;  %v307_v14 = vmul.f32 %v306_v61, %v3486_v57  ;;  %v308_v15 = vmul.f32 %v306_v61, %v3488_v58 }
  0xea   :  { %v231_v3 = vpop.permute.xlu1 %230  ;;  %v428_v16 = vmul.f32 %v426_v41, %v3488_v58  ;;  %v297_v17 = vadd.f32 %v295_v8, %v271_v0  ;;  %v298_v18 = vadd.f32 %v296_v9, %v272_v6  ;;  %v303_v19 = vadd.f32 %v301_v10, %v277_v1 }
  0xeb   :  { %v229_v4 = vpop.permute.xlu0 %228  ;;  %405 = vrot.lane.b32.xlu1 %v400_v59, %s3292_s27  ;;  %417 = vrot.lane.b32.xlu0 %v413_v60, %s3292_s27  ;;  %236 = vst.msk [vmem:[#allocation2 + $0x51] sm:$0xff] %vm152_vm2, %v231_v3  ;;  %v304_v22 = vadd.f32 %v302_v13, %v278_v7  ;;  %v309_v23 = vadd.f32 %v307_v14, %v283_v2  ;;  %v352_v60 = vstv %s3529_s6  ;;  %v338_v61 = vstv %s3532_s15  ;;  %s2962_s6 = sld [smem:[#allocation8 + $0x2e]]  ;;  %s2963_s15 = sld [smem:[#allocation8 + $0x2f]] }
  0xec   :  { %235 = vst.msk [vmem:[#allocation2 + $0x49] sm:$0xff] %vm152_vm2, %v229_v4  ;;  %v310_v25 = vadd.f32 %v308_v15, %v284_v11  ;;  %v313_v35 = vmul.f32 %v312_v26, %v3486_v57  ;;  %v455_v40 = vmul.f32 %v454_v31, %v3486_v57  ;;  %v442_v44 = vmul.f32 %v440_v53, %v3488_v58 }
  0xed   :  { %v482_v53 = vstv %s3524_s13  ;;  %v456_v62 = vmul.f32 %v454_v31, %v3488_v58  ;;  %v358_v0 = vstv %s3541_s16  ;;  %v496_v2 = vstv %s3543_s17  ;;  %s2961_s13 = sld [smem:[#allocation8 + $0x2d]]  ;;  %s3703_s16 = sld [smem:[#allocation8 + $0x40]] }
  0xee   :  { %v245_v20 = vpop.permute.xlu1 %244  ;;  %v315_v51 = vadd.f32 %v313_v35, %v289_v38  ;;  %v290_v4 = vadd.f32 %v288_v39, %v264_v27  ;;  %v364_v8 = vstv %s3551_s18  ;;  %v470_v13 = vmul.f32 %v468_v36, %v3488_v58  ;;  %s3713_s17 = sld [smem:[#allocation8 + $0x41]]  ;;  %s2982_s18 = sld [smem:[#allocation8 + $0x42]] }
  0xef   :  { %v243_v21 = vpop.permute.xlu0 %242  ;;  %419 = vrot.lane.b32.xlu1 %v414_v63, %s3292_s27  ;;  %431 = vrot.lane.b32.xlu0 %v427_v5, %s3292_s27  ;;  %249 = vst.msk [vmem:[#allocation2 + $0x51] sm:$0xff] %vm166_vm3, %v245_v20  ;;  %v3534_v28 = vld [vmem:[#allocation2 + $0x30] sm:$0xff]  ;;  %v3536_v30 = vld [vmem:[#allocation2 + $0x38] sm:$0xff]  ;;  %v469_v63 = vmul.f32 %v468_v36, %v3486_v57  ;;  %v538_v38 = vstv %s2944_s21  ;;  %s3755_s21 = sld [smem:[#allocation8 + $0x45]]  ;;  %vm2857_vm2 = vcmask 130048  }
  0xf0   :  { %248 = vst.msk [vmem:[#allocation2 + $0x49] sm:$0xff] %vm166_vm3, %v243_v21  ;;  %v321_v41 = vmul.f32 %v320_v32, %v3534_v28  ;;  %v322_v42 = vmul.f32 %v320_v32, %v3536_v30  ;;  %v327_v43 = vmul.f32 %v326_v33, %v3534_v28  ;;  %v328_v45 = vmul.f32 %v326_v33, %v3536_v30 }
  0xf1   :  { %v333_v47 = vmul.f32 %v332_v34, %v3534_v28  ;;  %v334_v46 = vmul.f32 %v332_v34, %v3536_v30  ;;  %v483_v1 = vmul.f32 %v482_v53, %v3534_v28  ;;  %v339_v7 = vmul.f32 %v338_v61, %v3534_v28 }
  0xf2   :  { %v323_v48 = vadd.f32 %v321_v41, %v297_v17  ;;  %v324_v49 = vadd.f32 %v322_v42, %v298_v18  ;;  %v329_v50 = vadd.f32 %v327_v43, %v303_v19  ;;  %v330_v54 = vadd.f32 %v328_v45, %v304_v22 }
  0xf3   :  { %433 = vrot.lane.b32.xlu1 %v428_v16, %s3292_s27  ;;  %445 = vrot.lane.b32.xlu0 %v441_v12, %s3292_s27  ;;  %v335_v55 = vadd.f32 %v333_v47, %v309_v23  ;;  %v336_v56 = vadd.f32 %v334_v46, %v310_v25  ;;  %v314_v12 = vmul.f32 %v312_v26, %v3488_v58  ;;  %v510_v32 = vstv %s3580_s19  ;;  %s2983_s19 = sld [smem:[#allocation8 + $0x43]] }
  0xf4   :  { %v497_v14 = vmul.f32 %v496_v2, %v3534_v28  ;;  %v484_v21 = vmul.f32 %v482_v53, %v3536_v30  ;;  %v341_v22 = vadd.f32 %v339_v7, %v315_v51  ;;  %v340_v23 = vmul.f32 %v338_v61, %v3536_v30 }
  0xf5   :  { %v316_v27 = vadd.f32 %v314_v12, %v290_v4  ;;  %v498_v35 = vmul.f32 %v496_v2, %v3536_v30  ;;  %v511_v36 = vmul.f32 %v510_v32, %v3534_v28  ;;  %v512_v39 = vmul.f32 %v510_v32, %v3536_v30 }
  0xf6   :  { %v552_v42 = vstv %s2945_s23  ;;  %v566_v47 = vstv %s2946_s24  ;;  %v594_v53 = vstv %s2948_s26  ;;  %v650_v4 = vstv %s2952_s9  ;;  %s2986_s23 = sld [smem:[#allocation8 + $0x46]]  ;;  %s2987_s24 = sld [smem:[#allocation8 + $0x47]] }
  0xf7   :  { %v3566_v52 = vld [vmem:[#allocation2 + $0x48] sm:$0xff]  ;;  %447 = vrot.lane.b32.xlu1 %v442_v44, %s3292_s27  ;;  %459 = vrot.lane.b32.xlu0 %v455_v40, %s3292_s27  ;;  %v3571_v59 = vld [vmem:[#allocation2 + $0x50] sm:$0xff]  ;;  %v342_v33 = vadd.f32 %v340_v23, %v316_v27  ;;  %v664_v7 = vstv %s2953_s0  ;;  %v692_v12 = vstv %s2955_s4  ;;  %s3797_s26 = sld [smem:[#allocation8 + $0x49]]  ;;  %s3839_s9 = sld [smem:[#allocation8 + $0x4d]] }
  0xf8   :  { %v347_v3 = vmul.f32 %v346_v37, %v3566_v52  ;;  %v348_v5 = vmul.f32 %v346_v37, %v3571_v59  ;;  %v353_v6 = vmul.f32 %v352_v60, %v3566_v52  ;;  %v354_v10 = vmul.f32 %v352_v60, %v3571_v59  ;;  %s2994_s0 = sld [smem:[#allocation8 + $0x4e]]  ;;  %s3871_s4 = sld [smem:[#allocation8 + $0x50]] }
  0xf9   :  { %v359_v11 = vmul.f32 %v358_v0, %v3566_v52  ;;  %v360_v19 = vmul.f32 %v358_v0, %v3571_v59  ;;  %v365_v20 = vmul.f32 %v364_v8, %v3566_v52  ;;  %v366_v26 = vmul.f32 %v364_v8, %v3571_v59 }
  0xfa   :  { %v3589_v9 = vadd.f32 %v347_v3, %v323_v48  ;;  %v3596_v15 = vadd.f32 %v348_v5, %v324_v49  ;;  %v3598_v16 = vadd.f32 %v353_v6, %v329_v50  ;;  %v3602_v17 = vadd.f32 %v354_v10, %v330_v54 }
  0xfb   :  { %461 = vrot.lane.b32.xlu1 %v456_v62, %s3292_s27  ;;  %473 = vrot.lane.b32.xlu0 %v469_v63, %s3292_s27  ;;  %v3604_v18 = vadd.f32 %v359_v11, %v335_v55  ;;  %v3612_v25 = vadd.f32 %v360_v19, %v336_v56  ;;  %v3615_v31 = vadd.f32 %v365_v20, %v341_v22  ;;  %v524_v37 = vstv %s3600_s20  ;;  %s3745_s20 = sld [smem:[#allocation8 + $0x44]] }
  0xfc   :  { %v3620_v34 = vadd.f32 %v366_v26, %v342_v33  ;;  %v525_v40 = vmul.f32 %v524_v37, %v3534_v28  ;;  %v539_v41 = vmul.f32 %v538_v38, %v3566_v52  ;;  %v526_v43 = vmul.f32 %v524_v37, %v3536_v30 }
  0xfd   :  { %v540_v44 = vmul.f32 %v538_v38, %v3571_v59  ;;  %v553_v45 = vmul.f32 %v552_v42, %v3566_v52  ;;  %v554_v46 = vmul.f32 %v552_v42, %v3571_v59  ;;  %v567_v48 = vmul.f32 %v566_v47, %v3566_v52 }
  0xfe   :  { %v580_v49 = vstv %s2947_s25  ;;  %v568_v50 = vmul.f32 %v566_v47, %v3571_v59  ;;  %v595_v55 = vmul.f32 %v594_v53, %v3418_v24  ;;  %v608_v56 = vstv %s2949_s28  ;;  %s3787_s25 = sld [smem:[#allocation8 + $0x48]]  ;;  %s2990_s28 = sld [smem:[#allocation8 + $0x4a]] }
  0xff   :  { %475 = vrot.lane.b32.xlu1 %v470_v13, %s3292_s27  ;;  %487 = vrot.lane.b32.xlu0 %v483_v1, %s3292_s27  ;;  %v581_v51 = vmul.f32 %v580_v49, %v3566_v52  ;;  %v582_v54 = vmul.f32 %v580_v49, %v3571_v59  ;;  %v596_v60 = vmul.f32 %v594_v53, %v3439_v29  ;;  %v622_v62 = vstv %s2950_s29  ;;  %s2991_s29 = sld [smem:[#allocation8 + $0x4b]] }
 0x100   :  { %v609_v61 = vmul.f32 %v608_v56, %v3418_v24  ;;  %v610_v63 = vmul.f32 %v608_v56, %v3439_v29  ;;  %v623_v0 = vmul.f32 %v622_v62, %v3418_v24  ;;  %v636_v1 = vstv %s2951_s30  ;;  %s3829_s30 = sld [smem:[#allocation8 + $0x4c]] }
 0x101   :  { %v624_v2 = vmul.f32 %v622_v62, %v3439_v29  ;;  %v637_v3 = vmul.f32 %v636_v1, %v3418_v24  ;;  %v638_v5 = vmul.f32 %v636_v1, %v3439_v29  ;;  %v651_v6 = vmul.f32 %v650_v4, %v3486_v57 }
 0x102   :  { %v652_v8 = vmul.f32 %v650_v4, %v3488_v58  ;;  %v665_v24 = vmul.f32 %v664_v7, %v3486_v57  ;;  %v678_v10 = vstv %s2954_s2  ;;  %v666_v29 = vmul.f32 %v664_v7, %v3488_v58  ;;  %s2995_s2 = sld [smem:[#allocation8 + $0x4f]] }
 0x103   :  { %489 = vrot.lane.b32.xlu1 %v484_v21, %s3292_s27  ;;  %501 = vrot.lane.b32.xlu0 %v497_v14, %s3292_s27  ;;  %v679_v11 = vmul.f32 %v678_v10, %v3486_v57  ;;  %v680_v13 = vmul.f32 %v678_v10, %v3488_v58  ;;  %v693_v14 = vmul.f32 %v692_v12, %v3486_v57  ;;  %v706_v19 = vstv %s2956_s3  ;;  %s3881_s3 = sld [smem:[#allocation8 + $0x51]] }
 0x104   :  { %v694_v20 = vmul.f32 %v692_v12, %v3488_v58  ;;  %v707_v21 = vmul.f32 %v706_v19, %v3534_v28  ;;  %v720_v22 = vstv %s2957_s5  ;;  %v708_v23 = vmul.f32 %v706_v19, %v3536_v30  ;;  %s3892_s5 = sld [smem:[#allocation8 + $0x52]] }
 0x105   :  { %v721_v57 = vmul.f32 %v720_v22, %v3534_v28  ;;  %v734_v26 = vstv %s2958_s10  ;;  %v722_v58 = vmul.f32 %v720_v22, %v3536_v30  ;;  %v748_v32 = vstv %s2959_s11  ;;  %s3903_s10 = sld [smem:[#allocation8 + $0x53]]  ;;  %s3907_s11 = sld [smem:[#allocation8 + $0x30]] }
 0x106   :  { %v735_v27 = vmul.f32 %v734_v26, %v3534_v28  ;;  %v736_v33 = vmul.f32 %v734_v26, %v3536_v30  ;;  %v750_v37 = vmul.f32 %v748_v32, %v3536_v30  ;;  %v790_v42 = vstv %s2962_s6  ;;  %s3913_s6 = sld [smem:[#allocation8 + $0x33]] }
 0x107   :  { %503 = vrot.lane.b32.xlu1 %v498_v35, %s3292_s27  ;;  %515 = vrot.lane.b32.xlu0 %v511_v36, %s3292_s27  ;;  %v749_v35 = vmul.f32 %v748_v32, %v3534_v28  ;;  %v762_v36 = vstv %s2960_s12  ;;  %v804_v47 = vstv %s2963_s15  ;;  %v792_v49 = vmul.f32 %v790_v42, %v3571_v59  ;;  %s3909_s12 = sld [smem:[#allocation8 + $0x31]]  ;;  %s3921_s15 = sld [smem:[#allocation8 + $0x54]] }
 0x108   :  { %v763_v38 = vmul.f32 %v762_v36, %v3566_v52  ;;  %v764_v28 = vmul.f32 %v762_v36, %v3571_v59  ;;  %v922_v53 = vstv %s3703_s16  ;;  %v806_v56 = vmul.f32 %v804_v47, %v3571_v59  ;;  %s3923_s16 = sld [smem:[#allocation8 + $0x55]] }
 0x109   :  { %v936_v62 = vstv %s3713_s17  ;;  %v1020_v36 = vstv %s2987_s24  ;;  %s3926_s17 = sld [smem:[#allocation8 + $0x56]]  ;;  %s3946_s24 = sld [smem:[#allocation8 + $0x58]] }
 0x10b   :  { %517 = vrot.lane.b32.xlu1 %v512_v39, %s3292_s27  ;;  %529 = vrot.lane.b32.xlu0 %v525_v40, %s3292_s27  ;;  %v776_v39 = vstv %s2961_s13  ;;  %s3911_s13 = sld [smem:[#allocation8 + $0x32]] }
 0x10f   :  { %531 = vrot.lane.b32.xlu1 %v526_v43, %s3292_s27  ;;  %543 = vrot.lane.b32.xlu0 %v539_v41, %s3292_s27  ;;  %v777_v41 = vmul.f32 %v776_v39, %v3566_v52 }
 0x113   :  { %545 = vrot.lane.b32.xlu1 %v540_v44, %s3292_s27  ;;  %557 = vrot.lane.b32.xlu0 %v553_v45, %s3292_s27  ;;  %v778_v44 = vmul.f32 %v776_v39, %v3571_v59  ;;  %v791_v45 = vmul.f32 %v790_v42, %v3566_v52  ;;  %v1034_v42 = vstv %s3787_s25  ;;  %s3948_s25 = sld [smem:[#allocation8 + $0x59]] }
 0x117   :  { %559 = vrot.lane.b32.xlu1 %v554_v46, %s3292_s27  ;;  %571 = vrot.lane.b32.xlu0 %v567_v48, %s3292_s27 }
 0x11b   :  { %573 = vrot.lane.b32.xlu1 %v568_v50, %s3292_s27  ;;  %585 = vrot.lane.b32.xlu0 %v581_v51, %s3292_s27  ;;  %v805_v50 = vmul.f32 %v804_v47, %v3566_v52  ;;  %v3723_v51 = vld [vmem:[#allocation2 + $0x1] sm:$0xff] }
 0x11c   :  { %v937_v1 = vmul.f32 %v936_v62, %v3723_v51 }
 0x11f   :  { %587 = vrot.lane.b32.xlu1 %v582_v54, %s3292_s27  ;;  %599 = vrot.lane.b32.xlu0 %v595_v55, %s3293_s8 }
 0x123   :  { %601 = vrot.lane.b32.xlu1 %v596_v60, %s3293_s8  ;;  %613 = vrot.lane.b32.xlu0 %v609_v61, %s3293_s8  ;;  %v923_v60 = vmul.f32 %v922_v53, %v3723_v51  ;;  %v3734_v61 = vld [vmem:[#allocation2 + $0x9] sm:$0xff] }
 0x124   :  { %v938_v4 = vmul.f32 %v936_v62, %v3734_v61 }
 0x127   :  { %615 = vrot.lane.b32.xlu1 %v610_v63, %s3293_s8  ;;  %627 = vrot.lane.b32.xlu0 %v623_v0, %s3293_s8  ;;  %v924_v0 = vmul.f32 %v922_v53, %v3734_v61  ;;  %v1048_v53 = vstv %s3797_s26  ;;  %s3951_s26 = sld [smem:[#allocation8 + $0x5a]] }
 0x12b   :  { %629 = vrot.lane.b32.xlu1 %v624_v2, %s3293_s8  ;;  %641 = vrot.lane.b32.xlu0 %v637_v3, %s3293_s8  ;;  %v950_v2 = vstv %s2982_s18  ;;  %s3928_s18 = sld [smem:[#allocation8 + $0x57]] }
 0x12f   :  { %643 = vrot.lane.b32.xlu1 %v638_v5, %s3293_s8  ;;  %655 = vrot.lane.b32.xlu0 %v651_v6, %s3293_s8  ;;  %v951_v5 = vmul.f32 %v950_v2, %v3723_v51  ;;  %v964_v6 = vstv %s2983_s19  ;;  %s3932_s19 = sld [smem:[#allocation8 + $0x34]] }
 0x130   :  { %v965_v10 = vmul.f32 %v964_v6, %v3723_v51 }
 0x133   :  { %657 = vrot.lane.b32.xlu1 %v652_v8, %s3293_s8  ;;  %669 = vrot.lane.b32.xlu0 %v665_v24, %s3293_s8  ;;  %v952_v24 = vmul.f32 %v950_v2, %v3734_v61 }
 0x137   :  { %671 = vrot.lane.b32.xlu1 %v666_v29, %s3293_s8  ;;  %683 = vrot.lane.b32.xlu0 %v679_v11, %s3293_s8  ;;  %v3765_v29 = vld [vmem:[#allocation2 + $0x19] sm:$0xff]  ;;  %v978_v11 = vstv %s3745_s20  ;;  %s3934_s20 = sld [smem:[#allocation8 + $0x35]] }
 0x138   :  { %v979_v19 = vmul.f32 %v978_v11, %v3765_v29 }
 0x13b   :  { %685 = vrot.lane.b32.xlu1 %v680_v13, %s3293_s8  ;;  %697 = vrot.lane.b32.xlu0 %v693_v14, %s3293_s8  ;;  %v966_v14 = vmul.f32 %v964_v6, %v3734_v61 }
 0x13f   :  { %699 = vrot.lane.b32.xlu1 %v694_v20, %s3293_s8  ;;  %711 = vrot.lane.b32.xlu0 %v707_v21, %s3293_s8  ;;  %v3776_v20 = vld [vmem:[#allocation2 + $0x21] sm:$0xff]  ;;  %v992_v21 = vstv %s3755_s21  ;;  %s3936_s21 = sld [smem:[#allocation8 + $0x36]] }
 0x140   :  { %5589 = vst [vmem:[#allocation25_spill] sm:$0xff] %v3776_v20  ;;  %v993_v26 = vmul.f32 %v992_v21, %v3765_v29  ;;  %v1022_v47 = vmul.f32 %v1020_v36, %v3776_v20 }
 0x143   :  { %713 = vrot.lane.b32.xlu1 %v708_v23, %s3293_s8  ;;  %725 = vrot.lane.b32.xlu0 %v721_v57, %s3293_s8  ;;  %v980_v57 = vmul.f32 %v978_v11, %v3776_v20 }
 0x147   :  { %727 = vrot.lane.b32.xlu1 %v722_v58, %s3293_s8  ;;  %739 = vrot.lane.b32.xlu0 %v735_v27, %s3293_s8  ;;  %v1006_v58 = vstv %s2986_s23  ;;  %s3938_s23 = sld [smem:[#allocation8 + $0x37]] }
 0x148   :  { %v1008_v39 = vmul.f32 %v1006_v58, %v3776_v20 }
 0x14b   :  { %741 = vrot.lane.b32.xlu1 %v736_v33, %s3293_s8  ;;  %753 = vrot.lane.b32.xlu0 %v749_v35, %s3293_s8  ;;  %v994_v33 = vmul.f32 %v992_v21, %v3776_v20  ;;  %v1007_v35 = vmul.f32 %v1006_v58, %v3765_v29  ;;  %v3849_v21 = vld [vmem:[#allocation2 + $0x49] sm:$0xff] }
 0x14f   :  { %755 = vrot.lane.b32.xlu1 %v750_v37, %s3293_s8  ;;  %767 = vrot.lane.b32.xlu0 %v763_v38, %s3293_s8 }
 0x151   :  { %v3699_v40 = vpop.permute.xlu0 %375 }
 0x153   :  { %769 = vrot.lane.b32.xlu1 %v764_v28, %s3293_s8  ;;  %781 = vrot.lane.b32.xlu0 %v777_v41, %s3293_s8  ;;  %v1021_v28 = vmul.f32 %v1020_v36, %v3765_v29  ;;  %v3807_v41 = vld [vmem:[#allocation2 + $0x31] sm:$0xff] }
 0x154   :  { %v3860_v36 = vld [vmem:[#allocation2 + $0x51] sm:$0xff] }
 0x155   :  { %v3707_v30 = vpop.permute.xlu1 %377  ;;  %v3709_v43 = vpop.permute.xlu0 %389 }
 0x157   :  { %783 = vrot.lane.b32.xlu1 %v778_v44, %s3293_s8  ;;  %795 = vrot.lane.b32.xlu0 %v791_v45, %s3293_s8 }
 0x159   :  { %v3717_v46 = vpop.permute.xlu1 %391  ;;  %v3719_v48 = vpop.permute.xlu0 %403 }
 0x15b   :  { %797 = vrot.lane.b32.xlu1 %v792_v49, %s3293_s8  ;;  %809 = vrot.lane.b32.xlu0 %v805_v50, %s3293_s8  ;;  %v1035_v49 = vmul.f32 %v1034_v42, %v3807_v41  ;;  %v3818_v50 = vld [vmem:[#allocation2 + $0x39] sm:$0xff] }
 0x15c   :  { %v1036_v62 = vmul.f32 %v1034_v42, %v3818_v50 }
 0x15d   :  { %v3728_v54 = vpop.permute.xlu1 %405  ;;  %v3730_v55 = vpop.permute.xlu0 %417 }
 0x15f   :  { %811 = vrot.lane.b32.xlu1 %v806_v56, %s3293_s8  ;;  %927 = vrot.lane.b32.xlu0 %v923_v60, %s3292_s27 }
 0x161   :  { %v3739_v52 = vpop.permute.xlu1 %419  ;;  %v3741_v63 = vpop.permute.xlu0 %431 }
 0x163   :  { %929 = vrot.lane.b32.xlu1 %v924_v0, %s3292_s27  ;;  %941 = vrot.lane.b32.xlu0 %v937_v1, %s3292_s27  ;;  %v1049_v0 = vmul.f32 %v1048_v53, %v3807_v41  ;;  %v1062_v1 = vstv %s2990_s28  ;;  %s3953_s28 = sld [smem:[#allocation8 + $0x5b]] }
 0x164   :  { %v1063_v6 = vmul.f32 %v1062_v1, %v3807_v41 }
 0x165   :  { %v3749_v59 = vpop.permute.xlu1 %433  ;;  %v3751_v3 = vpop.permute.xlu0 %445 }
 0x167   :  { %943 = vrot.lane.b32.xlu1 %v938_v4, %s3292_s27  ;;  %955 = vrot.lane.b32.xlu0 %v951_v5, %s3292_s27  ;;  %v1050_v5 = vmul.f32 %v1048_v53, %v3818_v50  ;;  %v1118_v53 = vstv %s2994_s0  ;;  %s3977_s0 = sld [smem:[#allocation8 + $0x5c]] }
 0x169   :  { %v3759_v7 = vpop.permute.xlu1 %447  ;;  %v3761_v8 = vpop.permute.xlu0 %459 }
 0x16b   :  { %957 = vrot.lane.b32.xlu1 %v952_v24, %s3292_s27  ;;  %969 = vrot.lane.b32.xlu0 %v965_v10, %s3292_s27  ;;  %v1076_v24 = vstv %s2991_s29  ;;  %s3957_s29 = sld [smem:[#allocation8 + $0x38]] }
 0x16d   :  { %v3770_v12 = vpop.permute.xlu1 %461  ;;  %v3772_v13 = vpop.permute.xlu0 %473 }
 0x16e   :  { %5588 = vst [vmem:[#allocation24_spill] sm:$0xff] %v3772_v13 }
 0x16f   :  { %971 = vrot.lane.b32.xlu1 %v966_v14, %s3292_s27  ;;  %983 = vrot.lane.b32.xlu0 %v979_v19, %s3292_s27  ;;  %v1064_v14 = vmul.f32 %v1062_v1, %v3818_v50  ;;  %v1077_v19 = vmul.f32 %v1076_v24, %v3807_v41 }
 0x171   :  { %v3781_v22 = vpop.permute.xlu1 %475  ;;  %v3783_v23 = vpop.permute.xlu0 %487 }
 0x172   :  { %5590 = vst [vmem:[#allocation26_spill] sm:$0xff] %v3781_v22 }
 0x173   :  { %985 = vrot.lane.b32.xlu1 %v980_v57, %s3292_s27  ;;  %997 = vrot.lane.b32.xlu0 %v993_v26, %s3292_s27  ;;  %v1090_v57 = vstv %s3829_s30  ;;  %s3959_s30 = sld [smem:[#allocation8 + $0x39]] }
 0x175   :  { %v3791_v27 = vpop.permute.xlu1 %489  ;;  %v3793_v32 = vpop.permute.xlu0 %501 }
 0x177   :  { %999 = vrot.lane.b32.xlu1 %v994_v33, %s3292_s27  ;;  %1011 = vrot.lane.b32.xlu0 %v1007_v35, %s3292_s27  ;;  %v1078_v33 = vmul.f32 %v1076_v24, %v3818_v50  ;;  %v1091_v35 = vmul.f32 %v1090_v57, %v3849_v21 }
 0x179   :  { %v3801_v37 = vpop.permute.xlu1 %503  ;;  %v3803_v38 = vpop.permute.xlu0 %515 }
 0x17b   :  { %1013 = vrot.lane.b32.xlu1 %v1008_v39, %s3292_s27  ;;  %1025 = vrot.lane.b32.xlu0 %v1021_v28, %s3292_s27  ;;  %v1104_v39 = vstv %s3839_s9  ;;  %s3961_s9 = sld [smem:[#allocation8 + $0x3a]] }
 0x17c   :  { %v1106_v1 = vmul.f32 %v1104_v39, %v3860_v36 }
 0x17d   :  { %v3812_v44 = vpop.permute.xlu1 %517  ;;  %v3814_v45 = vpop.permute.xlu0 %529 }
 0x17e   :  { %5591 = vst [vmem:[#allocation27_spill] sm:$0xff] %v3812_v44  ;;  %5592 = vst [vmem:[#allocation28_spill] sm:$0xff] %v3814_v45  ;;  %v1300_v44 = vstv %s3953_s28  ;;  %s3041_s28 = sld [smem:[#allocation8 + $0x7d]] }
 0x17f   :  { %1027 = vrot.lane.b32.xlu1 %v1022_v47, %s3292_s27  ;;  %1039 = vrot.lane.b32.xlu0 %v1035_v49, %s3292_s27  ;;  %v1092_v47 = vmul.f32 %v1090_v57, %v3860_v36  ;;  %v1105_v49 = vmul.f32 %v1104_v39, %v3849_v21 }
 0x181   :  { %v3823_v56 = vpop.permute.xlu1 %531  ;;  %v3825_v60 = vpop.permute.xlu0 %543 }
 0x182   :  { %5593 = vst [vmem:[#allocation29_spill] sm:$0xff] %v3823_v56 }
 0x183   :  { %1041 = vrot.lane.b32.xlu1 %v1036_v62, %s3292_s27  ;;  %1053 = vrot.lane.b32.xlu0 %v1049_v0, %s3292_s27 }
 0x185   :  { %v3833_v2 = vpop.permute.xlu1 %545  ;;  %v3835_v4 = vpop.permute.xlu0 %557 }
 0x187   :  { %1055 = vrot.lane.b32.xlu1 %v1050_v5, %s3292_s27  ;;  %1067 = vrot.lane.b32.xlu0 %v1063_v6, %s3292_s27  ;;  %v1119_v5 = vmul.f32 %v1118_v53, %v3849_v21  ;;  %v1132_v6 = vstv %s2995_s2  ;;  %s3998_s2 = sld [smem:[#allocation8 + $0x3c]] }
 0x188   :  { %v1133_v57 = vmul.f32 %v1132_v6, %v3849_v21 }
 0x189   :  { %v3843_v10 = vpop.permute.xlu1 %559  ;;  %v3845_v11 = vpop.permute.xlu0 %571 }
 0x18a   :  { %5594 = vst [vmem:[#allocation30_spill] sm:$0xff] %v3843_v10  ;;  %5595 = vst [vmem:[#allocation31_spill] sm:$0xff] %v3845_v11  ;;  %v1272_v11 = vstv %s3948_s25  ;;  %v1286_v10 = vstv %s3951_s26  ;;  %s4432_s25 = sld [smem:[#allocation8 + $0x77]]  ;;  %s3038_s26 = sld [smem:[#allocation8 + $0x7a]] }
 0x18b   :  { %1069 = vrot.lane.b32.xlu1 %v1064_v14, %s3292_s27  ;;  %1081 = vrot.lane.b32.xlu0 %v1077_v19, %s3292_s27  ;;  %v1120_v19 = vmul.f32 %v1118_v53, %v3860_v36 }
 0x18d   :  { %v3854_v26 = vpop.permute.xlu1 %573  ;;  %v3856_v58 = vpop.permute.xlu0 %585 }
 0x18e   :  { %5596 = vst [vmem:[#allocation32_spill] sm:$0xff] %v3854_v26  ;;  %5597 = vst [vmem:[#allocation33_spill] sm:$0xff] %v3856_v58  ;;  %v832_v58 = vstv %s3911_s13  ;;  %v1244_v26 = vstv %s3928_s18  ;;  %s4257_s13 = sld [smem:[#allocation8 + $0x5f]]  ;;  %s4359_s18 = sld [smem:[#allocation8 + $0x74]] }
 0x18f   :  { %1083 = vrot.lane.b32.xlu1 %v1078_v33, %s3292_s27  ;;  %1095 = vrot.lane.b32.xlu0 %v1091_v35, %s3292_s27  ;;  %v1146_v33 = vstv %s3871_s4  ;;  %v1245_v22 = vmul.f32 %v1244_v26, %v3765_v29  ;;  %s4039_s4 = sld [smem:[#allocation8 + $0x3b]] }
 0x191   :  { %v3865_v28 = vpop.permute.xlu1 %587  ;;  %v3867_v42 = vpop.permute.xlu0 %599 }
 0x192   :  { %5598 = vst [vmem:[#allocation34_spill] sm:$0xff] %v3865_v28  ;;  %v826_v28 = vstv %s3909_s12  ;;  %s4218_s12 = sld [smem:[#allocation8 + $0x3f]] }
 0x193   :  { %1097 = vrot.lane.b32.xlu1 %v1092_v47, %s3292_s27  ;;  %1109 = vrot.lane.b32.xlu0 %v1105_v49, %s3292_s27  ;;  %v1134_v47 = vmul.f32 %v1132_v6, %v3860_v36  ;;  %v1147_v49 = vmul.f32 %v1146_v33, %v3723_v51  ;;  %v1148_v6 = vmul.f32 %v1146_v33, %v3734_v61 }
 0x195   :  { %v3875_v62 = vpop.permute.xlu1 %601  ;;  %v3877_v0 = vpop.permute.xlu0 %613 }
 0x196   :  { %5599 = vst [vmem:[#allocation35_spill] sm:$0xff] %v3875_v62  ;;  %5600 = vst [vmem:[#allocation36_spill] sm:$0xff] %v3877_v0 }
 0x197   :  { %1111 = vrot.lane.b32.xlu1 %v1106_v1, %s3292_s27  ;;  %1123 = vrot.lane.b32.xlu0 %v1119_v5, %s3292_s27  ;;  %v1160_v1 = vstv %s3881_s3  ;;  %s4092_s3 = sld [smem:[#allocation8 + $0x5d]] }
 0x199   :  { %v3885_v24 = vpop.permute.xlu1 %615  ;;  %v3887_v14 = vpop.permute.xlu0 %627 }
 0x19a   :  { %5601 = vst [vmem:[#allocation37_spill] sm:$0xff] %v3885_v24  ;;  %5602 = vst [vmem:[#allocation38_spill] sm:$0xff] %v3887_v14  ;;  %v846_v14 = vstv %s3932_s19  ;;  %v852_v24 = vstv %s3934_s20  ;;  %s4369_s19 = sld [smem:[#allocation8 + $0x75]]  ;;  %s4382_s20 = sld [smem:[#allocation8 + $0x78]] }
 0x19b   :  { %1125 = vrot.lane.b32.xlu1 %v1120_v19, %s3292_s27  ;;  %1137 = vrot.lane.b32.xlu0 %v1133_v57, %s3292_s27  ;;  %v1161_v19 = vmul.f32 %v1160_v1, %v3723_v51  ;;  %v1174_v57 = vstv %s3892_s5  ;;  %v4022_v0 = vmul.f32 %v846_v14, %v3765_v29  ;;  %s4142_s5 = sld [smem:[#allocation8 + $0x3d]] }
 0x19d   :  { %v3896_v35 = vpop.permute.xlu1 %629  ;;  %v3898_v39 = vpop.permute.xlu0 %641  ;;  %5615 = vst [vmem:[#allocation51_spill] sm:$0xff] %v4022_v0  ;;  %v4044_v0 = vmul.f32 %v826_v28, %v3723_v51 }
 0x19e   :  { %5603 = vst [vmem:[#allocation39_spill] sm:$0xff] %v3896_v35  ;;  %5604 = vst [vmem:[#allocation40_spill] sm:$0xff] %v3898_v39  ;;  %v1176_v39 = vmul.f32 %v1174_v57, %v3734_v61  ;;  %v1202_v35 = vstv %s3921_s15  ;;  %s4320_s15 = sld [smem:[#allocation8 + $0x71]] }
 0x19f   :  { %1139 = vrot.lane.b32.xlu1 %v1134_v47, %s3292_s27  ;;  %1151 = vrot.lane.b32.xlu0 %v1147_v49, %s3293_s8  ;;  %v1162_v49 = vmul.f32 %v1160_v1, %v3734_v61  ;;  %5618 = vst [vmem:[#allocation54_spill] sm:$0xff] %v4044_v0 }
 0x1a1   :  { %v3915_v53 = vpop.permute.xlu1 %643  ;;  %v3917_v5 = vpop.permute.xlu0 %655 }
 0x1a2   :  { %5605 = vst [vmem:[#allocation41_spill] sm:$0xff] %v3915_v53  ;;  %v1175_v53 = vmul.f32 %v1174_v57, %v3723_v51  ;;  %v1230_v57 = vstv %s3926_s17  ;;  %s3031_s17 = sld [smem:[#allocation8 + $0x73]] }
 0x1a3   :  { %1153 = vrot.lane.b32.xlu1 %v1148_v6, %s3293_s8  ;;  %1165 = vrot.lane.b32.xlu0 %v1161_v19, %s3293_s8  ;;  %v1188_v6 = vstv %s3903_s10  ;;  %s4175_s10 = sld [smem:[#allocation8 + $0x5e]] }
 0x1a5   :  { %v3940_v33 = vpop.permute.xlu1 %657  ;;  %v3942_v47 = vpop.permute.xlu0 %669 }
 0x1a6   :  { %5606 = vst [vmem:[#allocation42_spill] sm:$0xff] %v3940_v33  ;;  %5607 = vst [vmem:[#allocation43_spill] sm:$0xff] %v3942_v47  ;;  %v858_v47 = vstv %s3936_s21  ;;  %s4395_s21 = sld [smem:[#allocation8 + $0x76]] }
 0x1a7   :  { %1167 = vrot.lane.b32.xlu1 %v1162_v49, %s3293_s8  ;;  %1179 = vrot.lane.b32.xlu0 %v1175_v53, %s3293_s8  ;;  %v1189_v49 = vmul.f32 %v1188_v6, %v3723_v51  ;;  %v820_v53 = vstv %s3907_s11  ;;  %v4070_v0 = vmul.f32 %v858_v47, %v3765_v29  ;;  %s4198_s11 = sld [smem:[#allocation8 + $0x3e]] }
 0x1a9   :  { %v3963_v1 = vpop.permute.xlu1 %671  ;;  %v3965_v19 = vpop.permute.xlu0 %683  ;;  %5621 = vst [vmem:[#allocation57_spill] sm:$0xff] %v4070_v0  ;;  %v382_v0 = vadd.f32 %v3707_v30, %v3596_v15 }
 0x1aa   :  { %5608 = vst [vmem:[#allocation44_spill] sm:$0xff] %v3963_v1  ;;  %5609 = vst [vmem:[#allocation45_spill] sm:$0xff] %v3965_v19  ;;  %v1216_v1 = vstv %s3923_s16  ;;  %v1258_v19 = vstv %s3946_s24  ;;  %s3030_s16 = sld [smem:[#allocation8 + $0x72]]  ;;  %s4421_s24 = sld [smem:[#allocation8 + $0x7c]] }
 0x1ab   :  { %1181 = vrot.lane.b32.xlu1 %v1176_v39, %s3293_s8  ;;  %1193 = vrot.lane.b32.xlu0 %v1189_v49, %s3293_s8  ;;  %v1190_v39 = vmul.f32 %v1188_v6, %v3734_v61  ;;  %v1203_v49 = vmul.f32 %v1202_v35, %v3765_v29  ;;  %v1217_v6 = vmul.f32 %v1216_v1, %v3765_v29 }
 0x1ac   :  { %v1218_v13 = vmul.f32 %v1216_v1, %v3776_v20  ;;  %v4019_v1 = vmul.f32 %v820_v53, %v3723_v51 }
 0x1ad   :  { %v3983_v56 = vpop.permute.xlu1 %685  ;;  %v3985_v45 = vpop.permute.xlu0 %697 }
 0x1ae   :  { %5610 = vst [vmem:[#allocation46_spill] sm:$0xff] %v3983_v56  ;;  %5611 = vst [vmem:[#allocation47_spill] sm:$0xff] %v3985_v45  ;;  %v1204_v45 = vmul.f32 %v1202_v35, %v3776_v20  ;;  %v4013_v56 = vmul.f32 %v1244_v26, %v3776_v20  ;;  %v4016_v35 = vmul.f32 %v1258_v19, %v3807_v41 }
 0x1af   :  { %1195 = vrot.lane.b32.xlu1 %v1190_v39, %s3293_s8  ;;  %1207 = vrot.lane.b32.xlu0 %v1203_v49, %s3293_s8  ;;  %v1231_v39 = vmul.f32 %v1230_v57, %v3765_v29  ;;  %v1232_v49 = vmul.f32 %v1230_v57, %v3776_v20  ;;  %5614 = vst [vmem:[#allocation50_spill] sm:$0xff] %v4019_v1  ;;  %v1314_v1 = vstv %s3977_s0  ;;  %s4488_s0 = sld [smem:[#allocation8 + $0x81]] }
 0x1b0   :  { %v4030_v57 = vmul.f32 %v1272_v11, %v3807_v41  ;;  %v4033_v26 = vmul.f32 %v820_v53, %v3734_v61  ;;  %v4112_v15 = vmul.f32 %v1314_v1, %v3849_v21 }
 0x1b1   :  { %v4005_v33 = vpop.permute.xlu1 %699  ;;  %v4007_v62 = vpop.permute.xlu0 %711 }
 0x1b2   :  { %5612 = vst [vmem:[#allocation48_spill] sm:$0xff] %v4005_v33  ;;  %5613 = vst [vmem:[#allocation49_spill] sm:$0xff] %v4007_v62  ;;  %v4025_v33 = vmul.f32 %v1258_v19, %v3818_v50  ;;  %v4036_v62 = vmul.f32 %v846_v14, %v3776_v20  ;;  %v381_v19 = vadd.f32 %v3699_v40, %v3589_v9 }
 0x1b3   :  { %1209 = vrot.lane.b32.xlu1 %v1204_v45, %s3293_s8  ;;  %1221 = vrot.lane.b32.xlu0 %v1217_v6, %s3293_s8  ;;  %5616 = vst [vmem:[#allocation52_spill] sm:$0xff] %v4033_v26  ;;  %v4047_v45 = vmul.f32 %v852_v24, %v3765_v29  ;;  %v4050_v6 = vmul.f32 %v1272_v11, %v3818_v50 }
 0x1b4   :  { %5617 = vst [vmem:[#allocation53_spill] sm:$0xff] %v4036_v62  ;;  %v4057_v62 = vmul.f32 %v1286_v10, %v3807_v41  ;;  %v4060_v9 = vmul.f32 %v826_v28, %v3734_v61  ;;  %v4063_v40 = vmul.f32 %v852_v24, %v3776_v20  ;;  %v437_v11 = vadd.f32 %v3741_v63, %v381_v19 }
 0x1b5   :  { %5619 = vst [vmem:[#allocation55_spill] sm:$0xff] %v4047_v45  ;;  %v4052_v53 = vpop.permute.xlu1 %713  ;;  %v4054_v14 = vpop.permute.xlu0 %725  ;;  %v4066_v45 = vmul.f32 %v832_v58, %v3723_v51  ;;  %v4073_v26 = vmul.f32 %v1286_v10, %v3818_v50  ;;  %v4081_v28 = vmul.f32 %v832_v58, %v3734_v61  ;;  %v4084_v63 = vmul.f32 %v858_v47, %v3776_v20 }
 0x1b6   :  { %5620 = vst [vmem:[#allocation56_spill] sm:$0xff] %v4057_v62  ;;  %v4076_v62 = vmul.f32 %v1300_v44, %v3807_v41  ;;  %v5622_v24 = vstv %s3913_s6  ;;  %v898_v10 = vstv %s3998_s2  ;;  %v5623_v58 = vstv %s3938_s23  ;;  %s4498_s2 = sld [smem:[#allocation8 + $0x84]] }
 0x1b7   :  { %1223 = vrot.lane.b32.xlu1 %v1218_v13, %s3293_s8  ;;  %1235 = vrot.lane.b32.xlu0 %v1231_v39, %s3293_s8  ;;  %v4089_v19 = vmul.f32 %v5622_v24, %v3723_v51  ;;  %v395_v13 = vadd.f32 %v3709_v43, %v3598_v16  ;;  %v493_v39 = vadd.f32 %v3783_v23, %v437_v11  ;;  %v5625_v16 = vstv %s3913_s6  ;;  %s4289_s6 = sld [smem:[#allocation8 + $0x70]] }
 0x1b8   :  { %v4102_v47 = vmul.f32 %v5623_v58, %v3765_v29  ;;  %v4109_v24 = vmul.f32 %v1300_v44, %v3818_v50  ;;  %v4117_v30 = vmul.f32 %v5625_v16, %v3734_v61  ;;  %v5626_v43 = vstv %s3957_s29  ;;  %s3044_s29 = sld [smem:[#allocation8 + $0x80]] }
 0x1b9   :  { %v4104_v20 = vpop.permute.xlu1 %727  ;;  %v4106_v51 = vpop.permute.xlu0 %739  ;;  %v4122_v23 = vmul.f32 %v5626_v43, %v3807_v41  ;;  %v438_v29 = vadd.f32 %v3749_v59, %v382_v0  ;;  %v451_v11 = vadd.f32 %v3751_v3, %v395_v13  ;;  %v549_v58 = vadd.f32 %v3825_v60, %v493_v39 }
 0x1ba   :  { %5624 = vst [vmem:[#allocation58_spill] sm:$0xff] %v4102_v47  ;;  %v4128_v44 = vmul.f32 %v898_v10, %v3849_v21  ;;  %v396_v47 = vadd.f32 %v3717_v46, %v3602_v17  ;;  %v4135_v61 = vmul.f32 %v1314_v1, %v3860_v36  ;;  %v5627_v16 = vmov %v5626_v43 }
 0x1bb   :  { %1237 = vrot.lane.b32.xlu1 %v1232_v49, %s3293_s8  ;;  %1249 = vrot.lane.b32.xlu0 %v1245_v22, %s3293_s8  ;;  %v4140_v59 = vmul.f32 %v5627_v16, %v3818_v50  ;;  %v890_v3 = vstv %s4039_s4  ;;  %v409_v60 = vadd.f32 %v3719_v48, %v3604_v18  ;;  %v494_v0 = vadd.f32 %v3791_v27, %v438_v29  ;;  %v5634_v29 = vld [vmem:[#allocation30_spill] sm:$0xff]  ;;  %v5635_v16 = vld [vmem:[#allocation31_spill] sm:$0xff]  ;;  %s4509_s4 = sld [smem:[#allocation8 + $0x7f]] }
 0x1bc   :  { %v507_v17 = vadd.f32 %v3793_v32, %v451_v11  ;;  %v605_v46 = vadd.f32 %v3867_v42, %v549_v58  ;;  %v410_v22 = vadd.f32 %v3728_v54, %v3612_v25  ;;  %v423_v49 = vadd.f32 %v3730_v55, %v3615_v31  ;;  %v5629_v42 = vld [vmem:[#allocation36_spill] sm:$0xff] }
 0x1bd   :  { %v452_v1 = vadd.f32 %v3759_v7, %v396_v47  ;;  %v4155_v13 = vpop.permute.xlu1 %741  ;;  %v4157_v39 = vpop.permute.xlu0 %753  ;;  %v4160_v18 = vmul.f32 %v898_v10, %v3860_v36  ;;  %v465_v48 = vadd.f32 %v3761_v8, %v409_v60  ;;  %v550_v27 = vadd.f32 %v3833_v2, %v494_v0  ;;  %v5628_v2 = vld [vmem:[#allocation35_spill] sm:$0xff]  ;;  %v5632_v10 = vld [vmem:[#allocation26_spill] sm:$0xff] }
 0x1be   :  { %v563_v32 = vadd.f32 %v3835_v4, %v507_v17  ;;  %v661_v25 = vadd.f32 %v3917_v5, %v605_v46  ;;  %v424_v31 = vadd.f32 %v3739_v52, %v3620_v34  ;;  %v466_v54 = vadd.f32 %v3770_v12, %v410_v22  ;;  %v5630_v34 = vld [vmem:[#allocation49_spill] sm:$0xff]  ;;  %v5631_v12 = vld [vmem:[#allocation24_spill] sm:$0xff]  ;;  %v5636_v60 = vld [vmem:[#allocation42_spill] sm:$0xff] }
 0x1bf   :  { %v508_v55 = vadd.f32 %v3801_v37, %v452_v1  ;;  %1251 = vrot.lane.b32.xlu1 %v4013_v56, %s3293_s8  ;;  %1263 = vrot.lane.b32.xlu0 %v4016_v35, %s3293_s8  ;;  %v1328_v7 = vstv %s4092_s3  ;;  %v521_v8 = vadd.f32 %v3803_v38, %v465_v48  ;;  %v606_v4 = vadd.f32 %v5628_v2, %v550_v27  ;;  %v5633_v56 = vld [vmem:[#allocation27_spill] sm:$0xff]  ;;  %v5638_v1 = vld [vmem:[#allocation28_spill] sm:$0xff]  ;;  %v5639_v27 = vld [vmem:[#allocation29_spill] sm:$0xff]  ;;  %s4520_s3 = sld [smem:[#allocation8 + $0x82]] }
 0x1c0   :  { %v619_v5 = vadd.f32 %v5629_v42, %v563_v32  ;;  %v717_v52 = vadd.f32 %v5630_v34, %v661_v25  ;;  %v479_v37 = vadd.f32 %v5631_v12, %v423_v49  ;;  %v480_v47 = vadd.f32 %v5632_v10, %v424_v31  ;;  %v5637_v17 = vld [vmem:[#allocation43_spill] sm:$0xff]  ;;  %v5640_v32 = vld [vmem:[#allocation37_spill] sm:$0xff]  ;;  %v5646_v10 = vld [vmem:[#allocation44_spill] sm:$0xff] }
 0x1c1   :  { %v522_v43 = vadd.f32 %v5633_v56, %v466_v54  ;;  %v564_v35 = vadd.f32 %v5634_v29, %v508_v55  ;;  %v4185_v11 = vpop.permute.xlu1 %755  ;;  %v768_v58 = vpop.permute.xlu0 %767  ;;  %v577_v38 = vadd.f32 %v5635_v16, %v521_v8  ;;  %v662_v0 = vadd.f32 %v5636_v60, %v606_v4  ;;  %v5641_v54 = vld [vmem:[#allocation38_spill] sm:$0xff]  ;;  %v5647_v29 = vld [vmem:[#allocation45_spill] sm:$0xff] }
 0x1c2   :  { %v675_v46 = vadd.f32 %v5637_v17, %v619_v5  ;;  %v773_v22 = vadd.f32 %v768_v58, %v717_v52  ;;  %v535_v48 = vadd.f32 %v5638_v1, %v479_v37  ;;  %v536_v49 = vadd.f32 %v5639_v27, %v480_v47  ;;  %v5642_v4 = vld [vmem:[#allocation50_spill] sm:$0xff]  ;;  %v5643_v5 = vld [vmem:[#allocation32_spill] sm:$0xff]  ;;  %v5644_v52 = vld [vmem:[#allocation33_spill] sm:$0xff] }
 0x1c3   :  { %v620_v25 = vadd.f32 %v5640_v32, %v564_v35  ;;  %1265 = vrot.lane.b32.xlu1 %v4025_v33, %s3293_s8  ;;  %1277 = vrot.lane.b32.xlu0 %v4030_v57, %s3293_s8  ;;  %v904_v31 = vstv %s4142_s5  ;;  %v633_v55 = vadd.f32 %v5641_v54, %v577_v38  ;;  %v718_v8 = vadd.f32 %v4052_v53, %v662_v0  ;;  %v5645_v33 = vld [vmem:[#allocation34_spill] sm:$0xff]  ;;  %v5648_v58 = vld [vmem:[#allocation51_spill] sm:$0xff]  ;;  %v5650_v0 = vld [vmem:[#allocation40_spill] sm:$0xff]  ;;  %s4524_s5 = sld [smem:[#allocation8 + $0x83]] }
 0x1c4   :  { %v731_v2 = vadd.f32 %v4054_v14, %v675_v46  ;;  %v823_v42 = vadd.f32 %v5642_v4, %v773_v22  ;;  %v578_v34 = vadd.f32 %v5643_v5, %v522_v43  ;;  %v591_v12 = vadd.f32 %v5644_v52, %v535_v48  ;;  %v5649_v14 = vld [vmem:[#allocation39_spill] sm:$0xff]  ;;  %v5651_v46 = vld [vmem:[#allocation56_spill] sm:$0xff]  ;;  %v5654_v54 = vld [vmem:[#allocation41_spill] sm:$0xff] }
 0x1c5   :  { %v592_v37 = vadd.f32 %v5645_v33, %v536_v49  ;;  %v676_v57 = vadd.f32 %v5646_v10, %v620_v25  ;;  %v770_v47 = vpop.permute.xlu1 %769  ;;  %v782_v56 = vpop.permute.xlu0 %781  ;;  %v689_v35 = vadd.f32 %v5647_v29, %v633_v55  ;;  %v1342_v22 = vstv %s4175_s10  ;;  %v5652_v48 = vld [vmem:[#allocation52_spill] sm:$0xff]  ;;  %v5653_v49 = vld [vmem:[#allocation54_spill] sm:$0xff]  ;;  %v5658_v52 = vld [vmem:[#allocation53_spill] sm:$0xff]  ;;  %s4526_s10 = sld [smem:[#allocation8 + $0x60]] }
 0x1c6   :  { %v849_v16 = vadd.f32 %v5648_v58, %v823_v42  ;;  %v774_v53 = vadd.f32 %v770_v47, %v718_v8  ;;  %v787_v38 = vadd.f32 %v782_v56, %v731_v2  ;;  %v634_v60 = vadd.f32 %v5649_v14, %v578_v34  ;;  %v5655_v55 = vld [vmem:[#allocation46_spill] sm:$0xff] }
 0x1c7   :  { %v647_v17 = vadd.f32 %v5650_v0, %v591_v12  ;;  %v732_v43 = vadd.f32 %v4104_v20, %v676_v57  ;;  %1279 = vrot.lane.b32.xlu1 %v4050_v6, %s3293_s8  ;;  %1291 = vrot.lane.b32.xlu0 %v5651_v46, %s3293_s8  ;;  %v745_v1 = vadd.f32 %v4106_v51, %v689_v35  ;;  %v5656_v6 = vld [vmem:[#allocation47_spill] sm:$0xff]  ;;  %v5657_v5 = vstv %s3959_s30  ;;  %s3039_s30 = sld [smem:[#allocation8 + $0x7b]] }
 0x1c8   :  { %v824_v27 = vadd.f32 %v5652_v48, %v774_v53  ;;  %v829_v32 = vadd.f32 %v5653_v49, %v787_v38  ;;  %v875_v25 = vadd.f32 %v4122_v23, %v849_v16  ;;  %v648_v20 = vadd.f32 %v5654_v54, %v592_v37  ;;  %v5659_v12 = vld [vmem:[#allocation55_spill] sm:$0xff] }
 0x1c9   :  { %v690_v8 = vadd.f32 %v5655_v55, %v634_v60  ;;  %v703_v2 = vadd.f32 %v5656_v6, %v647_v17  ;;  %v784_v4 = vpop.permute.xlu1 %783  ;;  %v796_v42 = vpop.permute.xlu0 %795  ;;  %v879_v34 = vmul.f32 %v5657_v5, %v3807_v41  ;;  %v910_v56 = vstv %s4198_s11  ;;  %v5665_v55 = vld [vmem:[#allocation58_spill] sm:$0xff]  ;;  %s4528_s11 = sld [smem:[#allocation8 + $0x61]] }
 0x1ca   :  { %v850_v51 = vadd.f32 %v5658_v52, %v824_v27  ;;  %v855_v33 = vadd.f32 %v5659_v12, %v829_v32  ;;  %v788_v10 = vadd.f32 %v784_v4, %v732_v43  ;;  %v801_v23 = vadd.f32 %v796_v42, %v745_v1 }
 0x1cb   :  { %v746_v37 = vadd.f32 %v4155_v13, %v690_v8  ;;  %v759_v57 = vadd.f32 %v4157_v39, %v703_v2  ;;  %1293 = vrot.lane.b32.xlu1 %v4073_v26, %s3293_s8  ;;  %1305 = vrot.lane.b32.xlu0 %v4076_v62, %s3293_s8  ;;  %v4239_v47 = vadd.f32 %v4128_v44, %v875_v25  ;;  %v5660_v13 = vld [vmem:[#allocation48_spill] sm:$0xff]  ;;  %v5662_v14 = vstv %s3961_s9  ;;  %v5666_v2 = vld [vmem:[#allocation25_spill] sm:$0xff]  ;;  %s3042_s9 = sld [smem:[#allocation8 + $0x7e]] }
 0x1cc   :  { %v830_v29 = vadd.f32 %v4060_v9, %v788_v10  ;;  %v835_v35 = vadd.f32 %v4066_v45, %v801_v23  ;;  %v876_v58 = vadd.f32 %v4140_v59, %v850_v51  ;;  %v881_v16 = vadd.f32 %v879_v34, %v855_v33  ;;  %v5663_v45 = vld [vmem:[#allocation57_spill] sm:$0xff] }
 0x1cd   :  { %v704_v53 = vadd.f32 %v5660_v13, %v648_v20  ;;  %v798_v39 = vpop.permute.xlu1 %797  ;;  %v810_v38 = vpop.permute.xlu0 %809  ;;  %v905_v26 = vmul.f32 %v904_v31, %v3849_v21  ;;  %v5661_v62 = vmov %v5657_v5  ;;  %v885_v60 = vmul.f32 %v5662_v14, %v3807_v41 }
 0x1ce   :  { %v880_v44 = vmul.f32 %v5661_v62, %v3818_v50  ;;  %v856_v9 = vadd.f32 %v4063_v40, %v830_v29  ;;  %v861_v0 = vadd.f32 %v5663_v45, %v835_v35  ;;  %v802_v59 = vadd.f32 %v798_v39, %v746_v37  ;;  %v4348_v62 = vld [vmem:[#allocation2 + $0xa] sm:$0xff] }
 0x1cf   :  { %v815_v17 = vadd.f32 %v810_v38, %v759_v57  ;;  %v760_v43 = vadd.f32 %v4185_v11, %v704_v53  ;;  %1307 = vrot.lane.b32.xlu1 %v4109_v24, %s3293_s8  ;;  %1319 = vrot.lane.b32.xlu0 %v4112_v15, %s3293_s8  ;;  %v4265_v46 = vadd.f32 %v4160_v18, %v876_v58  ;;  %v916_v1 = vstv %s4218_s12  ;;  %s4530_s12 = sld [smem:[#allocation8 + $0x62]] }
 0x1d0   :  { %v4267_v40 = vadd.f32 %v905_v26, %v881_v16  ;;  %v836_v48 = vadd.f32 %v4081_v28, %v802_v59  ;;  %v882_v49 = vadd.f32 %v880_v44, %v856_v9  ;;  %v887_v11 = vadd.f32 %v885_v60, %v861_v0 }
 0x1d1   :  { %v841_v27 = vadd.f32 %v4089_v19, %v815_v17  ;;  %v812_v32 = vpop.permute.xlu1 %811  ;;  %v4272_v25 = vpop.permute.xlu0 %927  ;;  %v1329_v24 = vmul.f32 %v1328_v7, %v3849_v21  ;;  %v906_v15 = vmul.f32 %v904_v31, %v3860_v36  ;;  %v911_v18 = vmul.f32 %v910_v56, %v3849_v21 }
 0x1d2   :  { %v5664_v54 = vmov %v5662_v14  ;;  %v862_v28 = vadd.f32 %v4084_v63, %v836_v48  ;;  %v816_v8 = vadd.f32 %v812_v32, %v760_v43  ;;  %v891_v6 = vmul.f32 %v890_v3, %v3807_v41 }
 0x1d3   :  { %v886_v20 = vmul.f32 %v5664_v54, %v3818_v50  ;;  %v867_v19 = vadd.f32 %v5665_v55, %v841_v27  ;;  %v5667_v4 = vstv %s3938_s23  ;;  %1321 = vrot.lane.b32.xlu1 %v4135_v61, %s3293_s8  ;;  %1333 = vrot.lane.b32.xlu0 %v1329_v24, %s3293_s8  ;;  %v4297_v63 = vadd.f32 %v906_v15, %v882_v49  ;;  %s4408_s23 = sld [smem:[#allocation8 + $0x79]] }
 0x1d4   :  { %v866_v31 = vmul.f32 %v5667_v4, %v5666_v2  ;;  %v4299_v42 = vadd.f32 %v911_v18, %v887_v11  ;;  %v842_v5 = vadd.f32 %v4117_v30, %v816_v8  ;;  %v912_v41 = vmul.f32 %v910_v56, %v3860_v36  ;;  %v4379_v11 = vld [vmem:[#allocation2 + $0x1a] sm:$0xff]  ;;  %v4405_v2 = vld [vmem:[#allocation2 + $0x32] sm:$0xff] }
 0x1d5   :  { %v888_v34 = vadd.f32 %v886_v20, %v862_v28  ;;  %v893_v52 = vadd.f32 %v891_v6, %v867_v19  ;;  %v4303_v51 = vpop.permute.xlu1 %929  ;;  %v4305_v12 = vpop.permute.xlu0 %941  ;;  %v1330_v61 = vmul.f32 %v1328_v7, %v3860_v36  ;;  %v1343_v33 = vmul.f32 %v1342_v22, %v3849_v21  ;;  %v4392_v20 = vld [vmem:[#allocation2 + $0x22] sm:$0xff] }
 0x1d6   :  { %v917_v10 = vmul.f32 %v916_v1, %v3849_v21  ;;  %v868_v23 = vadd.f32 %v866_v31, %v842_v5  ;;  %v1356_v30 = vstv %s4257_s13  ;;  %v892_v57 = vmul.f32 %v890_v3, %v3818_v50  ;;  %v4335_v3 = vld [vmem:[#allocation2 + $0x2] sm:$0xff]  ;;  %5669 = vst [vmem:[#allocation36_spill] sm:$0xff] %v4392_v20  ;;  %s4538_s13 = sld [smem:[#allocation8 + $0x85]] }
 0x1d7   :  { %v4315_v37 = vadd.f32 %v912_v41, %v888_v34  ;;  %1335 = vrot.lane.b32.xlu1 %v1330_v61, %s3293_s8  ;;  %1347 = vrot.lane.b32.xlu0 %v1343_v33, %s3293_s8  ;;  %v918_v56 = vmul.f32 %v916_v1, %v3860_v36  ;;  %v1344_v16 = vmul.f32 %v1342_v22, %v3860_v36  ;;  %v1474_v13 = vstv %s4289_s6  ;;  %s4540_s6 = sld [smem:[#allocation8 + $0x63]] }
 0x1d8   :  { %v4324_v7 = vadd.f32 %v917_v10, %v893_v52  ;;  %v894_v29 = vadd.f32 %v892_v57, %v868_v23  ;;  %v1357_v50 = vmul.f32 %v1356_v30, %v3849_v21  ;;  %v1358_v26 = vmul.f32 %v1356_v30, %v3860_v36  ;;  %v4418_v52 = vld [vmem:[#allocation2 + $0x3a] sm:$0xff] }
 0x1d9   :  { %v4327_v35 = vpop.permute.xlu1 %943  ;;  %v4329_v58 = vpop.permute.xlu0 %955  ;;  %v1475_v22 = vmul.f32 %v1474_v13, %v4335_v3  ;;  %v1488_v21 = vstv %s4320_s15  ;;  %v1476_v60 = vmul.f32 %v1474_v13, %v4348_v62  ;;  %v1502_v45 = vstv %s3030_s16  ;;  %v4442_v13 = vld [vmem:[#allocation2 + $0x4a] sm:$0xff]  ;;  %s4543_s15 = sld [smem:[#allocation8 + $0x86]]  ;;  %s4545_s16 = sld [smem:[#allocation8 + $0x64]] }
 0x1da   :  { %v4338_v53 = vadd.f32 %v918_v56, %v894_v29  ;;  %v1489_v9 = vmul.f32 %v1488_v21, %v4335_v3  ;;  %v1490_v59 = vmul.f32 %v1488_v21, %v4348_v62  ;;  %v1503_v17 = vmul.f32 %v1502_v45, %v4335_v3 }
 0x1db   :  { %1349 = vrot.lane.b32.xlu1 %v1344_v16, %s3293_s8  ;;  %1361 = vrot.lane.b32.xlu0 %v1357_v50, %s3293_s8  ;;  %v1516_v43 = vstv %s3031_s17  ;;  %v1504_v27 = vmul.f32 %v1502_v45, %v4348_v62  ;;  %v1530_v32 = vstv %s4359_s18  ;;  %v4453_v45 = vld [vmem:[#allocation2 + $0x52] sm:$0xff]  ;;  %s4549_s17 = sld [smem:[#allocation8 + $0x65]]  ;;  %s4551_s18 = sld [smem:[#allocation8 + $0x87]] }
 0x1dc   :  { %v1517_v49 = vmul.f32 %v1516_v43, %v4335_v3  ;;  %v1518_v18 = vmul.f32 %v1516_v43, %v4348_v62  ;;  %v1531_v54 = vmul.f32 %v1530_v32, %v4379_v11  ;;  %v1544_v28 = vstv %s4369_s19  ;;  %s4553_s19 = sld [smem:[#allocation8 + $0x66]] }
 0x1dd   :  { %v4342_v39 = vpop.permute.xlu1 %957  ;;  %v4344_v38 = vpop.permute.xlu0 %969  ;;  %v1532_v8 = vmul.f32 %v1530_v32, %v4392_v20  ;;  %v1545_v6 = vmul.f32 %v1544_v28, %v4379_v11  ;;  %v1586_v4 = vstv %s4382_s20  ;;  %v1546_v41 = vmul.f32 %v1544_v28, %v4392_v20  ;;  %s4555_s20 = sld [smem:[#allocation8 + $0x67]] }
 0x1de   :  { %v1587_v34 = vmul.f32 %v1586_v4, %v4405_v2  ;;  %v1558_v61 = vstv %s4395_s21  ;;  %v1588_v23 = vmul.f32 %v1586_v4, %v4418_v52  ;;  %v1600_v57 = vstv %s4408_s23  ;;  %s4563_s21 = sld [smem:[#allocation8 + $0x88]]  ;;  %s4565_s23 = sld [smem:[#allocation8 + $0x89]] }
 0x1df   :  { %1363 = vrot.lane.b32.xlu1 %v1358_v26, %s3293_s8  ;;  %1479 = vrot.lane.b32.xlu0 %v1475_v22, %s3292_s27  ;;  %v1559_v30 = vmul.f32 %v1558_v61, %v4379_v11  ;;  %v1560_v16 = vmul.f32 %v1558_v61, %v4392_v20  ;;  %v1601_v50 = vmul.f32 %v1600_v57, %v4405_v2  ;;  %v1642_v26 = vstv %s4421_s24  ;;  %s4568_s24 = sld [smem:[#allocation8 + $0x8a]] }
 0x1e0   :  { %v1614_v32 = vstv %s3038_s26  ;;  %s4574_s26 = sld [smem:[#allocation8 + $0x8b]] }
 0x1e1   :  { %v4353_v44 = vpop.permute.xlu1 %971  ;;  %v4355_v14 = vpop.permute.xlu0 %983 }
 0x1e3   :  { %1481 = vrot.lane.b32.xlu1 %v1476_v60, %s3292_s27  ;;  %1493 = vrot.lane.b32.xlu0 %v1489_v9, %s3292_s27  ;;  %v1602_v60 = vmul.f32 %v1600_v57, %v4418_v52  ;;  %v1643_v9 = vmul.f32 %v1642_v26, %v4442_v13 }
 0x1e5   :  { %v4363_v36 = vpop.permute.xlu1 %985  ;;  %v4365_v0 = vpop.permute.xlu0 %997 }
 0x1e7   :  { %1495 = vrot.lane.b32.xlu1 %v1490_v59, %s3292_s27  ;;  %1507 = vrot.lane.b32.xlu0 %v1503_v17, %s3292_s27  ;;  %v1572_v59 = vstv %s4432_s25  ;;  %s4570_s25 = sld [smem:[#allocation8 + $0x68]] }
 0x1e8   :  { %v1574_v28 = vmul.f32 %v1572_v59, %v4392_v20 }
 0x1e9   :  { %v4373_v1 = vpop.permute.xlu1 %999  ;;  %v4375_v48 = vpop.permute.xlu0 %1011 }
 0x1eb   :  { %1509 = vrot.lane.b32.xlu1 %v1504_v27, %s3292_s27  ;;  %1521 = vrot.lane.b32.xlu0 %v1517_v49, %s3292_s27  ;;  %v1644_v27 = vmul.f32 %v1642_v26, %v4453_v45  ;;  %v1573_v49 = vmul.f32 %v1572_v59, %v4379_v11  ;;  %v1628_v26 = vstv %s3039_s30  ;;  %s4594_s30 = sld [smem:[#allocation8 + $0x8d]] }
 0x1ed   :  { %v4386_v24 = vpop.permute.xlu1 %1013  ;;  %v4388_v15 = vpop.permute.xlu0 %1025 }
 0x1ee   :  { %5668 = vst [vmem:[#allocation35_spill] sm:$0xff] %v4388_v15 }
 0x1ef   :  { %1523 = vrot.lane.b32.xlu1 %v1518_v18, %s3292_s27  ;;  %1535 = vrot.lane.b32.xlu0 %v1531_v54, %s3292_s27 }
 0x1f1   :  { %v4399_v55 = vpop.permute.xlu1 %1027  ;;  %v4401_v19 = vpop.permute.xlu0 %1039 }
 0x1f2   :  { %5670 = vst [vmem:[#allocation49_spill] sm:$0xff] %v4399_v55 }
 0x1f3   :  { %1537 = vrot.lane.b32.xlu1 %v1532_v8, %s3292_s27  ;;  %1549 = vrot.lane.b32.xlu0 %v1545_v6, %s3292_s27  ;;  %v1615_v8 = vmul.f32 %v1614_v32, %v4405_v2  ;;  %v1656_v6 = vstv %s3041_s28  ;;  %s4576_s28 = sld [smem:[#allocation8 + $0x69]] }
 0x1f4   :  { %v1657_v61 = vmul.f32 %v1656_v6, %v4442_v13 }
 0x1f5   :  { %v4412_v31 = vpop.permute.xlu1 %1041  ;;  %v4414_v5 = vpop.permute.xlu0 %1053 }
 0x1f7   :  { %1551 = vrot.lane.b32.xlu1 %v1546_v41, %s3292_s27  ;;  %1591 = vrot.lane.b32.xlu0 %v1587_v34, %s3292_s27  ;;  %v1616_v34 = vmul.f32 %v1614_v32, %v4418_v52 }
 0x1f9   :  { %v4425_v33 = vpop.permute.xlu1 %1055  ;;  %v4427_v10 = vpop.permute.xlu0 %1067 }
 0x1fb   :  { %1593 = vrot.lane.b32.xlu1 %v1588_v23, %s3292_s27  ;;  %1563 = vrot.lane.b32.xlu0 %v1559_v30, %s3292_s27  ;;  %v1698_v23 = vstv %s3044_s29  ;;  %s4578_s29 = sld [smem:[#allocation8 + $0x8c]] }
 0x1fc   :  { %v1700_v59 = vmul.f32 %v1698_v23, %v4348_v62 }
 0x1fd   :  { %v4436_v56 = vpop.permute.xlu1 %1069  ;;  %v4438_v29 = vpop.permute.xlu0 %1081 }
 0x1fe   :  { %5671 = vst [vmem:[#allocation24_spill] sm:$0xff] %v4436_v56  ;;  %5672 = vst [vmem:[#allocation26_spill] sm:$0xff] %v4438_v29 }
 0x1ff   :  { %1565 = vrot.lane.b32.xlu1 %v1560_v16, %s3292_s27  ;;  %1605 = vrot.lane.b32.xlu0 %v1601_v50, %s3292_s27  ;;  %v1658_v16 = vmul.f32 %v1656_v6, %v4453_v45  ;;  %v1699_v50 = vmul.f32 %v1698_v23, %v4335_v3 }
 0x201   :  { %v4447_v22 = vpop.permute.xlu1 %1083  ;;  %v4449_v21 = vpop.permute.xlu0 %1095 }
 0x202   :  { %5673 = vst [vmem:[#allocation27_spill] sm:$0xff] %v4447_v22 }
 0x203   :  { %1607 = vrot.lane.b32.xlu1 %v1602_v60, %s3292_s27  ;;  %1647 = vrot.lane.b32.xlu0 %v1643_v9, %s3292_s27 }
 0x205   :  { %v4458_v17 = vpop.permute.xlu1 %1097  ;;  %v4460_v43 = vpop.permute.xlu0 %1109 }
 0x207   :  { %1649 = vrot.lane.b32.xlu1 %v1644_v27, %s3292_s27  ;;  %1577 = vrot.lane.b32.xlu0 %v1573_v49, %s3292_s27  ;;  %v1629_v27 = vmul.f32 %v1628_v26, %v4405_v2  ;;  %v1670_v49 = vstv %s3042_s9  ;;  %s4614_s9 = sld [smem:[#allocation8 + $0x6c]] }
 0x208   :  { %v1671_v6 = vmul.f32 %v1670_v49, %v4442_v13 }
 0x209   :  { %v4466_v18 = vpop.permute.xlu1 %1111  ;;  %v4468_v54 = vpop.permute.xlu0 %1123 }
 0x20a   :  { %5674 = vst [vmem:[#allocation30_spill] sm:$0xff] %v4466_v18  ;;  %5675 = vst [vmem:[#allocation31_spill] sm:$0xff] %v4468_v54  ;;  %v1838_v54 = vstv %s4568_s24  ;;  %s5111_s24 = sld [smem:[#allocation12 + $0xb]] }
 0x20b   :  { %1579 = vrot.lane.b32.xlu1 %v1574_v28, %s3292_s27  ;;  %1619 = vrot.lane.b32.xlu0 %v1615_v8, %s3292_s27  ;;  %v1630_v8 = vmul.f32 %v1628_v26, %v4418_v52 }
 0x20d   :  { %v4474_v4 = vpop.permute.xlu1 %1125  ;;  %v4476_v41 = vpop.permute.xlu0 %1137 }
 0x20e   :  { %5676 = vst [vmem:[#allocation42_spill] sm:$0xff] %v4474_v4  ;;  %5677 = vst [vmem:[#allocation43_spill] sm:$0xff] %v4476_v41  ;;  %v1378_v41 = vstv %s4528_s11  ;;  %v1398_v4 = vstv %s4545_s16  ;;  %s4874_s11 = sld [smem:[#allocation8 + $0x8f]]  ;;  %s3071_s16 = sld [smem:[#allocation12 + $0x8]] }
 0x20f   :  { %1621 = vrot.lane.b32.xlu1 %v1616_v34, %s3292_s27  ;;  %1661 = vrot.lane.b32.xlu0 %v1657_v61, %s3292_s27  ;;  %v1712_v34 = vstv %s4488_s0  ;;  %v4639_v55 = vmul.f32 %v1398_v4, %v4379_v11  ;;  %s4656_s0 = sld [smem:[#allocation8 + $0x6a]] }
 0x211   :  { %v4482_v30 = vpop.permute.xlu1 %1139  ;;  %v4484_v57 = vpop.permute.xlu0 %1151  ;;  %5695 = vst [vmem:[#allocation46_spill] sm:$0xff] %v4639_v55  ;;  %v4661_v55 = vmul.f32 %v1378_v41, %v4335_v3 }
 0x212   :  { %5678 = vst [vmem:[#allocation28_spill] sm:$0xff] %v4482_v30  ;;  %v1372_v30 = vstv %s4526_s10  ;;  %s4835_s10 = sld [smem:[#allocation8 + $0x6f]] }
 0x213   :  { %1663 = vrot.lane.b32.xlu1 %v1658_v16, %s3292_s27  ;;  %1703 = vrot.lane.b32.xlu0 %v1699_v50, %s3293_s8  ;;  %v1672_v16 = vmul.f32 %v1670_v49, %v4453_v45  ;;  %v1713_v50 = vmul.f32 %v1712_v34, %v4335_v3  ;;  %v1714_v49 = vmul.f32 %v1712_v34, %v4348_v62 }
 0x214   :  { %5698 = vst [vmem:[#allocation55_spill] sm:$0xff] %v4661_v55 }
 0x215   :  { %v4492_v60 = vpop.permute.xlu1 %1153  ;;  %v4494_v9 = vpop.permute.xlu0 %1165 }
 0x216   :  { %5679 = vst [vmem:[#allocation29_spill] sm:$0xff] %v4492_v60  ;;  %5680 = vst [vmem:[#allocation37_spill] sm:$0xff] %v4494_v9  ;;  %v1866_v9 = vstv %s4578_s29  ;;  %s5136_s29 = sld [smem:[#allocation12 + $0x5]] }
 0x217   :  { %1705 = vrot.lane.b32.xlu1 %v1700_v59, %s3293_s8  ;;  %1633 = vrot.lane.b32.xlu0 %v1629_v27, %s3292_s27  ;;  %v1754_v59 = vstv %s4498_s2  ;;  %s4709_s2 = sld [smem:[#allocation8 + $0x6b]] }
 0x219   :  { %v4502_v32 = vpop.permute.xlu1 %1167  ;;  %v4504_v28 = vpop.permute.xlu0 %1179 }
 0x21a   :  { %5681 = vst [vmem:[#allocation38_spill] sm:$0xff] %v4502_v32  ;;  %5682 = vst [vmem:[#allocation50_spill] sm:$0xff] %v4504_v28  ;;  %v1404_v28 = vstv %s4549_s17  ;;  %v1796_v32 = vstv %s4551_s18  ;;  %s3072_s17 = sld [smem:[#allocation12 + $0x9]]  ;;  %s5093_s18 = sld [smem:[#allocation12]] }
 0x21b   :  { %1635 = vrot.lane.b32.xlu1 %v1630_v8, %s3292_s27  ;;  %1675 = vrot.lane.b32.xlu0 %v1671_v6, %s3292_s27  ;;  %v1755_v8 = vmul.f32 %v1754_v59, %v4379_v11  ;;  %v1684_v6 = vstv %s4509_s4  ;;  %s4759_s4 = sld [smem:[#allocation8 + $0x6d]] }
 0x21d   :  { %v4513_v61 = vpop.permute.xlu1 %1181  ;;  %v4515_v23 = vpop.permute.xlu0 %1193 }
 0x21e   :  { %5683 = vst [vmem:[#allocation32_spill] sm:$0xff] %v4513_v61  ;;  %5684 = vst [vmem:[#allocation33_spill] sm:$0xff] %v4515_v23  ;;  %v1686_v23 = vmul.f32 %v1684_v6, %v4453_v45  ;;  %v1768_v61 = vstv %s4538_s13  ;;  %s5023_s13 = sld [smem:[#allocation11 + $0x1]] }
 0x21f   :  { %1677 = vrot.lane.b32.xlu1 %v1672_v16, %s3292_s27  ;;  %1717 = vrot.lane.b32.xlu0 %v1713_v50, %s3293_s8  ;;  %v1756_v50 = vmul.f32 %v1754_v59, %v4392_v20 }
 0x221   :  { %v4532_v26 = vpop.permute.xlu1 %1195  ;;  %v4534_v27 = vpop.permute.xlu0 %1207 }
 0x222   :  { %5685 = vst [vmem:[#allocation34_spill] sm:$0xff] %v4532_v26  ;;  %v1685_v26 = vmul.f32 %v1684_v6, %v4442_v13  ;;  %v1782_v6 = vstv %s4543_s15  ;;  %s5057_s15 = sld [smem:[#allocation11 + $0x3]] }
 0x223   :  { %1719 = vrot.lane.b32.xlu1 %v1714_v49, %s3293_s8  ;;  %1759 = vrot.lane.b32.xlu0 %v1755_v8, %s3293_s8  ;;  %v1726_v49 = vstv %s4520_s3  ;;  %v1783_v56 = vmul.f32 %v1782_v6, %v4379_v11  ;;  %s4791_s3 = sld [smem:[#allocation8 + $0x8e]] }
 0x225   :  { %v4557_v34 = vpop.permute.xlu1 %1209  ;;  %v4559_v16 = vpop.permute.xlu0 %1221 }
 0x226   :  { %5686 = vst [vmem:[#allocation44_spill] sm:$0xff] %v4557_v34  ;;  %5687 = vst [vmem:[#allocation45_spill] sm:$0xff] %v4559_v16  ;;  %v1810_v16 = vstv %s4563_s21  ;;  %v1410_v34 = vstv %s4553_s19  ;;  %s5095_s19 = sld [smem:[#allocation12 + $0xa]]  ;;  %s5104_s21 = sld [smem:[#allocation12 + $0x3]] }
 0x227   :  { %1761 = vrot.lane.b32.xlu1 %v1756_v50, %s3293_s8  ;;  %1689 = vrot.lane.b32.xlu0 %v1685_v26, %s3292_s27  ;;  %v1727_v50 = vmul.f32 %v1726_v49, %v4335_v3  ;;  %v1740_v26 = vstv %s4524_s5  ;;  %v1812_v15 = vmul.f32 %v1810_v16, %v4418_v52  ;;  %v4687_v55 = vmul.f32 %v1410_v34, %v4379_v11  ;;  %s4815_s5 = sld [smem:[#allocation8 + $0x6e]] }
 0x229   :  { %v4580_v59 = vpop.permute.xlu1 %1223  ;;  %v4582_v8 = vpop.permute.xlu0 %1235  ;;  %5701 = vst [vmem:[#allocation58_spill] sm:$0xff] %v4687_v55  ;;  %v934_v55 = vadd.f32 %v4303_v51, %v4265_v46 }
 0x22a   :  { %5688 = vst [vmem:[#allocation51_spill] sm:$0xff] %v4580_v59  ;;  %5689 = vst [vmem:[#allocation39_spill] sm:$0xff] %v4582_v8  ;;  %v1384_v59 = vstv %s4530_s12  ;;  %v1824_v8 = vstv %s4565_s23  ;;  %s5008_s12 = sld [smem:[#allocation11]] }
 0x22b   :  { %1691 = vrot.lane.b32.xlu1 %v1686_v23, %s3292_s27  ;;  %1731 = vrot.lane.b32.xlu0 %v1727_v50, %s3293_s8  ;;  %v1728_v23 = vmul.f32 %v1726_v49, %v4348_v62  ;;  %v1769_v50 = vmul.f32 %v1768_v61, %v4379_v11  ;;  %v1811_v49 = vmul.f32 %v1810_v16, %v4405_v2  ;;  %s5109_s23 = sld [smem:[#allocation14]] }
 0x22c   :  { %v4636_v16 = vmul.f32 %v1372_v30, %v4335_v3 }
 0x22d   :  { %v4600_v22 = vpop.permute.xlu1 %1237  ;;  %v4602_v29 = vpop.permute.xlu0 %1249 }
 0x22e   :  { %5690 = vst [vmem:[#allocation40_spill] sm:$0xff] %v4600_v22  ;;  %5691 = vst [vmem:[#allocation56_spill] sm:$0xff] %v4602_v29  ;;  %v1770_v29 = vmul.f32 %v1768_v61, %v4392_v20  ;;  %v4630_v22 = vmul.f32 %v1782_v6, %v4392_v20  ;;  %v4633_v61 = vmul.f32 %v1824_v8, %v4405_v2 }
 0x22f   :  { %1733 = vrot.lane.b32.xlu1 %v1728_v23, %s3293_s8  ;;  %1773 = vrot.lane.b32.xlu0 %v1769_v50, %s3293_s8  ;;  %v1741_v23 = vmul.f32 %v1740_v26, %v4335_v3  ;;  %v1742_v50 = vmul.f32 %v1740_v26, %v4348_v62  ;;  %5694 = vst [vmem:[#allocation41_spill] sm:$0xff] %v4636_v16  ;;  %v1880_v16 = vstv %s4594_s30  ;;  %s5139_s30 = sld [smem:[#allocation12 + $0xd]] }
 0x230   :  { %v4647_v26 = vmul.f32 %v1866_v9, %v4442_v13  ;;  %v4650_v6 = vmul.f32 %v1372_v30, %v4348_v62  ;;  %v4729_v46 = vmul.f32 %v1880_v16, %v4442_v13 }
 0x231   :  { %v4622_v60 = vpop.permute.xlu1 %1251  ;;  %v4624_v18 = vpop.permute.xlu0 %1263 }
 0x232   :  { %5692 = vst [vmem:[#allocation52_spill] sm:$0xff] %v4622_v60  ;;  %5693 = vst [vmem:[#allocation54_spill] sm:$0xff] %v4624_v18  ;;  %v4642_v60 = vmul.f32 %v1824_v8, %v4418_v52  ;;  %v4653_v18 = vmul.f32 %v1398_v4, %v4392_v20  ;;  %v933_v8 = vadd.f32 %v4272_v25, %v4239_v47 }
 0x233   :  { %1775 = vrot.lane.b32.xlu1 %v1770_v29, %s3293_s8  ;;  %1815 = vrot.lane.b32.xlu0 %v1811_v49, %s3293_s8  ;;  %5696 = vst [vmem:[#allocation47_spill] sm:$0xff] %v4650_v6  ;;  %v4664_v29 = vmul.f32 %v1404_v28, %v4379_v11  ;;  %v4667_v49 = vmul.f32 %v1866_v9, %v4453_v45 }
 0x234   :  { %5697 = vst [vmem:[#allocation53_spill] sm:$0xff] %v4653_v18  ;;  %v4674_v18 = vmul.f32 %v1796_v32, %v4379_v11  ;;  %v4677_v47 = vmul.f32 %v1378_v41, %v4348_v62  ;;  %v4680_v25 = vmul.f32 %v1404_v28, %v4392_v20  ;;  %v989_v9 = vadd.f32 %v4355_v14, %v933_v8 }
 0x235   :  { %5699 = vst [vmem:[#allocation48_spill] sm:$0xff] %v4664_v29  ;;  %v4669_v30 = vpop.permute.xlu1 %1265  ;;  %v4671_v4 = vpop.permute.xlu0 %1277  ;;  %v4683_v29 = vmul.f32 %v1384_v59, %v4335_v3  ;;  %v4690_v6 = vmul.f32 %v1796_v32, %v4392_v20  ;;  %v4698_v41 = vmul.f32 %v1384_v59, %v4348_v62  ;;  %v4701_v14 = vmul.f32 %v1410_v34, %v4392_v20 }
 0x236   :  { %5700 = vst [vmem:[#allocation57_spill] sm:$0xff] %v4674_v18  ;;  %v4693_v18 = vmul.f32 %v1838_v54, %v4405_v2  ;;  %v5702_v28 = vstv %s4540_s6  ;;  %v1450_v32 = vstv %s4614_s9  ;;  %v5703_v59 = vstv %s4555_s20  ;;  %s5151_s9 = sld [smem:[#allocation12 + $0x6]] }
 0x237   :  { %1817 = vrot.lane.b32.xlu1 %v1812_v15, %s3293_s8  ;;  %1745 = vrot.lane.b32.xlu0 %v1741_v23, %s3293_s8  ;;  %v4706_v8 = vmul.f32 %v5702_v28, %v4335_v3  ;;  %v947_v15 = vadd.f32 %v4305_v12, %v4267_v40  ;;  %v1045_v23 = vadd.f32 %v4401_v19, %v989_v9  ;;  %v5705_v40 = vstv %s4540_s6  ;;  %s5046_s6 = sld [smem:[#allocation11 + $0x2]] }
 0x238   :  { %v4719_v34 = vmul.f32 %v5703_v59, %v4379_v11  ;;  %v4726_v28 = vmul.f32 %v1838_v54, %v4418_v52  ;;  %v4734_v51 = vmul.f32 %v5705_v40, %v4348_v62  ;;  %v5706_v12 = vstv %s4570_s25  ;;  %s5113_s25 = sld [smem:[#allocation14 + $0x1]] }
 0x239   :  { %v4721_v20 = vpop.permute.xlu1 %1279  ;;  %v4723_v3 = vpop.permute.xlu0 %1291  ;;  %v4739_v19 = vmul.f32 %v5706_v12, %v4405_v2  ;;  %v990_v11 = vadd.f32 %v4363_v36, %v934_v55  ;;  %v1003_v9 = vadd.f32 %v4365_v0, %v947_v15  ;;  %v1101_v59 = vadd.f32 %v4449_v21, %v1045_v23 }
 0x23a   :  { %5704 = vst [vmem:[#allocation25_spill] sm:$0xff] %v4719_v34  ;;  %v4745_v54 = vmul.f32 %v1450_v32, %v4442_v13  ;;  %v948_v34 = vadd.f32 %v4327_v35, %v4297_v63  ;;  %v4752_v62 = vmul.f32 %v1880_v16, %v4453_v45  ;;  %v5707_v40 = vmov %v5706_v12 }
 0x23b   :  { %1747 = vrot.lane.b32.xlu1 %v1742_v50, %s3293_s8  ;;  %1787 = vrot.lane.b32.xlu0 %v1783_v56, %s3293_s8  ;;  %v4757_v36 = vmul.f32 %v5707_v40, %v4418_v52  ;;  %v1436_v0 = vstv %s4656_s0  ;;  %v961_v55 = vadd.f32 %v4329_v58, %v4299_v42  ;;  %v1046_v21 = vadd.f32 %v4412_v31, %v990_v11  ;;  %v5714_v11 = vld [vmem:[#allocation30_spill] sm:$0xff]  ;;  %v5715_v40 = vld [vmem:[#allocation31_spill] sm:$0xff]  ;;  %s5155_s0 = sld [smem:[#allocation12 + $0xe]] }
 0x23c   :  { %v1059_v63 = vadd.f32 %v4414_v5, %v1003_v9  ;;  %v1157_v35 = vadd.f32 %v4484_v57, %v1101_v59  ;;  %v962_v56 = vadd.f32 %v4342_v39, %v4315_v37  ;;  %v975_v50 = vadd.f32 %v4344_v38, %v4324_v7  ;;  %v5709_v57 = vld [vmem:[#allocation37_spill] sm:$0xff] }
 0x23d   :  { %v1004_v16 = vadd.f32 %v4373_v1, %v948_v34  ;;  %v4772_v15 = vpop.permute.xlu1 %1293  ;;  %v4774_v23 = vpop.permute.xlu0 %1305  ;;  %v4777_v42 = vmul.f32 %v1450_v32, %v4453_v45  ;;  %v1017_v58 = vadd.f32 %v4375_v48, %v961_v55  ;;  %v1102_v31 = vadd.f32 %v4458_v17, %v1046_v21  ;;  %v5708_v17 = vld [vmem:[#allocation29_spill] sm:$0xff]  ;;  %v5716_v55 = vld [vmem:[#allocation44_spill] sm:$0xff] }
 0x23e   :  { %v1115_v5 = vadd.f32 %v4460_v43, %v1059_v63  ;;  %v1213_v37 = vadd.f32 %v4534_v27, %v1157_v35  ;;  %v976_v7 = vadd.f32 %v4353_v44, %v4338_v53  ;;  %v1018_v39 = vadd.f32 %v4386_v24, %v962_v56  ;;  %v5710_v53 = vld [vmem:[#allocation54_spill] sm:$0xff]  ;;  %v5711_v24 = vld [vmem:[#allocation35_spill] sm:$0xff]  ;;  %v5712_v32 = vld [vmem:[#allocation49_spill] sm:$0xff] }
 0x23f   :  { %v1060_v38 = vadd.f32 %v4425_v33, %v1004_v16  ;;  %1789 = vrot.lane.b32.xlu1 %v4630_v22, %s3293_s8  ;;  %1829 = vrot.lane.b32.xlu0 %v4633_v61, %s3293_s8  ;;  %v1442_v1 = vstv %s4709_s2  ;;  %v1073_v48 = vadd.f32 %v4427_v10, %v1017_v58  ;;  %v1158_v43 = vadd.f32 %v5708_v17, %v1102_v31  ;;  %v5713_v22 = vld [vmem:[#allocation24_spill] sm:$0xff]  ;;  %v5717_v63 = vld [vmem:[#allocation45_spill] sm:$0xff]  ;;  %v5718_v16 = vld [vmem:[#allocation26_spill] sm:$0xff]  ;;  %s5164_s2 = sld [smem:[#allocation12 + $0x7]] }
 0x240   :  { %v1171_v27 = vadd.f32 %v5709_v57, %v1115_v5  ;;  %v1269_v44 = vadd.f32 %v5710_v53, %v1213_v37  ;;  %v1031_v33 = vadd.f32 %v5711_v24, %v975_v50  ;;  %v1032_v34 = vadd.f32 %v5712_v32, %v976_v7  ;;  %v5719_v31 = vld [vmem:[#allocation27_spill] sm:$0xff]  ;;  %v5720_v5 = vld [vmem:[#allocation38_spill] sm:$0xff] }
 0x241   :  { %v1074_v12 = vadd.f32 %v5713_v22, %v1018_v39  ;;  %v1116_v61 = vadd.f32 %v5714_v11, %v1060_v38  ;;  %v4802_v9 = vpop.permute.xlu1 %1307  ;;  %v1320_v59 = vpop.permute.xlu0 %1319  ;;  %v1129_v10 = vadd.f32 %v5715_v40, %v1073_v48  ;;  %v1214_v21 = vadd.f32 %v5716_v55, %v1158_v43  ;;  %v5721_v39 = vld [vmem:[#allocation50_spill] sm:$0xff]  ;;  %v5722_v43 = vld [vmem:[#allocation41_spill] sm:$0xff]  ;;  %v5726_v32 = vld [vmem:[#allocation51_spill] sm:$0xff] }
 0x242   :  { %v1227_v35 = vadd.f32 %v5717_v63, %v1171_v27  ;;  %v1325_v56 = vadd.f32 %v1320_v59, %v1269_v44  ;;  %v1087_v58 = vadd.f32 %v5718_v16, %v1031_v33  ;;  %v1088_v50 = vadd.f32 %v5719_v31, %v1032_v34  ;;  %v5723_v27 = vld [vmem:[#allocation42_spill] sm:$0xff]  ;;  %v5724_v44 = vld [vmem:[#allocation43_spill] sm:$0xff] }
 0x243   :  { %v1172_v37 = vadd.f32 %v5720_v5, %v1116_v61  ;;  %1831 = vrot.lane.b32.xlu1 %v4642_v60, %s3293_s8  ;;  %1871 = vrot.lane.b32.xlu0 %v4647_v26, %s3293_s8  ;;  %v1456_v7 = vstv %s4759_s4  ;;  %v1185_v38 = vadd.f32 %v5721_v39, %v1129_v10  ;;  %v1270_v48 = vadd.f32 %v4669_v30, %v1214_v21  ;;  %v5725_v60 = vld [vmem:[#allocation28_spill] sm:$0xff]  ;;  %v5727_v11 = vld [vmem:[#allocation39_spill] sm:$0xff]  ;;  %v5728_v59 = vld [vmem:[#allocation46_spill] sm:$0xff]  ;;  %s5172_s4 = sld [smem:[#allocation12 + $0xf]] }
 0x244   :  { %v1283_v17 = vadd.f32 %v4671_v4, %v1227_v35  ;;  %v1375_v57 = vadd.f32 %v5722_v43, %v1325_v56  ;;  %v1130_v53 = vadd.f32 %v5723_v27, %v1074_v12  ;;  %v1143_v24 = vadd.f32 %v5724_v44, %v1087_v58  ;;  %v5729_v4 = vld [vmem:[#allocation32_spill] sm:$0xff]  ;;  %v5730_v21 = vld [vmem:[#allocation33_spill] sm:$0xff]  ;;  %v5732_v58 = vld [vmem:[#allocation47_spill] sm:$0xff] }
 0x245   :  { %v1144_v33 = vadd.f32 %v5725_v60, %v1088_v50  ;;  %v1228_v26 = vadd.f32 %v5726_v32, %v1172_v37  ;;  %v1322_v34 = vpop.permute.xlu1 %1321  ;;  %v1334_v22 = vpop.permute.xlu0 %1333  ;;  %v1241_v61 = vadd.f32 %v5727_v11, %v1185_v38  ;;  %v5731_v35 = vld [vmem:[#allocation57_spill] sm:$0xff]  ;;  %v1894_v56 = vstv %s4791_s3  ;;  %v5733_v50 = vld [vmem:[#allocation55_spill] sm:$0xff]  ;;  %v5734_v39 = vld [vmem:[#allocation34_spill] sm:$0xff]  ;;  %s5186_s3 = sld [smem:[#allocation12 + $0x10]] }
 0x246   :  { %v1401_v40 = vadd.f32 %v5728_v59, %v1375_v57  ;;  %v1326_v30 = vadd.f32 %v1322_v34, %v1270_v48  ;;  %v1339_v10 = vadd.f32 %v1334_v22, %v1283_v17  ;;  %v1186_v55 = vadd.f32 %v5729_v4, %v1130_v53  ;;  %v5735_v38 = vld [vmem:[#allocation40_spill] sm:$0xff]  ;;  %v5738_v44 = vld [vmem:[#allocation53_spill] sm:$0xff] }
 0x247   :  { %v1199_v63 = vadd.f32 %v5730_v21, %v1143_v24  ;;  %v1284_v12 = vadd.f32 %v4721_v20, %v1228_v26  ;;  %1873 = vrot.lane.b32.xlu1 %v4667_v49, %s3293_s8  ;;  %1801 = vrot.lane.b32.xlu0 %v5731_v35, %s3293_s8  ;;  %v1297_v16 = vadd.f32 %v4723_v3, %v1241_v61  ;;  %v5736_v49 = vld [vmem:[#allocation56_spill] sm:$0xff]  ;;  %v5737_v27 = vstv %s4576_s28  ;;  %s5125_s28 = sld [smem:[#allocation12 + $0x4]] }
 0x248   :  { %v1376_v31 = vadd.f32 %v5732_v58, %v1326_v30  ;;  %v1381_v5 = vadd.f32 %v5733_v50, %v1339_v10  ;;  %v1427_v37 = vadd.f32 %v4739_v19, %v1401_v40  ;;  %v1200_v20 = vadd.f32 %v5734_v39, %v1144_v33  ;;  %v5739_v24 = vld [vmem:[#allocation48_spill] sm:$0xff] }
 0x249   :  { %v1242_v48 = vadd.f32 %v5735_v38, %v1186_v55  ;;  %v1255_v17 = vadd.f32 %v5736_v49, %v1199_v63  ;;  %v1336_v43 = vpop.permute.xlu1 %1335  ;;  %v1348_v57 = vpop.permute.xlu0 %1347  ;;  %v1431_v53 = vmul.f32 %v5737_v27, %v4405_v2  ;;  %v1462_v22 = vstv %s4815_s5  ;;  %v5745_v49 = vld [vmem:[#allocation36_spill] sm:$0xff]  ;;  %s5198_s5 = sld [smem:[#allocation12 + $0x11]] }
 0x24a   :  { %v1402_v3 = vadd.f32 %v5738_v44, %v1376_v31  ;;  %v1407_v60 = vadd.f32 %v5739_v24, %v1381_v5  ;;  %v1340_v32 = vadd.f32 %v1336_v43, %v1284_v12  ;;  %v1353_v19 = vadd.f32 %v1348_v57, %v1297_v16 }
 0x24b   :  { %v1298_v33 = vadd.f32 %v4772_v15, %v1242_v48  ;;  %v1311_v26 = vadd.f32 %v4774_v23, %v1255_v17  ;;  %1803 = vrot.lane.b32.xlu1 %v4690_v6, %s3293_s8  ;;  %1843 = vrot.lane.b32.xlu0 %v4693_v18, %s3293_s8  ;;  %v4856_v34 = vadd.f32 %v4745_v54, %v1427_v37  ;;  %v5740_v15 = vld [vmem:[#allocation52_spill] sm:$0xff]  ;;  %v1468_v35 = vstv %s4835_s10  ;;  %s3081_s10 = sld [smem:[#allocation12 + $0x12]] }
 0x24c   :  { %v1382_v11 = vadd.f32 %v4677_v47, %v1340_v32  ;;  %v1387_v61 = vadd.f32 %v4683_v29, %v1353_v19  ;;  %v1428_v59 = vadd.f32 %v4757_v36, %v1402_v3  ;;  %v1433_v40 = vadd.f32 %v1431_v53, %v1407_v60  ;;  %v5742_v29 = vld [vmem:[#allocation58_spill] sm:$0xff] }
 0x24d   :  { %v1256_v30 = vadd.f32 %v5740_v15, %v1200_v20  ;;  %v1350_v23 = vpop.permute.xlu1 %1349  ;;  %v1362_v10 = vpop.permute.xlu0 %1361  ;;  %v1457_v6 = vmul.f32 %v1456_v7, %v4442_v13  ;;  %v5741_v18 = vmov %v5737_v27  ;;  %v1437_v4 = vmul.f32 %v1436_v0, %v4405_v2 }
 0x24e   :  { %v1432_v54 = vmul.f32 %v5741_v18, %v4418_v52  ;;  %v1408_v47 = vadd.f32 %v4680_v25, %v1382_v11  ;;  %v1413_v55 = vadd.f32 %v5742_v29, %v1387_v61  ;;  %v1354_v36 = vadd.f32 %v1350_v23, %v1298_v33 }
 0x24f   :  { %v1367_v21 = vadd.f32 %v1362_v10, %v1311_v26  ;;  %v1312_v63 = vadd.f32 %v4802_v9, %v1256_v30  ;;  %1845 = vrot.lane.b32.xlu1 %v4726_v28, %s3293_s8  ;;  %1885 = vrot.lane.b32.xlu0 %v4729_v46, %s3293_s8  ;;  %v4882_v12 = vadd.f32 %v4777_v42, %v1428_v59  ;;  %v5743_v28 = vstv %s4574_s26  ;;  %s5121_s26 = sld [smem:[#allocation12 + $0xc]] }
 0x250   :  { %v4884_v25 = vadd.f32 %v1457_v6, %v1433_v40  ;;  %v1388_v16 = vadd.f32 %v4698_v41, %v1354_v36  ;;  %v1434_v31 = vadd.f32 %v1432_v54, %v1408_v47  ;;  %v1439_v9 = vadd.f32 %v1437_v4, %v1413_v55 }
 0x251   :  { %v1393_v58 = vadd.f32 %v4706_v8, %v1367_v21  ;;  %v1364_v50 = vpop.permute.xlu1 %1363  ;;  %v4889_v5 = vpop.permute.xlu0 %1479  ;;  %v1853_v46 = vmul.f32 %v5743_v28, %v4405_v2  ;;  %v1458_v42 = vmul.f32 %v1456_v7, %v4453_v45  ;;  %v1463_v37 = vmul.f32 %v1462_v22, %v4442_v13  ;;  %v5744_v8 = vld [vmem:[#allocation25_spill] sm:$0xff] }
 0x252   :  { %v1438_v39 = vmul.f32 %v1436_v0, %v4418_v52  ;;  %v1414_v41 = vadd.f32 %v4701_v14, %v1388_v16  ;;  %v1368_v38 = vadd.f32 %v1364_v50, %v1312_v63  ;;  %v1443_v48 = vmul.f32 %v1442_v1, %v4405_v2 }
 0x253   :  { %v1419_v20 = vadd.f32 %v5744_v8, %v1393_v58  ;;  %v5746_v17 = vstv %s4555_s20  ;;  %1887 = vrot.lane.b32.xlu1 %v4752_v62, %s3293_s8  ;;  %1857 = vrot.lane.b32.xlu0 %v1853_v46, %s3293_s8  ;;  %v4912_v0 = vadd.f32 %v1458_v42, %v1434_v31  ;;  %v4914_v14 = vadd.f32 %v1463_v37, %v1439_v9  ;;  %s5102_s20 = sld [smem:[#allocation12 + $0x2]] }
 0x254   :  { %v1418_v43 = vmul.f32 %v5746_v17, %v5745_v49  ;;  %v1394_v7 = vadd.f32 %v4734_v51, %v1368_v38  ;;  %v1464_v57 = vmul.f32 %v1462_v22, %v4453_v45  ;;  %v1440_v27 = vadd.f32 %v1438_v39, %v1414_v41 }
 0x255   :  { %v1445_v2 = vadd.f32 %v1443_v48, %v1419_v20  ;;  %v4918_v53 = vpop.permute.xlu1 %1481  ;;  %v4920_v44 = vpop.permute.xlu0 %1493  ;;  %v5747_v62 = vmov %v5743_v28  ;;  %v1895_v24 = vmul.f32 %v1894_v56, %v4442_v13  ;;  %v1469_v60 = vmul.f32 %v1468_v35, %v4442_v13 }
 0x256   :  { %v1854_v3 = vmul.f32 %v5747_v62, %v4418_v52  ;;  %v1420_v32 = vadd.f32 %v1418_v43, %v1394_v7  ;;  %v1908_v19 = vstv %s4874_s11  ;;  %v4930_v51 = vadd.f32 %v1464_v57, %v1440_v27  ;;  %s3082_s11 = sld [smem:[#allocation12 + $0x13]] }
 0x257   :  { %v1444_v33 = vmul.f32 %v1442_v1, %v4418_v52  ;;  %1899 = vrot.lane.b32.xlu0 %v1895_v24, %s3293_s8  ;;  %v4937_v26 = vadd.f32 %v1469_v60, %v1445_v2  ;;  %v1470_v22 = vmul.f32 %v1468_v35, %v4453_v45  ;;  %v1896_v40 = vmul.f32 %v1894_v56, %v4453_v45 }
 0x258   :  { %1859 = vrot.lane.b32.xlu1 %v1854_v3, %s3293_s8  ;;  %v1909_v15 = vmul.f32 %v1908_v19, %v4442_v13  ;;  %v1910_v23 = vmul.f32 %v1908_v19, %v4453_v45  ;;  %v1485_v2 = vadd.f32 %v4889_v5, %v4856_v34  ;;  %v250_v60 = vlaneseq }
 0x259   :  { %v1446_v11 = vadd.f32 %v1444_v33, %v1420_v32  ;;  %v4940_v61 = vpop.permute.xlu1 %1495  ;;  %v4942_v59 = vpop.permute.xlu0 %1507  ;;  %v1486_v32 = vadd.f32 %v4918_v53, %v4882_v12  ;;  %v1499_v12 = vadd.f32 %v4920_v44, %v4884_v25 }
 0x25b   :  { %v4948_v30 = vadd.f32 %v1470_v22, %v1446_v11  ;;  %1913 = vrot.lane.b32.xlu0 %v1909_v15, %s3293_s8  ;;  %v251_v15 = vand.u32 127, %v250_v60 }
 0x25c   :  { %1901 = vrot.lane.b32.xlu1 %v1896_v40, %s3293_s8 }
 0x25d   :  { %v4952_v52 = vpop.permute.xlu1 %1509  ;;  %v4954_v1 = vpop.permute.xlu0 %1521  ;;  %vm253_vm4 = vcmp.ge.s32.totalorder %v251_v15, 18  ;;  %vm254_vm5 = vcmp.lt.s32.totalorder %v251_v15, 34  ;;  %vm252_vm6 = vcmp.lt.s32.totalorder %v251_v15, 16 }
 0x25e   :  { %vm255_vm7 = vmand %vm253_vm4, %vm254_vm5 }
 0x25f   :  { %vm5017_vm9 = vmor %vm252_vm6, %vm255_vm7 }
 0x260   :  { %1915 = vrot.lane.b32.xlu1 %v1910_v23, %s3293_s8 }
 0x261   :  { %v4958_v10 = vpop.permute.xlu1 %1523  ;;  %v1536_v6 = vpop.permute.xlu0 %1535 }
 0x262   :  { %v1541_v24 = vadd.f32 %v1536_v6, %v1485_v2 }
 0x265   :  { %v1538_v56 = vpop.permute.xlu1 %1537  ;;  %v1550_v18 = vpop.permute.xlu0 %1549 }
 0x266   :  { %v1542_v11 = vadd.f32 %v1538_v56, %v1486_v32  ;;  %v1555_v56 = vadd.f32 %v1550_v18, %v1499_v12  ;;  %v2080_v32 = vstv %s3072_s17  ;;  %s3096_s17 = sld [smem:[#allocation12 + $0x21]] }
 0x269   :  { %v4960_v13 = vpop.permute.xlu1 %1551  ;;  %v1592_v54 = vpop.permute.xlu0 %1591 }
 0x26a   :  { %v1597_v19 = vadd.f32 %v1592_v54, %v1541_v24 }
 0x26d   :  { %v1594_v4 = vpop.permute.xlu1 %1593  ;;  %v4962_v47 = vpop.permute.xlu0 %1563 }
 0x26e   :  { %v1598_v34 = vadd.f32 %v1594_v4, %v1542_v11 }
 0x271   :  { %v4964_v29 = vpop.permute.xlu1 %1565  ;;  %v1606_v55 = vpop.permute.xlu0 %1605 }
 0x275   :  { %v4966_v36 = vpop.permute.xlu1 %1607  ;;  %v1648_v21 = vpop.permute.xlu0 %1647 }
 0x276   :  { %v1653_v40 = vadd.f32 %v1648_v21, %v1597_v19 }
 0x279   :  { %v1650_v45 = vpop.permute.xlu1 %1649  ;;  %v4968_v63 = vpop.permute.xlu0 %1577 }
 0x27a   :  { %v1654_v2 = vadd.f32 %v1650_v45, %v1598_v34  ;;  %v1611_v45 = vadd.f32 %v1606_v55, %v1555_v56  ;;  %v1945_v34 = vstv %s5023_s13  ;;  %s3084_s13 = sld [smem:[#allocation12 + $0x15]] }
 0x27d   :  { %v4970_v35 = vpop.permute.xlu1 %1579  ;;  %v4972_v16 = vpop.permute.xlu0 %1619 }
 0x281   :  { %v4974_v58 = vpop.permute.xlu1 %1621  ;;  %v1662_v31 = vpop.permute.xlu0 %1661 }
 0x285   :  { %v4976_v9 = vpop.permute.xlu1 %1663  ;;  %v1704_v50 = vpop.permute.xlu0 %1703 }
 0x286   :  { %v1709_v5 = vadd.f32 %v1704_v50, %v1653_v40  ;;  %v1500_v50 = vadd.f32 %v4940_v61, %v4912_v0  ;;  %v1513_v0 = vadd.f32 %v4942_v59, %v4914_v14  ;;  %v1514_v14 = vadd.f32 %v4952_v52, %v4930_v51 }
 0x287   :  { %v1527_v59 = vadd.f32 %v4954_v1, %v4937_v26 }
 0x288   :  { %v1556_v18 = vadd.f32 %v4960_v13, %v1500_v50  ;;  %v1569_v13 = vadd.f32 %v4962_v47, %v1513_v0  ;;  %v1570_v47 = vadd.f32 %v4964_v29, %v1514_v14 }
 0x289   :  { %v1706_v28 = vpop.permute.xlu1 %1705  ;;  %v4978_v46 = vpop.permute.xlu0 %1633 }
 0x28a   :  { %v1710_v53 = vadd.f32 %v1706_v28, %v1654_v2  ;;  %v1667_v28 = vadd.f32 %v1662_v31, %v1611_v45  ;;  %v1612_v55 = vadd.f32 %v4966_v36, %v1556_v18 }
 0x28c   :  { %v1668_v31 = vadd.f32 %v4976_v9, %v1612_v55  ;;  %v1583_v9 = vadd.f32 %v4968_v63, %v1527_v59  ;;  %v1987_v55 = vstv %s5057_s15  ;;  %s3086_s15 = sld [smem:[#allocation12 + $0x17]] }
 0x28d   :  { %v4980_v42 = vpop.permute.xlu1 %1635  ;;  %v4982_v37 = vpop.permute.xlu0 %1675 }
 0x291   :  { %v4984_v39 = vpop.permute.xlu1 %1677  ;;  %v1718_v41 = vpop.permute.xlu0 %1717 }
 0x295   :  { %v4986_v8 = vpop.permute.xlu1 %1719  ;;  %v1760_v20 = vpop.permute.xlu0 %1759 }
 0x299   :  { %v1762_v38 = vpop.permute.xlu1 %1761  ;;  %v4988_v48 = vpop.permute.xlu0 %1689 }
 0x29a   :  { %v1766_v4 = vadd.f32 %v1762_v38, %v1710_v53 }
 0x29d   :  { %v4990_v49 = vpop.permute.xlu1 %1691  ;;  %v4992_v17 = vpop.permute.xlu0 %1731 }
 0x29e   :  { %5748 = vst [vmem:[#allocation29_spill] sm:$0xff] %v4990_v49  ;;  %v1765_v49 = vadd.f32 %v1760_v20, %v1709_v5  ;;  %v1639_v5 = vadd.f32 %v4978_v46, %v1583_v9 }
 0x2a1   :  { %v4994_v43 = vpop.permute.xlu1 %1733  ;;  %v1774_v7 = vpop.permute.xlu0 %1773 }
 0x2a5   :  { %v4996_v57 = vpop.permute.xlu1 %1775  ;;  %v1816_v27 = vpop.permute.xlu0 %1815 }
 0x2a6   :  { %v1821_v54 = vadd.f32 %v1816_v27, %v1765_v49  ;;  %v1723_v27 = vadd.f32 %v1718_v41, %v1667_v28  ;;  %v1625_v41 = vadd.f32 %v4972_v16, %v1569_v13  ;;  %v1528_v16 = vadd.f32 %v4958_v10, %v4948_v30 }
 0x2a7   :  { %v1695_v30 = vadd.f32 %v4988_v48, %v1639_v5 }
 0x2a8   :  { %v1779_v11 = vadd.f32 %v1774_v7, %v1723_v27  ;;  %v1681_v26 = vadd.f32 %v4982_v37, %v1625_v41  ;;  %v1584_v2 = vadd.f32 %v4970_v35, %v1528_v16 }
 0x2a9   :  { %v1818_v62 = vpop.permute.xlu1 %1817  ;;  %v5000_v3 = vpop.permute.xlu0 %1745 }
 0x2aa   :  { %5749 = vst [vmem:[#allocation37_spill] sm:$0xff] %v5000_v3  ;;  %v1822_v20 = vadd.f32 %v1818_v62, %v1766_v4  ;;  %v1737_v29 = vadd.f32 %v4992_v17, %v1681_v26  ;;  %v1640_v17 = vadd.f32 %v4980_v42, %v1584_v2  ;;  %v5754_v4 = vld [vmem:[#allocation29_spill] sm:$0xff] }
 0x2ac   :  { %v1696_v48 = vadd.f32 %v5754_v4, %v1640_v17 }
 0x2ad   :  { %v5004_v33 = vpop.permute.xlu1 %1747  ;;  %v5006_v22 = vpop.permute.xlu0 %1787 }
 0x2ae   :  { %5750 = vst [vmem:[#allocation54_spill] sm:$0xff] %v5004_v33  ;;  %v1924_v33 = vstv %s5008_s12  ;;  %v1793_v10 = vadd.f32 %v5006_v22, %v1737_v29  ;;  %v1966_v22 = vstv %s5046_s6  ;;  %s3083_s12 = sld [smem:[#allocation12 + $0x14]]  ;;  %s3085_s6 = sld [smem:[#allocation12 + $0x16]] }
 0x2b1   :  { %v5010_v23 = vpop.permute.xlu1 %1789  ;;  %v1830_v6 = vpop.permute.xlu0 %1829 }
 0x2b2   :  { %v1835_v15 = vadd.f32 %v1830_v6, %v1779_v11 }
 0x2b5   :  { %v1832_v24 = vpop.permute.xlu1 %1831  ;;  %v1872_v3 = vpop.permute.xlu0 %1871 }
 0x2b6   :  { %v1877_v21 = vadd.f32 %v1872_v3, %v1821_v54  ;;  %v5753_v54 = vld [vmem:[#allocation37_spill] sm:$0xff] }
 0x2b8   :  { %vm1921_vm8 = vcmp.gt.f32.partialorder %v1877_v21, 0.0  ;;  %v1925_v60 = vmul.f32 %v1924_v33, %v1877_v21 }
 0x2b9   :  { %v1874_v25 = vpop.permute.xlu1 %1873  ;;  %v5021_v44 = vpop.permute.xlu0 %1801 }
 0x2ba   :  { %v1878_v38 = vadd.f32 %v1874_v25, %v1822_v20  ;;  %v1927_v49 = vsel %vm1921_vm8, %v1877_v21, %v1925_v60  ;;  %v5755_v60 = vld [vmem:[#allocation54_spill] sm:$0xff] }
 0x2bb   :  { %v1929_v61 = vsel %vm5017_vm9, %v1927_v49, 0.0  ;;  %v1752_v25 = vadd.f32 %v5755_v60, %v1696_v48  ;;  %v2040_v60 = vstv %s5125_s28  ;;  %s3106_s28 = sld [smem:[#allocation12 + $0x2b]] }
 0x2bc   :  { %vm1922_vm10 = vcmp.gt.f32.partialorder %v1878_v38, 0.0  ;;  %v1926_v62 = vmul.f32 %v1924_v33, %v1878_v38  ;;  %1933 = vrot.lane.b32.xlu0 %v1929_v61, %s3290_s14  ;;  %v1724_v33 = vadd.f32 %v4986_v8, %v1668_v31  ;;  %v1626_v8 = vadd.f32 %v4974_v58, %v1570_v47 }
 0x2bd   :  { %v1804_v3 = vpop.permute.xlu1 %1803  ;;  %v1844_v19 = vpop.permute.xlu0 %1843 }
 0x2be   :  { %v1928_v40 = vsel %vm1922_vm10, %v1878_v38, %v1926_v62  ;;  %v1780_v52 = vadd.f32 %v4996_v57, %v1724_v33  ;;  %v1682_v12 = vadd.f32 %v4984_v39, %v1626_v8  ;;  %v1751_v39 = vadd.f32 %v5753_v54, %v1695_v30 }
 0x2bf   :  { %v1930_v36 = vsel %vm5017_vm9, %v1928_v40, 0.0  ;;  %v1808_v0 = vadd.f32 %v1804_v3, %v1752_v25  ;;  %v2026_v30 = vstv %s5102_s20  ;;  %s3100_s20 = sld [smem:[#allocation12 + $0x25]] }
 0x2c0   :  { %1935 = vrot.lane.b32.xlu1 %v1930_v36, %s3290_s14  ;;  %v1836_v63 = vadd.f32 %v1832_v24, %v1780_v52  ;;  %v1738_v57 = vadd.f32 %v4994_v43, %v1682_v12  ;;  %v1849_v24 = vadd.f32 %v1844_v19, %v1793_v10  ;;  %v1807_v43 = vadd.f32 %v5021_v44, %v1751_v39 }
 0x2c1   :  { %v1846_v7 = vpop.permute.xlu1 %1845  ;;  %v1886_v51 = vpop.permute.xlu0 %1885  ;;  %v2032_v10 = vstv %s5104_s21  ;;  %s3101_s21 = sld [smem:[#allocation12 + $0x26]] }
 0x2c2   :  { %v1891_v1 = vadd.f32 %v1886_v51, %v1835_v15  ;;  %v1794_v42 = vadd.f32 %v5010_v23, %v1738_v57  ;;  %v2108_v57 = vstv %s5111_s24  ;;  %s3103_s24 = sld [smem:[#allocation12 + $0x28]] }
 0x2c4   :  { %vm1942_vm11 = vcmp.gt.f32.partialorder %v1891_v1, 0.0  ;;  %v1946_v6 = vmul.f32 %v1945_v34, %v1891_v1  ;;  %v1850_v28 = vadd.f32 %v1846_v7, %v1794_v42 }
 0x2c5   :  { %v1888_v37 = vpop.permute.xlu1 %1887  ;;  %v1858_v53 = vpop.permute.xlu0 %1857 }
 0x2c6   :  { %v1892_v58 = vadd.f32 %v1888_v37, %v1836_v63  ;;  %v1948_v46 = vsel %vm1942_vm11, %v1891_v1, %v1946_v6  ;;  %v1863_v38 = vadd.f32 %v1858_v53, %v1807_v43  ;;  %v2012_v63 = vstv %s5093_s18  ;;  %s3097_s18 = sld [smem:[#allocation12 + $0x22]] }
 0x2c7   :  { %v1950_v35 = vsel %vm5017_vm9, %v1948_v46, 0.0  ;;  %v2094_v6 = vstv %s5095_s19  ;;  %v2006_v46 = vstv %s5109_s23  ;;  %v2122_v43 = vstv %s5121_s26  ;;  %s3098_s19 = sld [smem:[#allocation12 + $0x23]]  ;;  %s3102_s23 = sld [smem:[#allocation12 + $0x27]] }
 0x2c8   :  { %vm1943_vm12 = vcmp.gt.f32.partialorder %v1892_v58, 0.0  ;;  %v1947_v56 = vmul.f32 %v1945_v34, %v1892_v58  ;;  %1954 = vrot.lane.b32.xlu0 %v1950_v35, %s3290_s14  ;;  %v2066_v34 = vstv %s3071_s16  ;;  %v2008_v35 = vstv %s5113_s25  ;;  %s3095_s16 = sld [smem:[#allocation12 + $0x20]]  ;;  %s3104_s25 = sld [smem:[#allocation12 + $0x29]] }
 0x2c9   :  { %v1900_v50 = vpop.permute.xlu0 %1899  ;;  %s3105_s26 = sld [smem:[#allocation12 + $0x2a]] }
 0x2ca   :  { %v1860_v21 = vpop.permute.xlu1 %1859  ;;  %v1905_v45 = vadd.f32 %v1900_v50, %v1849_v24  ;;  %v1949_v20 = vsel %vm1943_vm12, %v1892_v58, %v1947_v56 }
 0x2cb   :  { %v1951_v18 = vsel %vm5017_vm9, %v1949_v20, 0.0  ;;  %v1864_v19 = vadd.f32 %v1860_v21, %v1808_v0 }
 0x2cc   :  { %vm1963_vm13 = vcmp.gt.f32.partialorder %v1905_v45, 0.0  ;;  %v1967_v49 = vmul.f32 %v1966_v22, %v1905_v45  ;;  %1956 = vrot.lane.b32.xlu1 %v1951_v18, %s3290_s14 }
 0x2cd   :  { %v1914_v27 = vpop.permute.xlu0 %1913 }
 0x2ce   :  { %v1902_v61 = vpop.permute.xlu1 %1901  ;;  %v1919_v62 = vadd.f32 %v1914_v27, %v1863_v38  ;;  %v1969_v44 = vsel %vm1963_vm13, %v1905_v45, %v1967_v49  ;;  %v2046_v27 = vstv %s5136_s29  ;;  %s3107_s29 = sld [smem:[#allocation12 + $0x2c]] }
 0x2cf   :  { %v1906_v23 = vadd.f32 %v1902_v61, %v1850_v28  ;;  %v1971_v13 = vsel %vm5017_vm9, %v1969_v44, 0.0 }
 0x2d0   :  { %vm1984_vm15 = vcmp.gt.f32.partialorder %v1919_v62, 0.0  ;;  %v1988_v11 = vmul.f32 %v1987_v55, %v1919_v62  ;;  %1975 = vrot.lane.b32.xlu0 %v1971_v13, %s3290_s14 }
 0x2d1   :  { %vm1964_vm14 = vcmp.gt.f32.partialorder %v1906_v23, 0.0  ;;  %v1968_v31 = vmul.f32 %v1966_v22, %v1906_v23 }
 0x2d2   :  { %v1916_v40 = vpop.permute.xlu1 %1915  ;;  %v1990_v3 = vsel %vm1984_vm15, %v1919_v62, %v1988_v11 }
 0x2d3   :  { %v1920_v14 = vadd.f32 %v1916_v40, %v1864_v19  ;;  %v1970_v59 = vsel %vm1964_vm14, %v1906_v23, %v1968_v31  ;;  %v1992_v41 = vsel %vm5017_vm9, %v1990_v3, 0.0  ;;  %v2136_v23 = vstv %s5139_s30  ;;  %s3108_s30 = sld [smem:[#allocation12 + $0x2d]] }
 0x2d4   :  { %v1972_v36 = vsel %vm5017_vm9, %v1970_v59, 0.0  ;;  %1996 = vrot.lane.b32.xlu0 %v1992_v41, %s3290_s14  ;;  %v2150_v41 = vstv %s5155_s0  ;;  %s5318_s0 = sld [smem:[#allocation12 + $0x2f]] }
 0x2d5   :  { %vm1985_vm0 = vcmp.gt.f32.partialorder %v1920_v14, 0.0  ;;  %v1989_v33 = vmul.f32 %v1987_v55, %v1920_v14  ;;  %1977 = vrot.lane.b32.xlu1 %v1972_v36, %s3290_s14  ;;  %v2054_v36 = vstv %s5151_s9  ;;  %s3109_s9 = sld [smem:[#allocation12 + $0x2e]] }
 0x2d7   :  { %v1991_v15 = vsel %vm1985_vm0, %v1920_v14, %v1989_v33 }
 0x2d8   :  { %v1993_v47 = vsel %vm5017_vm9, %v1991_v15, 0.0 }
 0x2d9   :  { %1998 = vrot.lane.b32.xlu1 %v1993_v47, %s3290_s14  ;;  %s5097_s14 = sld [smem:[#allocation12 + $0x1]] }
 0x2df   :  { %v2018_v2 = vstv %s5097_s14  ;;  %s3099_s14 = sld [smem:[#allocation12 + $0x24]] }
 0x32e   :  { %v1934_v9 = vpop.permute.xlu0 %1933 }
 0x32f   :  { %1940 = vst.msk [vmem:[#allocation3 + $0x1] sm:$0xff] %vm1939_vm1, %v1934_v9 }
 0x332   :  { %v1936_v7 = vpop.permute.xlu1 %1935 }
 0x333   :  { %1941 = vst.msk [vmem:[#allocation3 + $0x9] sm:$0xff] %vm1939_vm1, %v1936_v7  ;;  %v2060_v7 = vstv %s5164_s2  ;;  %s5325_s2 = sld [smem:[#allocation12 + $0x38]] }
 0x336   :  { %v5090_v51 = vld [vmem:[#allocation3] sm:$0xff] }
 0x337   :  { %v2067_v26 = vmul.f32 %v2066_v34, %v5090_v51  ;;  %v2081_v8 = vmul.f32 %v2080_v32, %v5090_v51  ;;  %v2013_v53 = vmul.f32 %v2012_v63, %v5090_v51  ;;  %v2019_v17 = vmul.f32 %v2018_v2, %v5090_v51 }
 0x339   :  { %2071 = vrot.lane.b32.xlu0 %v2067_v26, %s3292_s27  ;;  %v2015_v48 = vadd.f32 %v2013_v53, %v2006_v46  ;;  %v2021_v42 = vadd.f32 %v2019_v17, %v2008_v35 }
 0x33a   :  { %v1955_v52 = vpop.permute.xlu0 %1954  ;;  %v5100_v1 = vld [vmem:[#allocation3 + $0x8] sm:$0xff] }
 0x33b   :  { %1961 = vst.msk [vmem:[#allocation3 + $0x19] sm:$0xff] %vm1939_vm1, %v1955_v52  ;;  %v2068_v16 = vmul.f32 %v2066_v34, %v5100_v1  ;;  %v2082_v29 = vmul.f32 %v2080_v32, %v5100_v1  ;;  %v2014_v50 = vmul.f32 %v2012_v63, %v5100_v1  ;;  %v2020_v20 = vmul.f32 %v2018_v2, %v5100_v1 }
 0x33c   :  { %v2164_v32 = vstv %s5172_s4  ;;  %s5333_s4 = sld [smem:[#allocation12 + $0x39]] }
 0x33d   :  { %2073 = vrot.lane.b32.xlu1 %v2068_v16, %s3292_s27  ;;  %2085 = vrot.lane.b32.xlu0 %v2081_v8, %s3292_s27  ;;  %v2016_v55 = vadd.f32 %v2014_v50, %v2006_v46  ;;  %v2022_v44 = vadd.f32 %v2020_v20, %v2008_v35 }
 0x33e   :  { %v1957_v5 = vpop.permute.xlu1 %1956 }
 0x33f   :  { %1962 = vst.msk [vmem:[#allocation3 + $0x21] sm:$0xff] %vm1939_vm1, %v1957_v5 }
 0x341   :  { %2087 = vrot.lane.b32.xlu1 %v2082_v29, %s3292_s27 }
 0x342   :  { %v1976_v12 = vpop.permute.xlu0 %1975  ;;  %v5127_v37 = vld [vmem:[#allocation3 + $0x18] sm:$0xff] }
 0x343   :  { %1982 = vst.msk [vmem:[#allocation3 + $0x31] sm:$0xff] %vm1939_vm1, %v1976_v12  ;;  %v2095_v58 = vmul.f32 %v2094_v6, %v5127_v37  ;;  %v2027_v54 = vmul.f32 %v2026_v30, %v5127_v37  ;;  %v2033_v39 = vmul.f32 %v2032_v10, %v5127_v37  ;;  %v2109_v22 = vmul.f32 %v2108_v57, %v5127_v37 }
 0x345   :  { %2099 = vrot.lane.b32.xlu0 %v2095_v58, %s3292_s27  ;;  %v2029_v45 = vadd.f32 %v2027_v54, %v2015_v48  ;;  %v2035_v18 = vadd.f32 %v2033_v39, %v2021_v42  ;;  %v2206_v39 = vstv %s3081_s10  ;;  %v2220_v48 = vstv %s3082_s11  ;;  %s5362_s10 = sld [smem:[#allocation12 + $0x3c]]  ;;  %s5371_s11 = sld [smem:[#allocation12 + $0x3d]] }
 0x346   :  { %v1997_v56 = vpop.permute.xlu0 %1996  ;;  %v5145_v4 = vld [vmem:[#allocation3 + $0x20] sm:$0xff]  ;;  %v2248_v42 = vstv %s3084_s13  ;;  %s5389_s13 = sld [smem:[#allocation12 + $0x3f]] }
 0x347   :  { %v1978_v24 = vpop.permute.xlu1 %1977  ;;  %2003 = vst.msk [vmem:[#allocation3 + $0x49] sm:$0xff] %vm1939_vm1, %v1997_v56  ;;  %v2096_v21 = vmul.f32 %v2094_v6, %v5145_v4  ;;  %v2028_v25 = vmul.f32 %v2026_v30, %v5145_v4  ;;  %v2034_v49 = vmul.f32 %v2032_v10, %v5145_v4  ;;  %v2110_v0 = vmul.f32 %v2108_v57, %v5145_v4 }
 0x348   :  { %1983 = vst.msk [vmem:[#allocation3 + $0x39] sm:$0xff] %vm1939_vm1, %v1978_v24  ;;  %v2178_v30 = vstv %s5186_s3  ;;  %v2192_v57 = vstv %s5198_s5  ;;  %v2207_v56 = vmul.f32 %v2206_v39, %v5127_v37  ;;  %s5343_s3 = sld [smem:[#allocation12 + $0x3a]]  ;;  %s5353_s5 = sld [smem:[#allocation12 + $0x3b]] }
 0x349   :  { %2101 = vrot.lane.b32.xlu1 %v2096_v21, %s3292_s27  ;;  %2113 = vrot.lane.b32.xlu0 %v2109_v22, %s3292_s27  ;;  %v2030_v19 = vadd.f32 %v2028_v25, %v2016_v55  ;;  %v2036_v40 = vadd.f32 %v2034_v49, %v2022_v44  ;;  %v2179_v17 = vmul.f32 %v2178_v30, %v5090_v51  ;;  %v2234_v22 = vstv %s3083_s12  ;;  %s5380_s12 = sld [smem:[#allocation12 + $0x3e]] }
 0x34a   :  { %v5162_v38 = vld [vmem:[#allocation3 + $0x30] sm:$0xff]  ;;  %v2180_v35 = vmul.f32 %v2178_v30, %v5100_v1  ;;  %v2193_v54 = vmul.f32 %v2192_v57, %v5090_v51  ;;  %v2194_v24 = vmul.f32 %v2192_v57, %v5100_v1  ;;  %v2208_v21 = vmul.f32 %v2206_v39, %v5145_v4 }
 0x34b   :  { %v1999_v28 = vpop.permute.xlu1 %1998  ;;  %v2123_v61 = vmul.f32 %v2122_v43, %v5162_v38  ;;  %v2041_v62 = vmul.f32 %v2040_v60, %v5162_v38  ;;  %v2047_v11 = vmul.f32 %v2046_v27, %v5162_v38  ;;  %v2137_v59 = vmul.f32 %v2136_v23, %v5162_v38 }
 0x34c   :  { %2004 = vst.msk [vmem:[#allocation3 + $0x51] sm:$0xff] %vm1939_vm1, %v1999_v28  ;;  %v2221_v51 = vmul.f32 %v2220_v48, %v5127_v37  ;;  %v2222_v1 = vmul.f32 %v2220_v48, %v5145_v4  ;;  %v2235_v50 = vmul.f32 %v2234_v22, %v5162_v38  ;;  %v2249_v37 = vmul.f32 %v2248_v42, %v5162_v38  ;;  %v5250_v28 = vld [vmem:[#allocation3 + $0x1] sm:$0xff] }
 0x34d   :  { %2115 = vrot.lane.b32.xlu1 %v2110_v0, %s3292_s27  ;;  %2127 = vrot.lane.b32.xlu0 %v2123_v61, %s3292_s27  ;;  %v2043_v31 = vadd.f32 %v2041_v62, %v2029_v45  ;;  %v2049_v9 = vadd.f32 %v2047_v11, %v2035_v18  ;;  %v2262_v45 = vstv %s3085_s6  ;;  %v2346_v38 = vstv %s3095_s16  ;;  %v5256_v61 = vld [vmem:[#allocation3 + $0x9] sm:$0xff]  ;;  %v5262_v62 = vld [vmem:[#allocation3 + $0x19] sm:$0xff]  ;;  %s5398_s6 = sld [smem:[#allocation12 + $0x40]]  ;;  %s5414_s16 = sld [smem:[#allocation12 + $0x42]] }
 0x34e   :  { %v5182_v3 = vld [vmem:[#allocation3 + $0x48] sm:$0xff]  ;;  %v2347_v0 = vmul.f32 %v2346_v38, %v5250_v28  ;;  %v2360_v55 = vstv %s3096_s17  ;;  %v2374_v44 = vstv %s3097_s18  ;;  %v2388_v11 = vstv %s3098_s19  ;;  %s5421_s17 = sld [smem:[#allocation12 + $0x43]]  ;;  %s5425_s18 = sld [smem:[#allocation12 + $0x18]] }
 0x34f   :  { %v5177_v13 = vld [vmem:[#allocation3 + $0x38] sm:$0xff]  ;;  %v2055_v15 = vmul.f32 %v2054_v36, %v5182_v3  ;;  %v2151_v26 = vmul.f32 %v2150_v41, %v5182_v3  ;;  %v2061_v5 = vmul.f32 %v2060_v7, %v5182_v3  ;;  %v2165_v2 = vmul.f32 %v2164_v32, %v5182_v3  ;;  %s5427_s19 = sld [smem:[#allocation12 + $0x1a]] }
 0x350   :  { %v2124_v14 = vmul.f32 %v2122_v43, %v5177_v13  ;;  %v2042_v47 = vmul.f32 %v2040_v60, %v5177_v13  ;;  %v2138_v34 = vmul.f32 %v2136_v23, %v5177_v13  ;;  %v2048_v29 = vmul.f32 %v2046_v27, %v5177_v13 }
 0x351   :  { %2141 = vrot.lane.b32.xlu0 %v2137_v59, %s3292_s27  ;;  %v5200_v52 = vadd.f32 %v2055_v15, %v2043_v31  ;;  %v5212_v53 = vadd.f32 %v2061_v5, %v2049_v9  ;;  %v2236_v43 = vmul.f32 %v2234_v22, %v5177_v13  ;;  %v2250_v4 = vmul.f32 %v2248_v42, %v5177_v13  ;;  %v5268_v31 = vld [vmem:[#allocation3 + $0x21] sm:$0xff]  ;;  %v5274_v59 = vld [vmem:[#allocation3 + $0x31] sm:$0xff] }
 0x352   :  { %2129 = vrot.lane.b32.xlu1 %v2124_v14, %s3292_s27  ;;  %v2044_v16 = vadd.f32 %v2042_v47, %v2030_v19  ;;  %v2050_v10 = vadd.f32 %v2048_v29, %v2036_v40  ;;  %v2263_v20 = vmul.f32 %v2262_v45, %v5182_v3  ;;  %v2276_v60 = vstv %s3086_s15  ;;  %s5407_s15 = sld [smem:[#allocation12 + $0x41]] }
 0x353   :  { %v5190_v33 = vld [vmem:[#allocation3 + $0x50] sm:$0xff]  ;;  %v2277_v18 = vmul.f32 %v2276_v60, %v5182_v3  ;;  %v2348_v27 = vmul.f32 %v2346_v38, %v5256_v61  ;;  %v2361_v23 = vmul.f32 %v2360_v55, %v5250_v28  ;;  %v2362_v19 = vmul.f32 %v2360_v55, %v5256_v61 }
 0x354   :  { %v2056_v8 = vmul.f32 %v2054_v36, %v5190_v33  ;;  %v2062_v63 = vmul.f32 %v2060_v7, %v5190_v33  ;;  %v2152_v6 = vmul.f32 %v2150_v41, %v5190_v33  ;;  %v2166_v46 = vmul.f32 %v2164_v32, %v5190_v33  ;;  %v5286_v7 = vld [vmem:[#allocation3 + $0x49] sm:$0xff] }
 0x355   :  { %2155 = vrot.lane.b32.xlu0 %v2151_v26, %s3292_s27  ;;  %v2264_v25 = vmul.f32 %v2262_v45, %v5190_v33  ;;  %v2278_v49 = vmul.f32 %v2276_v60, %v5190_v33  ;;  %v2375_v13 = vmul.f32 %v2374_v44, %v5262_v62  ;;  %v2376_v40 = vmul.f32 %v2374_v44, %v5268_v31  ;;  %v5280_v33 = vld [vmem:[#allocation3 + $0x39] sm:$0xff] }
 0x356   :  { %2143 = vrot.lane.b32.xlu1 %v2138_v34, %s3292_s27  ;;  %v5210_v12 = vadd.f32 %v2056_v8, %v2044_v16  ;;  %v5217_v58 = vadd.f32 %v2062_v63, %v2050_v10  ;;  %v2389_v14 = vmul.f32 %v2388_v11, %v5262_v62  ;;  %v2402_v3 = vstv %s3099_s14  ;;  %v5292_v16 = vld [vmem:[#allocation3 + $0x51] sm:$0xff]  ;;  %s5429_s14 = sld [smem:[#allocation12 + $0x19]] }
 0x357   :  { %v2390_v36 = vmul.f32 %v2388_v11, %v5268_v31  ;;  %v2403_v41 = vmul.f32 %v2402_v3, %v5274_v59  ;;  %v2416_v15 = vstv %s3100_s20  ;;  %v2404_v47 = vmul.f32 %v2402_v3, %v5280_v33  ;;  %s5433_s20 = sld [smem:[#allocation12 + $0x1b]] }
 0x358   :  { %v2417_v9 = vmul.f32 %v2416_v15, %v5274_v59  ;;  %v2430_v34 = vstv %s3101_s21  ;;  %v2418_v26 = vmul.f32 %v2416_v15, %v5280_v33  ;;  %v2444_v8 = vstv %s3102_s23  ;;  %s5435_s21 = sld [smem:[#allocation12 + $0x1c]]  ;;  %s5442_s23 = sld [smem:[#allocation12 + $0x1e]] }
 0x359   :  { %2169 = vrot.lane.b32.xlu0 %v2165_v2, %s3292_s27  ;;  %v2431_v32 = vmul.f32 %v2430_v34, %v5286_v7  ;;  %v2432_v5 = vmul.f32 %v2430_v34, %v5292_v16  ;;  %v2445_v29 = vmul.f32 %v2444_v8, %v5286_v7  ;;  %v2458_v63 = vstv %s3103_s24  ;;  %v5359_v34 = vld [vmem:[#allocation3 + $0x1a] sm:$0xff]  ;;  %s5444_s24 = sld [smem:[#allocation12 + $0x1d]] }
 0x35a   :  { %2157 = vrot.lane.b32.xlu1 %v2152_v6, %s3292_s27  ;;  %v2446_v6 = vmul.f32 %v2444_v8, %v5292_v16  ;;  %v2459_v2 = vmul.f32 %v2458_v63, %v5250_v28  ;;  %v2472_v30 = vstv %s3104_s25  ;;  %v2460_v10 = vmul.f32 %v2458_v63, %v5256_v61  ;;  %s5446_s25 = sld [smem:[#allocation12 + $0x45]] }
 0x35b   :  { %v2474_v57 = vmul.f32 %v2472_v30, %v5256_v61  ;;  %v2528_v22 = vstv %s3108_s30  ;;  %v2542_v45 = vstv %s3109_s9  ;;  %v2640_v3 = vstv %s5333_s4  ;;  %s5511_s30 = sld [smem:[#allocation12 + $0x32]]  ;;  %s5513_s9 = sld [smem:[#allocation12 + $0x31]] }
 0x35c   :  { %v2543_v60 = vmul.f32 %v2542_v45, %v5286_v7  ;;  %s5519_s4 = sld [smem:[#allocation12 + $0x36]] }
 0x35d   :  { %2183 = vrot.lane.b32.xlu0 %v2179_v17, %s3293_s8  ;;  %v2486_v17 = vstv %s3105_s26  ;;  %s5448_s26 = sld [smem:[#allocation12 + $0x1f]] }
 0x35e   :  { %2171 = vrot.lane.b32.xlu1 %v2166_v46, %s3292_s27  ;;  %v2473_v46 = vmul.f32 %v2472_v30, %v5250_v28  ;;  %v2488_v39 = vmul.f32 %v2486_v17, %v5268_v31  ;;  %v2668_v30 = vstv %s5353_s5  ;;  %s5527_s5 = sld [smem:[#allocation12 + $0x37]] }
 0x361   :  { %2197 = vrot.lane.b32.xlu0 %v2193_v54, %s3293_s8  ;;  %v2500_v54 = vstv %s3106_s28  ;;  %s5456_s28 = sld [smem:[#allocation12 + $0x46]] }
 0x362   :  { %2185 = vrot.lane.b32.xlu1 %v2180_v35, %s3293_s8  ;;  %v2487_v35 = vmul.f32 %v2486_v17, %v5262_v62 }
 0x365   :  { %2211 = vrot.lane.b32.xlu0 %v2207_v56, %s3293_s8  ;;  %v2514_v56 = vstv %s3107_s29  ;;  %s5477_s29 = sld [smem:[#allocation12 + $0x47]] }
 0x366   :  { %2199 = vrot.lane.b32.xlu1 %v2194_v24, %s3293_s8  ;;  %v2501_v24 = vmul.f32 %v2500_v54, %v5262_v62  ;;  %v2516_v42 = vmul.f32 %v2514_v56, %v5280_v33 }
 0x369   :  { %2225 = vrot.lane.b32.xlu0 %v2221_v51, %s3293_s8  ;;  %v2515_v51 = vmul.f32 %v2514_v56, %v5274_v59 }
 0x36a   :  { %2213 = vrot.lane.b32.xlu1 %v2208_v21, %s3293_s8  ;;  %v2502_v21 = vmul.f32 %v2500_v54, %v5268_v31 }
 0x36d   :  { %2239 = vrot.lane.b32.xlu0 %v2235_v50, %s3293_s8 }
 0x36e   :  { %2227 = vrot.lane.b32.xlu1 %v2222_v1, %s3293_s8 }
 0x371   :  { %2253 = vrot.lane.b32.xlu0 %v2249_v37, %s3293_s8 }
 0x372   :  { %2241 = vrot.lane.b32.xlu1 %v2236_v43, %s3293_s8  ;;  %v2529_v43 = vmul.f32 %v2528_v22, %v5274_v59 }
 0x375   :  { %2267 = vrot.lane.b32.xlu0 %v2263_v20, %s3293_s8  ;;  %v2530_v20 = vmul.f32 %v2528_v22, %v5280_v33 }
 0x376   :  { %2255 = vrot.lane.b32.xlu1 %v2250_v4, %s3293_s8 }
 0x379   :  { %2281 = vrot.lane.b32.xlu0 %v2277_v18, %s3293_s8  ;;  %v2556_v18 = vstv %s5318_s0  ;;  %s5515_s0 = sld [smem:[#allocation12 + $0x34]] }
 0x37a   :  { %2269 = vrot.lane.b32.xlu1 %v2264_v25, %s3293_s8 }
 0x37d   :  { %2351 = vrot.lane.b32.xlu0 %v2347_v0, %s3292_s27  ;;  %v2557_v0 = vmul.f32 %v2556_v18, %v5286_v7 }
 0x37e   :  { %2283 = vrot.lane.b32.xlu1 %v2278_v49, %s3293_s8  ;;  %v2544_v49 = vmul.f32 %v2542_v45, %v5292_v16 }
 0x381   :  { %2365 = vrot.lane.b32.xlu0 %v2361_v23, %s3292_s27  ;;  %v2626_v23 = vstv %s5325_s2  ;;  %s5517_s2 = sld [smem:[#allocation12 + $0x33]] }
 0x382   :  { %2353 = vrot.lane.b32.xlu1 %v2348_v27, %s3292_s27  ;;  %v5340_v27 = vld [vmem:[#allocation3 + $0x2] sm:$0xff] }
 0x383   :  { %v2641_v15 = vmul.f32 %v2640_v3, %v5340_v27 }
 0x385   :  { %2379 = vrot.lane.b32.xlu0 %v2375_v13, %s3292_s27  ;;  %v2627_v13 = vmul.f32 %v2626_v23, %v5340_v27 }
 0x386   :  { %2367 = vrot.lane.b32.xlu1 %v2362_v19, %s3292_s27  ;;  %v2558_v19 = vmul.f32 %v2556_v18, %v5292_v16  ;;  %v2710_v18 = vstv %s5380_s12  ;;  %s3294_s12 = smov 110  }
 0x389   :  { %2393 = vrot.lane.b32.xlu0 %v2389_v14, %s3292_s27  ;;  %v5350_v14 = vld [vmem:[#allocation3 + $0xa] sm:$0xff] }
 0x38a   :  { %2381 = vrot.lane.b32.xlu1 %v2376_v40, %s3292_s27 }
 0x38d   :  { %2407 = vrot.lane.b32.xlu0 %v2403_v41, %s3292_s27  ;;  %v2628_v41 = vmul.f32 %v2626_v23, %v5350_v14 }
 0x38e   :  { %2395 = vrot.lane.b32.xlu1 %v2390_v36, %s3292_s27 }
 0x391   :  { %2421 = vrot.lane.b32.xlu0 %v2417_v9, %s3292_s27 }
 0x392   :  { %2409 = vrot.lane.b32.xlu1 %v2404_v47, %s3292_s27 }
 0x395   :  { %2435 = vrot.lane.b32.xlu0 %v2431_v32, %s3292_s27 }
 0x396   :  { %2423 = vrot.lane.b32.xlu1 %v2418_v26, %s3292_s27  ;;  %v2654_v26 = vstv %s5343_s3  ;;  %s5521_s3 = sld [smem:[#allocation12 + $0x35]] }
 0x399   :  { %2449 = vrot.lane.b32.xlu0 %v2445_v29, %s3292_s27  ;;  %v2655_v29 = vmul.f32 %v2654_v26, %v5359_v34 }
 0x39a   :  { %2437 = vrot.lane.b32.xlu1 %v2432_v5, %s3292_s27  ;;  %v2642_v5 = vmul.f32 %v2640_v3, %v5350_v14 }
 0x39d   :  { %2463 = vrot.lane.b32.xlu0 %v2459_v2, %s3293_s8  ;;  %v5368_v2 = vld [vmem:[#allocation3 + $0x22] sm:$0xff] }
 0x39e   :  { %2451 = vrot.lane.b32.xlu1 %v2446_v6, %s3292_s27  ;;  %v2656_v17 = vmul.f32 %v2654_v26, %v5368_v2 }
 0x3a1   :  { %2477 = vrot.lane.b32.xlu0 %v2473_v46, %s3293_s8 }
 0x3a2   :  { %2465 = vrot.lane.b32.xlu1 %v2460_v10, %s3293_s8 }
 0x3a5   :  { %2491 = vrot.lane.b32.xlu0 %v2487_v35, %s3293_s8 }
 0x3a6   :  { %2479 = vrot.lane.b32.xlu1 %v2474_v57, %s3293_s8  ;;  %v2669_v57 = vmul.f32 %v2668_v30, %v5359_v34 }
 0x3a9   :  { %2505 = vrot.lane.b32.xlu0 %v2501_v24, %s3293_s8  ;;  %v2682_v24 = vstv %s5362_s10  ;;  %s5549_s10 = sld [smem:[#allocation15]] }
 0x3aa   :  { %2493 = vrot.lane.b32.xlu1 %v2488_v39, %s3293_s8  ;;  %v5377_v39 = vld [vmem:[#allocation3 + $0x32] sm:$0xff] }
 0x3ab   :  { %v2072_v48 = vpop.permute.xlu0 %2071 }
 0x3ad   :  { %2519 = vrot.lane.b32.xlu0 %v2515_v51, %s3293_s8  ;;  %v2683_v51 = vmul.f32 %v2682_v24, %v5377_v39 }
 0x3ae   :  { %2507 = vrot.lane.b32.xlu1 %v2502_v21, %s3293_s8  ;;  %v2670_v21 = vmul.f32 %v2668_v30, %v5368_v2 }
 0x3af   :  { %v2074_v1 = vpop.permute.xlu1 %2073  ;;  %v2086_v50 = vpop.permute.xlu0 %2085 }
 0x3b0   :  { %v2091_v37 = vadd.f32 %v2086_v50, %v5212_v53  ;;  %v2077_v53 = vadd.f32 %v2072_v48, %v5200_v52  ;;  %v5386_v50 = vld [vmem:[#allocation3 + $0x3a] sm:$0xff] }
 0x3b1   :  { %2533 = vrot.lane.b32.xlu0 %v2529_v43, %s3293_s8  ;;  %v2684_v45 = vmul.f32 %v2682_v24, %v5386_v50 }
 0x3b2   :  { %2521 = vrot.lane.b32.xlu1 %v2516_v42, %s3293_s8  ;;  %v2696_v42 = vstv %s5371_s11  ;;  %s5551_s11 = sld [smem:[#allocation15 + $0x1]] }
 0x3b3   :  { %v2088_v4 = vpop.permute.xlu1 %2087 }
 0x3b4   :  { %v2092_v25 = vadd.f32 %v2088_v4, %v5217_v58  ;;  %v2078_v58 = vadd.f32 %v2074_v1, %v5210_v12  ;;  %v2697_v4 = vmul.f32 %v2696_v42, %v5377_v39 }
 0x3b5   :  { %2547 = vrot.lane.b32.xlu0 %v2543_v60, %s3293_s8 }
 0x3b6   :  { %2535 = vrot.lane.b32.xlu1 %v2530_v20, %s3293_s8 }
 0x3b7   :  { %v2100_v38 = vpop.permute.xlu0 %2099 }
 0x3b8   :  { %v2105_v55 = vadd.f32 %v2100_v38, %v2077_v53 }
 0x3b9   :  { %2561 = vrot.lane.b32.xlu0 %v2557_v0, %s3293_s8 }
 0x3ba   :  { %2549 = vrot.lane.b32.xlu1 %v2544_v49, %s3293_s8  ;;  %v2698_v49 = vmul.f32 %v2696_v42, %v5386_v50 }
 0x3bb   :  { %v2102_v44 = vpop.permute.xlu1 %2101  ;;  %v2114_v52 = vpop.permute.xlu0 %2113 }
 0x3bc   :  { %v2106_v11 = vadd.f32 %v2102_v44, %v2078_v58  ;;  %v2119_v40 = vadd.f32 %v2114_v52, %v2091_v37  ;;  %v5404_v58 = vld [vmem:[#allocation3 + $0x52] sm:$0xff]  ;;  %v2724_v44 = vstv %s5389_s13  ;;  %s3295_s13 = smov [#allocation17]  }
 0x3bd   :  { %2631 = vrot.lane.b32.xlu0 %v2627_v13, %s3292_s27  ;;  %v2712_v13 = vmul.f32 %v2710_v18, %v5404_v58 }
 0x3be   :  { %2563 = vrot.lane.b32.xlu1 %v2558_v19, %s3293_s8 }
 0x3bf   :  { %v2116_v36 = vpop.permute.xlu1 %2115  ;;  %v2128_v12 = vpop.permute.xlu0 %2127 }
 0x3c0   :  { %v2120_v47 = vadd.f32 %v2116_v36, %v2092_v25  ;;  %v2133_v9 = vadd.f32 %v2128_v12, %v2105_v55  ;;  %v5395_v25 = vld [vmem:[#allocation3 + $0x4a] sm:$0xff]  ;;  %v2738_v36 = vstv %s5398_s6  ;;  %s2898_s6 = sshll.u32 %s3295_s13, 4  ;;  %s2899_s6 = int_to_ptr.vmem [resolvable:$true] %s2898_s6 }
 0x3c1   :  { %2645 = vrot.lane.b32.xlu0 %v2641_v15, %s3292_s27  ;;  %v2711_v0 = vmul.f32 %v2710_v18, %v5395_v25  ;;  %v2726_v15 = vmul.f32 %v2724_v44, %v5404_v58  ;;  %p3251_p11 = scmp.lt.s32.totalorder %s2899_s6, %s2899_s6 }
 0x3c2   :  { %2633 = vrot.lane.b32.xlu1 %v2628_v41, %s3292_s27 }
 0x3c3   :  { %v2142_v8 = vpop.permute.xlu0 %2141 }
 0x3c4   :  { %v2130_v32 = vpop.permute.xlu1 %2129  ;;  %v2147_v6 = vadd.f32 %v2142_v8, %v2119_v40 }
 0x3c5   :  { %v2134_v63 = vadd.f32 %v2130_v32, %v2106_v11  ;;  %2659 = vrot.lane.b32.xlu0 %v2655_v29, %s3292_s27  ;;  %v2725_v11 = vmul.f32 %v2724_v44, %v5395_v25  ;;  %v2752_v32 = vstv %s5407_s15  ;;  %v2740_v29 = vmul.f32 %v2738_v36, %v5350_v14  ;;  %s3246_s15 = scalar_lea.vmem %s2899_s6, 1024 }
 0x3c6   :  { %2647 = vrot.lane.b32.xlu1 %v2642_v5, %s3292_s27  ;;  %p3247_p10 = scmp.ne.s32.totalorder %s2899_s6, %s3246_s15  ;;  %p3252_p12 = scmp.lt.s32.totalorder %s3246_s15, %s3246_s15 }
 0x3c7   :  { %v2156_v46 = vpop.permute.xlu0 %2155 }
 0x3c8   :  { %v2144_v10 = vpop.permute.xlu1 %2143  ;;  %v2161_v54 = vadd.f32 %v2156_v46, %v2133_v9  ;;  %p3253_p13 = por %p3252_p12, %p3251_p11 }
 0x3c9   :  { %v2148_v35 = vadd.f32 %v2144_v10, %v2120_v47  ;;  %2673 = vrot.lane.b32.xlu0 %v2669_v57, %s3292_s27  ;;  %v2739_v47 = vmul.f32 %v2738_v36, %v5340_v27  ;;  %v2766_v10 = vstv %s5414_s16  ;;  %v2754_v57 = vmul.f32 %v2752_v32, %v5350_v14 }
 0x3ca   :  { %2661 = vrot.lane.b32.xlu1 %v2656_v17, %s3292_s27  ;;  %v2768_v42 = vmul.f32 %v2766_v10, %v5368_v2  ;;  %p3254_p0 = pnand %p3253_p13, %p3247_p10 }
 0x3cb   :  { %v2170_v48 = vpop.permute.xlu0 %2169 }
 0x3cc   :  { %v2158_v56 = vpop.permute.xlu1 %2157  ;;  %v2175_v1 = vadd.f32 %v2170_v48, %v2147_v6  ;;  %v2292_v48 = vstv %s5425_s18 }
 0x3cd   :  { %v2162_v22 = vadd.f32 %v2158_v56, %v2134_v63  ;;  %2687 = vrot.lane.b32.xlu0 %v2683_v51, %s3292_s27  ;;  %v2753_v63 = vmul.f32 %v2752_v32, %v5340_v27  ;;  %v2780_v56 = vstv %s5421_s17  ;;  %v2298_v51 = vstv %s5429_s14 }
 0x3ce   :  { %2675 = vrot.lane.b32.xlu1 %v2670_v21, %s3292_s27  ;;  %v2306_v21 = vstv %s5427_s19  ;;  %v2294_v44 = vmul.f32 %v2292_v48, %v5256_v61 }
 0x3cf   :  { %v2184_v37 = vpop.permute.xlu0 %2183 }
 0x3d0   :  { %v2172_v43 = vpop.permute.xlu1 %2171  ;;  %v2189_v60 = vadd.f32 %v2184_v37, %v2161_v54  ;;  %v2312_v37 = vstv %s5433_s20 }
 0x3d1   :  { %v2176_v20 = vadd.f32 %v2172_v43, %v2148_v35  ;;  %2701 = vrot.lane.b32.xlu0 %v2697_v4, %s3292_s27  ;;  %v2767_v35 = vmul.f32 %v2766_v10, %v5359_v34  ;;  %v2781_v43 = vmul.f32 %v2780_v56, %v5359_v34 }
 0x3d2   :  { %2689 = vrot.lane.b32.xlu1 %v2684_v45, %s3292_s27  ;;  %v2320_v45 = vstv %s5435_s21 }
 0x3d3   :  { %v2198_v38 = vpop.permute.xlu0 %2197 }
 0x3d4   :  { %v2186_v53 = vpop.permute.xlu1 %2185  ;;  %v2203_v23 = vadd.f32 %v2198_v38, %v2175_v1  ;;  %v2326_v38 = vstv %s5444_s24 }
 0x3d5   :  { %v2190_v55 = vadd.f32 %v2186_v53, %v2162_v22  ;;  %2715 = vrot.lane.b32.xlu0 %v2711_v0, %s3292_s27  ;;  %v2334_v53 = vstv %s5442_s23  ;;  %v2327_v10 = vmul.f32 %v2326_v38, %v5274_v59 }
 0x3d6   :  { %2703 = vrot.lane.b32.xlu1 %v2698_v49, %s3292_s27  ;;  %v2307_v49 = vmul.f32 %v2306_v21, %v5262_v62 }
 0x3d7   :  { %v2212_v19 = vpop.permute.xlu0 %2211 }
 0x3d8   :  { %v2200_v52 = vpop.permute.xlu1 %2199  ;;  %v2217_v3 = vadd.f32 %v2212_v19, %v2189_v60  ;;  %v2299_v19 = vmul.f32 %v2298_v51, %v5250_v28 }
 0x3d9   :  { %v2204_v40 = vadd.f32 %v2200_v52, %v2176_v20  ;;  %2729 = vrot.lane.b32.xlu0 %v2725_v11, %s3292_s27  ;;  %v2293_v20 = vmul.f32 %v2292_v48, %v5250_v28  ;;  %v2782_v11 = vmul.f32 %v2780_v56, %v5368_v2  ;;  %v2300_v28 = vmul.f32 %v2298_v51, %v5256_v61 }
 0x3da   :  { %2717 = vrot.lane.b32.xlu1 %v2712_v13, %s3292_s27 }
 0x3db   :  { %v2226_v41 = vpop.permute.xlu0 %2225 }
 0x3dc   :  { %v2214_v12 = vpop.permute.xlu1 %2213  ;;  %v2231_v26 = vadd.f32 %v2226_v41, %v2203_v23  ;;  %v2340_v23 = vstv %s5448_s26  ;;  %v2321_v41 = vmul.f32 %v2320_v45, %v5274_v59 }
 0x3dd   :  { %v2218_v9 = vadd.f32 %v2214_v12, %v2190_v55  ;;  %2743 = vrot.lane.b32.xlu0 %v2739_v47, %s3293_s8  ;;  %v2808_v55 = vstv %s5446_s25  ;;  %v2313_v47 = vmul.f32 %v2312_v37, %v5262_v62  ;;  %v2322_v62 = vmul.f32 %v2320_v45, %v5280_v33 }
 0x3de   :  { %2731 = vrot.lane.b32.xlu1 %v2726_v15, %s3292_s27  ;;  %s5438_s27 = sld [smem:[#allocation12 + $0x44]]  ;;  %v2308_v15 = vmul.f32 %v2306_v21, %v5268_v31 }
 0x3df   :  { %v2240_v5 = vpop.permute.xlu0 %2239 }
 0x3e0   :  { %v2228_v8 = vpop.permute.xlu1 %2227  ;;  %v2245_v30 = vadd.f32 %v2240_v5, %v2217_v3  ;;  %v2335_v5 = vmul.f32 %v2334_v53, %v5286_v7 }
 0x3e1   :  { %v2232_v6 = vadd.f32 %v2228_v8, %v2204_v40  ;;  %2757 = vrot.lane.b32.xlu0 %v2753_v63, %s3293_s8 }
 0x3e2   :  { %2745 = vrot.lane.b32.xlu1 %v2740_v29, %s3293_s8 }
 0x3e3   :  { %v2254_v17 = vpop.permute.xlu0 %2253 }
 0x3e4   :  { %v2242_v46 = vpop.permute.xlu1 %2241  ;;  %v2259_v24 = vadd.f32 %v2254_v17, %v2231_v26  ;;  %v2794_v18 = vstv %s5438_s27 }
 0x3e5   :  { %v2246_v54 = vadd.f32 %v2242_v46, %v2218_v9  ;;  %2771 = vrot.lane.b32.xlu0 %v2767_v35, %s3293_s8  ;;  %v2795_v40 = vmul.f32 %v2794_v18, %v5377_v39  ;;  %v2822_v9 = vstv %s5456_s28  ;;  %v2314_v35 = vmul.f32 %v2312_v37, %v5268_v31 }
 0x3e6   :  { %2759 = vrot.lane.b32.xlu1 %v2754_v57, %s3293_s8 }
 0x3e7   :  { %v2268_v1 = vpop.permute.xlu0 %2267 }
 0x3e8   :  { %v2256_v22 = vpop.permute.xlu1 %2255  ;;  %v2273_v60 = vadd.f32 %v2268_v1, %v2245_v30  ;;  %v2809_v30 = vmul.f32 %v2808_v55, %v5377_v39  ;;  %v2810_v1 = vmul.f32 %v2808_v55, %v5386_v50 }
 0x3e9   :  { %v2260_v4 = vadd.f32 %v2256_v22, %v2232_v6  ;;  %2785 = vrot.lane.b32.xlu0 %v2781_v43, %s3293_s8  ;;  %v2796_v6 = vmul.f32 %v2794_v18, %v5386_v50  ;;  %v2836_v43 = vstv %s5477_s29 }
 0x3ea   :  { %2773 = vrot.lane.b32.xlu1 %v2768_v42, %s3293_s8  ;;  %v2295_v0 = vadd.f32 %v2293_v20, %v2273_v60  ;;  %v2823_v42 = vmul.f32 %v2822_v9, %v5395_v25  ;;  %v2342_v60 = vmul.f32 %v2340_v23, %v5292_v16  ;;  %v2837_v55 = vmul.f32 %v2836_v43, %v5395_v25 }
 0x3eb   :  { %v2282_v13 = vpop.permute.xlu0 %2281 }
 0x3ec   :  { %v2270_v52 = vpop.permute.xlu1 %2269  ;;  %v2309_v3 = vadd.f32 %v2307_v49, %v2295_v0  ;;  %v2287_v12 = vadd.f32 %v2282_v13, %v2259_v24  ;;  %v2341_v24 = vmul.f32 %v2340_v23, %v5286_v7  ;;  %v2824_v0 = vmul.f32 %v2822_v9, %v5404_v58 }
 0x3ed   :  { %v2274_v36 = vadd.f32 %v2270_v52, %v2246_v54  ;;  %2799 = vrot.lane.b32.xlu0 %v2795_v40, %s3293_s8  ;;  %v2336_v54 = vmul.f32 %v2334_v53, %v5292_v16  ;;  %v2838_v13 = vmul.f32 %v2836_v43, %v5404_v58  ;;  %v2586_v43 = vstv %s5511_s30 }
 0x3ee   :  { %2787 = vrot.lane.b32.xlu1 %v2782_v11, %s3293_s8  ;;  %v2301_v32 = vadd.f32 %v2299_v19, %v2287_v12  ;;  %v2323_v8 = vadd.f32 %v2321_v41, %v2309_v3 }
 0x3ef   :  { %v2296_v26 = vadd.f32 %v2294_v44, %v2274_v36  ;;  %v2352_v63 = vpop.permute.xlu0 %2351 }
 0x3f0   :  { %v2284_v29 = vpop.permute.xlu1 %2283  ;;  %v2315_v17 = vadd.f32 %v2313_v47, %v2301_v32  ;;  %v2337_v57 = vadd.f32 %v2335_v5, %v2323_v8 }
 0x3f1   :  { %v2310_v46 = vadd.f32 %v2308_v15, %v2296_v26  ;;  %v2288_v61 = vadd.f32 %v2284_v29, %v2260_v4  ;;  %2813 = vrot.lane.b32.xlu0 %v2809_v30, %s3293_s8  ;;  %v2328_v4 = vmul.f32 %v2326_v38, %v5280_v33 }
 0x3f2   :  { %2801 = vrot.lane.b32.xlu1 %v2796_v6, %s3293_s8  ;;  %v2357_v48 = vadd.f32 %v2352_v63, %v2337_v57  ;;  %v2329_v51 = vadd.f32 %v2327_v10, %v2315_v17 }
 0x3f3   :  { %v2302_v56 = vadd.f32 %v2300_v28, %v2288_v61  ;;  %v2324_v21 = vadd.f32 %v2322_v62, %v2310_v46  ;;  %v2366_v22 = vpop.permute.xlu0 %2365 }
 0x3f4   :  { %v2354_v59 = vpop.permute.xlu1 %2353  ;;  %v2343_v45 = vadd.f32 %v2341_v24, %v2329_v51 }
 0x3f5   :  { %v2316_v31 = vadd.f32 %v2314_v35, %v2302_v56  ;;  %v2338_v37 = vadd.f32 %v2336_v54, %v2324_v21  ;;  %2827 = vrot.lane.b32.xlu0 %v2823_v42, %s3293_s8 }
 0x3f6   :  { %2815 = vrot.lane.b32.xlu1 %v2810_v1, %s3293_s8  ;;  %v2371_v20 = vadd.f32 %v2366_v22, %v2343_v45  ;;  %v2578_v45 = vstv %s5513_s9 }
 0x3f7   :  { %v2358_v7 = vadd.f32 %v2354_v59, %v2338_v37  ;;  %v2330_v18 = vadd.f32 %v2328_v4, %v2316_v31  ;;  %v2380_v49 = vpop.permute.xlu0 %2379  ;;  %v2600_v4 = vstv %s5515_s0 }
 0x3f8   :  { %v2368_v53 = vpop.permute.xlu1 %2367  ;;  %v2385_v52 = vadd.f32 %v2380_v49, %v2357_v48  ;;  %v2592_v49 = vstv %s5517_s2 }
 0x3f9   :  { %v2344_v44 = vadd.f32 %v2342_v60, %v2330_v18  ;;  %2841 = vrot.lane.b32.xlu0 %v2837_v55, %s3293_s8 }
 0x3fa   :  { %2829 = vrot.lane.b32.xlu1 %v2824_v0, %s3293_s8  ;;  %v2614_v0 = vstv %s5519_s4 }
 0x3fb   :  { %v2372_v33 = vadd.f32 %v2368_v53, %v2344_v44  ;;  %v2394_v19 = vpop.permute.xlu0 %2393  ;;  %v2587_v53 = vmul.f32 %v2586_v43, %v5359_v34 }
 0x3fc   :  { %v2382_v38 = vpop.permute.xlu1 %2381  ;;  %v2399_v16 = vadd.f32 %v2394_v19, %v2371_v20 }
 0x3fd   :  { %v2386_v11 = vadd.f32 %v2382_v38, %v2358_v7 }
 0x3fe   :  { %2843 = vrot.lane.b32.xlu1 %v2838_v13, %s3293_s8  ;;  %s5509_s8 = sld [smem:[#allocation12 + $0x30]]  ;;  %v2579_v13 = vmul.f32 %v2578_v45, %v5340_v27 }
 0x3ff   :  { %v2408_v40 = vpop.permute.xlu0 %2407 }
 0x400   :  { %v2396_v23 = vpop.permute.xlu1 %2395  ;;  %v2413_v36 = vadd.f32 %v2408_v40, %v2385_v52 }
 0x401   :  { %v2400_v3 = vadd.f32 %v2396_v23, %v2372_v33  ;;  %v2606_v23 = vstv %s5521_s3 }
 0x403   :  { %v2422_v41 = vpop.permute.xlu0 %2421 }
 0x404   :  { %v2410_v12 = vpop.permute.xlu1 %2409  ;;  %v2427_v47 = vadd.f32 %v2422_v41, %v2399_v16  ;;  %v2572_v59 = vstv %s5509_s8  ;;  %v2601_v16 = vmul.f32 %v2600_v4, %v5377_v39  ;;  %v2588_v41 = vmul.f32 %v2586_v43, %v5368_v2 }
 0x405   :  { %v2414_v15 = vadd.f32 %v2410_v12, %v2386_v11  ;;  %v2573_v60 = vmul.f32 %v2572_v59, %v5340_v27  ;;  %v2574_v38 = vmul.f32 %v2572_v59, %v5350_v14  ;;  %v2580_v27 = vmul.f32 %v2578_v45, %v5350_v14 }
 0x407   :  { %v2436_v9 = vpop.permute.xlu0 %2435 }
 0x408   :  { %v2424_v28 = vpop.permute.xlu1 %2423  ;;  %v2441_v32 = vadd.f32 %v2436_v9, %v2413_v36 }
 0x409   :  { %v2428_v26 = vadd.f32 %v2424_v28, %v2400_v3 }
 0x40b   :  { %v2450_v5 = vpop.permute.xlu0 %2449 }
 0x40c   :  { %v2438_v8 = vpop.permute.xlu1 %2437  ;;  %v2455_v63 = vadd.f32 %v2450_v5, %v2427_v47  ;;  %v2615_v47 = vmul.f32 %v2614_v0, %v5395_v25 }
 0x40d   :  { %v2442_v29 = vadd.f32 %v2438_v8, %v2414_v15  ;;  %v2593_v15 = vmul.f32 %v2592_v49, %v5359_v34  ;;  %v2594_v34 = vmul.f32 %v2592_v49, %v5368_v2 }
 0x40f   :  { %v2464_v30 = vpop.permute.xlu0 %2463 }
 0x410   :  { %v2452_v6 = vpop.permute.xlu1 %2451  ;;  %v2469_v56 = vadd.f32 %v2464_v30, %v2441_v32 }
 0x411   :  { %v2456_v62 = vadd.f32 %v2452_v6, %v2428_v26  ;;  %v2620_v6 = vstv %s5527_s5 }
 0x412   :  { %v2621_v14 = vmul.f32 %v2620_v6, %v5395_v25 }
 0x413   :  { %v2478_v46 = vpop.permute.xlu0 %2477 }
 0x414   :  { %v2466_v10 = vpop.permute.xlu1 %2465  ;;  %v2483_v1 = vadd.f32 %v2478_v46, %v2455_v63  ;;  %v2607_v63 = vmul.f32 %v2606_v23, %v5377_v39  ;;  %v2608_v39 = vmul.f32 %v2606_v23, %v5386_v50 }
 0x415   :  { %v2470_v22 = vadd.f32 %v2466_v10, %v2442_v29  ;;  %v2602_v29 = vmul.f32 %v2600_v4, %v5386_v50 }
 0x417   :  { %v2492_v61 = vpop.permute.xlu0 %2491 }
 0x418   :  { %v2480_v17 = vpop.permute.xlu1 %2479  ;;  %v2497_v51 = vadd.f32 %v2492_v61, %v2469_v56 }
 0x419   :  { %v2484_v55 = vadd.f32 %v2480_v17, %v2456_v62  ;;  %v2616_v17 = vmul.f32 %v2614_v0, %v5404_v58 }
 0x41b   :  { %v2506_v35 = vpop.permute.xlu0 %2505 }
 0x41c   :  { %v2494_v57 = vpop.permute.xlu1 %2493  ;;  %v2511_v20 = vadd.f32 %v2506_v35, %v2483_v1 }
 0x41d   :  { %v2498_v7 = vadd.f32 %v2494_v57, %v2470_v22 }
 0x41f   :  { %v2520_v24 = vpop.permute.xlu0 %2519 }
 0x420   :  { %v2508_v54 = vpop.permute.xlu1 %2507  ;;  %v2525_v42 = vadd.f32 %v2520_v24, %v2497_v51  ;;  %v2622_v51 = vmul.f32 %v2620_v6, %v5404_v58 }
 0x421   :  { %v2512_v40 = vadd.f32 %v2508_v54, %v2484_v55 }
 0x423   :  { %v2534_v21 = vpop.permute.xlu0 %2533 }
 0x424   :  { %v2522_v48 = vpop.permute.xlu1 %2521  ;;  %v2539_v52 = vadd.f32 %v2534_v21, %v2511_v20 }
 0x425   :  { %v2526_v44 = vadd.f32 %v2522_v48, %v2498_v7 }
 0x427   :  { %v2548_v37 = vpop.permute.xlu0 %2547 }
 0x428   :  { %v2536_v31 = vpop.permute.xlu1 %2535  ;;  %v2553_v18 = vadd.f32 %v2548_v37, %v2525_v42 }
 0x429   :  { %v2540_v28 = vadd.f32 %v2536_v31, %v2512_v40 }
 0x42a   :  { %v2575_v33 = vadd.f32 %v2573_v60, %v2553_v18 }
 0x42b   :  { %v2562_v11 = vpop.permute.xlu0 %2561 }
 0x42c   :  { %v2550_v19 = vpop.permute.xlu1 %2549  ;;  %v2589_v3 = vadd.f32 %v2587_v53, %v2575_v33  ;;  %v2567_v12 = vadd.f32 %v2562_v11, %v2539_v52 }
 0x42d   :  { %v2554_v36 = vadd.f32 %v2550_v19, %v2526_v44 }
 0x42e   :  { %v2581_v26 = vadd.f32 %v2579_v13, %v2567_v12  ;;  %v2603_v32 = vadd.f32 %v2601_v16, %v2589_v3 }
 0x42f   :  { %v2576_v9 = vadd.f32 %v2574_v38, %v2554_v36  ;;  %v2632_v5 = vpop.permute.xlu0 %2631 }
 0x430   :  { %v2564_v8 = vpop.permute.xlu1 %2563  ;;  %v2595_v62 = vadd.f32 %v2593_v15, %v2581_v26  ;;  %v2617_v46 = vadd.f32 %v2615_v47, %v2603_v32 }
 0x431   :  { %v2590_v30 = vadd.f32 %v2588_v41, %v2576_v9  ;;  %v2568_v10 = vadd.f32 %v2564_v8, %v2540_v28 }
 0x432   :  { %v2609_v35 = vadd.f32 %v2607_v63, %v2595_v62  ;;  %v2637_v55 = vadd.f32 %v2632_v5, %v2617_v46  ;;  %v2852_v62 = vstv %s5549_s10 }
 0x433   :  { %v2582_v61 = vadd.f32 %v2580_v27, %v2568_v10  ;;  %v2604_v57 = vadd.f32 %v2602_v29, %v2590_v30  ;;  %v2646_v24 = vpop.permute.xlu0 %2645 }
 0x434   :  { %v2634_v54 = vpop.permute.xlu1 %2633  ;;  %v2623_v21 = vadd.f32 %v2621_v14, %v2609_v35 }
 0x435   :  { %v2596_v56 = vadd.f32 %v2594_v34, %v2582_v61  ;;  %v2618_v48 = vadd.f32 %v2616_v17, %v2604_v57 }
 0x436   :  { %v2651_v19 = vadd.f32 %v2646_v24, %v2623_v21 }
 0x437   :  { %v2610_v59 = vadd.f32 %v2608_v39, %v2596_v56  ;;  %v2660_v1 = vpop.permute.xlu0 %2659  ;;  %v2638_v38 = vadd.f32 %v2634_v54, %v2618_v48  ;;  %v2874_v56 = vstv %s5551_s11 }
 0x438   :  { %v2648_v22 = vpop.permute.xlu1 %2647  ;;  %v2665_v33 = vadd.f32 %v2660_v1, %v2637_v55 }
 0x439   :  { %v2624_v2 = vadd.f32 %v2622_v51, %v2610_v59 }
 0x43b   :  { %v2674_v43 = vpop.permute.xlu0 %2673  ;;  %v2652_v36 = vadd.f32 %v2648_v22, %v2624_v2 }
 0x43c   :  { %v2662_v42 = vpop.permute.xlu1 %2661  ;;  %v2679_v40 = vadd.f32 %v2674_v43, %v2651_v19 }
 0x43d   :  { %v2666_v23 = vadd.f32 %v2662_v42, %v2638_v38 }
 0x43f   :  { %v2688_v37 = vpop.permute.xlu0 %2687 }
 0x440   :  { %v2676_v31 = vpop.permute.xlu1 %2675  ;;  %v2693_v13 = vadd.f32 %v2688_v37, %v2665_v33 }
 0x441   :  { %v2680_v47 = vadd.f32 %v2676_v31, %v2652_v36 }
 0x443   :  { %v2702_v4 = vpop.permute.xlu0 %2701 }
 0x444   :  { %v2690_v45 = vpop.permute.xlu1 %2689  ;;  %v2707_v41 = vadd.f32 %v2702_v4, %v2679_v40 }
 0x445   :  { %v2694_v12 = vadd.f32 %v2690_v45, %v2666_v23 }
 0x447   :  { %v2716_v7 = vpop.permute.xlu0 %2715 }
 0x448   :  { %v2704_v25 = vpop.permute.xlu1 %2703  ;;  %v2721_v3 = vadd.f32 %v2716_v7, %v2693_v13 }
 0x449   :  { %v2708_v8 = vadd.f32 %v2704_v25, %v2680_v47 }
 0x44b   :  { %v2730_v60 = vpop.permute.xlu0 %2729 }
 0x44c   :  { %v2718_v20 = vpop.permute.xlu1 %2717  ;;  %v2735_v32 = vadd.f32 %v2730_v60, %v2707_v41 }
 0x44d   :  { %v2722_v26 = vadd.f32 %v2718_v20, %v2694_v12 }
 0x44f   :  { %v2744_v53 = vpop.permute.xlu0 %2743 }
 0x450   :  { %v2732_v18 = vpop.permute.xlu1 %2731  ;;  %v2749_v15 = vadd.f32 %v2744_v53, %v2721_v3 }
 0x451   :  { %v2736_v6 = vadd.f32 %v2732_v18, %v2708_v8 }
 0x453   :  { %v2758_v50 = vpop.permute.xlu0 %2757 }
 0x454   :  { %v2746_v49 = vpop.permute.xlu1 %2745  ;;  %v2763_v29 = vadd.f32 %v2758_v50, %v2735_v32 }
 0x455   :  { %v2750_v5 = vadd.f32 %v2746_v49, %v2722_v26 }
 0x457   :  { %v2772_v58 = vpop.permute.xlu0 %2771 }
 0x458   :  { %v2760_v0 = vpop.permute.xlu1 %2759  ;;  %v2777_v27 = vadd.f32 %v2772_v58, %v2749_v15 }
 0x459   :  { %v2764_v61 = vadd.f32 %v2760_v0, %v2736_v6 }
 0x45b   :  { %v2786_v52 = vpop.permute.xlu0 %2785 }
 0x45c   :  { %v2774_v44 = vpop.permute.xlu1 %2773  ;;  %v2791_v34 = vadd.f32 %v2786_v52, %v2763_v29 }
 0x45d   :  { %v2778_v46 = vadd.f32 %v2774_v44, %v2750_v5 }
 0x45f   :  { %v2800_v16 = vpop.permute.xlu0 %2799 }
 0x460   :  { %v2788_v11 = vpop.permute.xlu1 %2787  ;;  %v2805_v63 = vadd.f32 %v2800_v16, %v2777_v27 }
 0x461   :  { %v2792_v54 = vadd.f32 %v2788_v11, %v2764_v61 }
 0x463   :  { %v2814_v9 = vpop.permute.xlu0 %2813 }
 0x464   :  { %v2802_v28 = vpop.permute.xlu1 %2801  ;;  %v2819_v35 = vadd.f32 %v2814_v9, %v2791_v34 }
 0x465   :  { %v2806_v57 = vadd.f32 %v2802_v28, %v2778_v46 }
 0x467   :  { %v2828_v10 = vpop.permute.xlu0 %2827 }
 0x468   :  { %v2816_v30 = vpop.permute.xlu1 %2815  ;;  %v2833_v17 = vadd.f32 %v2828_v10, %v2805_v63 }
 0x469   :  { %v2820_v59 = vadd.f32 %v2816_v30, %v2792_v54 }
 0x46a   :  { %vm2849_vm3 = vcmp.gt.f32.partialorder %v2833_v17, 0.0  ;;  %v2853_v14 = vmul.f32 %v2852_v62, %v2833_v17 }
 0x46b   :  { %v2842_v48 = vpop.permute.xlu0 %2841 }
 0x46c   :  { %v2830_v24 = vpop.permute.xlu1 %2829  ;;  %v2847_v39 = vadd.f32 %v2842_v48, %v2819_v35  ;;  %v2855_v51 = vsel %vm2849_vm3, %v2833_v17, %v2853_v14 }
 0x46d   :  { %v2834_v21 = vadd.f32 %v2830_v24, %v2806_v57  ;;  %2862 = vrot.lane.b32.xlu0 %v2855_v51, %s3294_s12  ;;  %2858 = vst.msk [vmem:[#allocation17] sm:$0xff] %vm2857_vm2, %v2855_v51 }
 0x46e   :  { %vm2871_vm5 = vcmp.gt.f32.partialorder %v2847_v39, 0.0  ;;  %v2875_v1 = vmul.f32 %v2874_v56, %v2847_v39 }
 0x46f   :  { %vm2850_vm4 = vcmp.gt.f32.partialorder %v2834_v21, 0.0  ;;  %v2854_v22 = vmul.f32 %v2852_v62, %v2834_v21 }
 0x470   :  { %v2844_v2 = vpop.permute.xlu1 %2843  ;;  %v2877_v31 = vsel %vm2871_vm5, %v2847_v39, %v2875_v1 }
 0x471   :  { %v2848_v42 = vadd.f32 %v2844_v2, %v2820_v59  ;;  %v2856_v43 = vsel %vm2850_vm4, %v2834_v21, %v2854_v22  ;;  %2884 = vrot.lane.b32.xlu0 %v2877_v31, %s3294_s12  ;;  %2880 = vst.msk [vmem:[#allocation17 + $0x10] sm:$0xff] %vm2857_vm2, %v2877_v31 }
 0x472   :  { %2864 = vrot.lane.b32.xlu1 %v2856_v43, %s3294_s12  ;;  %2859 = vst.msk [vmem:[#allocation17 + $0x8] sm:$0xff] %vm2857_vm2, %v2856_v43 }
 0x473   :  { %vm2872_vm6 = vcmp.gt.f32.partialorder %v2848_v42, 0.0  ;;  %v2876_v37 = vmul.f32 %v2874_v56, %v2848_v42 }
 0x475   :  { %v2878_v45 = vsel %vm2872_vm6, %v2848_v42, %v2876_v37 }
 0x476   :  { %2881 = vst.msk [vmem:[#allocation17 + $0x18] sm:$0xff] %vm2857_vm2, %v2878_v45  ;;  %2886 = vrot.lane.b32.xlu1 %v2878_v45, %s3294_s12 }
 0x4df   :  { %v2863_v4 = vpop.permute.xlu0 %2862 }
 0x4e0   :  { %2869 = vst.msk [vmem:[#allocation17 + $0x20] sm:$0xff] %vm2857_vm2, %v2863_v4 }
 0x4e3   :  { %v2885_v7 = vpop.permute.xlu0 %2884 }
 0x4e4   :  { %v2865_v25 = vpop.permute.xlu1 %2864  ;;  %2891 = vst.msk [vmem:[#allocation17 + $0x30] sm:$0xff] %vm2857_vm2, %v2885_v7 }
 0x4e5   :  { %2870 = vst.msk [vmem:[#allocation17 + $0x28] sm:$0xff] %vm2857_vm2, %v2865_v25 }
 0x4e8   :  { %v2887_v20 = vpop.permute.xlu1 %2886 }
 0x4e9   :  { %2892 = vst.msk [vmem:[#allocation17 + $0x38] sm:$0xff] %vm2857_vm2, %v2887_v20 }
 0x4ea   :  { %3257 = shalt.err (!%p3254_p0)
}
 0x4eb   :  { %s3258_s18 = scalar_lea.hbm %s5585_s7, 1024 }
 0x4ec   :  { %p3259_p1 = scmp.ne.s32.totalorder %s5585_s7, %s3258_s18  ;;  %p3262_p2 = scmp.lt.u32.totalorder %s3258_s18, %s5585_s7 }
 0x4ee   :  { %p3264_p3 = pnand %p3262_p2, %p3259_p1 }
 0x4f0   :  { %3267 = shalt.err (!%p3264_p3)
}
 0x4f1   :  { %2904 = dma.vmem_to_hbm [thread:$0]  %s2899_s6, 1024, %s5585_s7, [#allocation6], %s3283_s1, %s3283_s1, %s3284_s22  }
 0x4f2   :  { %3278 = dma.done.wait [#allocation6], 1024  }
 0x4f3   :  { %3279 = vsyncadd [#allocation6], 4294966272 }
 0x4f4   :  { %2908 = vsyncpa [#allocation5], 1 }
 0x4f5   :  { %2909 = vsyncpa [#allocation6], 1 }
 0x4f6   :  { %2910 = vsyncpa [#allocation7], 1 }
 0x4f7   :  { %2911 = vsyncpa [#allocation10], 1 }
 0x4f8   :  { %2912 = vsyncpa [#allocation13], 1 }
 0x4f9   :  { %2913 = vsyncpa [#allocation16], 1 }

</bundles_post_ra>
